<compile_context>
chip_gen: v7x
topology: tpu7x:2x2x1
jax: 0.10.0
libtpu: 0.0.40
codegen_flags: <defaults>
</compile_context>

<pallas_src>
import functools
import math

import numpy as np
import jax
import jax.numpy as jnp
from jax.experimental import pallas as pl
from jax.experimental.pallas import tpu as pltpu

_LN_EPS = 1e-5


# ----------------------------------------------------------------------------
# Hardware-aware budgets / tiling helpers
# ----------------------------------------------------------------------------
@functools.lru_cache(maxsize=None)
def _vmem_limit():
    """Per-generation VMEM budget: ~96 MiB on v5e/v6e (128 MiB), ~48 MiB on v7x (64 MiB)."""
    try:
        cap = int(pltpu.get_tpu_info().vmem_capacity_bytes)
    except Exception:
        cap = 64 * 1024 * 1024
    return max(32 * 1024 * 1024, (cap * 3) // 4)


def _tile(dim, pref, align):
    """Largest multiple of `align` <= `pref` that evenly divides `dim`; else full dim.

    Full-dim blocks are always legal per the (8,128) BlockSpec rule, so tiny dims
    (like d_model=32 in the example) fall back to a single whole-array block.
    """
    if dim <= pref:
        return dim
    t = (pref // align) * align
    while t >= align:
        if dim % t == 0:
            return t
        t -= align
    return dim


def _head_tile(H, T, S, hd):
    """Head-block size for attention: divides H, is 8-aligned (or == H), bounded VMEM."""
    budget = _vmem_limit() // 4

    def fits(h):
        blk = 2 * (2 * h * T * hd * 2 + 2 * h * S * hd * 2)  # dbuf'd q/o + k/v (bf16)
        blk += 2 * T * S * 4                                  # per-head f32 score temps
        return blk <= budget

    if fits(H):
        return H
    cands = [h for h in range(8, H, 8) if H % h == 0]
    fitting = [h for h in cands if fits(h)]
    if fitting:
        return max(fitting)
    # TODO(synk): flash/online-softmax tiling over S for very long sequences.
    return min(cands) if cands else H


# ----------------------------------------------------------------------------
# Fused matmul kernel:  out = [LayerNorm]( [relu](x @ w + b) [+ residual] )
# ----------------------------------------------------------------------------
def _matmul_kernel(x_ref, w_ref, b_ref, *rest, relu, ln):
    if ln:
        res_ref, g_ref, beta_ref, o_ref, acc_ref = rest
    else:
        o_ref, acc_ref = rest

    k = pl.program_id(2)

    @pl.when(k == 0)
    def _init():
        acc_ref[...] = jnp.zeros_like(acc_ref)

    # bf16 MXU inputs (stored bf16 in HBM -> no per-step casts), f32 accumulation.
    acc_ref[...] += jnp.dot(x_ref[...], w_ref[...],
                            preferred_element_type=jnp.float32)

    @pl.when(k == pl.num_programs(2) - 1)
    def _finalize():
        y = acc_ref[...] + b_ref[...]
        if relu:
            y = jnp.maximum(y, 0.0)
        if ln:
            y = y + res_ref[...].astype(jnp.float32)
            mu = jnp.mean(y, axis=-1, keepdims=True)
            var = jnp.mean(jnp.square(y - mu), axis=-1, keepdims=True)
            y = (y - mu) * jax.lax.rsqrt(var + _LN_EPS)
            y = y * g_ref[...] + beta_ref[...]
        o_ref[...] = y.astype(o_ref.dtype)


def fused_matmul(x, w, b, *, relu=False, residual=None, gamma=None, beta=None,
                 out_dtype=jnp.bfloat16, tm=512, tn=512, tk=512):
    """x: (M, K) bf16; w: (K, N) pre-transposed (in, out) layout, bf16; b: (N,) f32."""
    M, K = x.shape
    K2, N = w.shape
    assert K == K2
    ln = residual is not None

    m_align = 16 if x.dtype == jnp.bfloat16 else 8
    tm = _tile(M, tm, m_align)
    tk = _tile(K, tk, 128)
    tn = N if ln else _tile(N, tn, 128)   # LayerNorm epilogue needs the full row in-block

    # Footprint-aware shrink (double-buffered inputs/outputs + f32 accumulator) so the
    # full-row LN path cannot exceed v7x's 64 MiB VMEM at realistic d_model.
    budget = (_vmem_limit() * 7) // 10

    def footprint(tm_, tk_, tn_):
        f = 2 * tm_ * tk_ * x.dtype.itemsize + 2 * tk_ * tn_ * w.dtype.itemsize
        f += 2 * tm_ * tn_ * np.dtype(out_dtype).itemsize + tm_ * tn_ * 4
        if ln:
            f += 2 * tm_ * tn_ * residual.dtype.itemsize
        return f

    while footprint(tm, tk, tn) > budget:
        if tm % 2 == 0 and tm // 2 >= m_align and M % (tm // 2) == 0:
            tm //= 2
        elif tk % 2 == 0 and tk // 2 >= 128 and K % (tk // 2) == 0:
            tk //= 2
        else:
            break

    grid = (M // tm, N // tn, K // tk)

    # TODO(synk): sweep pipeline_mode=pl.Buffered(3) on the weight spec when K//tk >= 3.
    in_specs = [
        pl.BlockSpec((tm, tk), lambda i, j, k: (i, k)),
        pl.BlockSpec((tk, tn), lambda i, j, k: (k, j)),
        pl.BlockSpec((1, tn), lambda i, j, k: (0, j)),
    ]
    args = [x, w, b.reshape(1, N)]
    if ln:
        in_specs += [
            pl.BlockSpec((tm, tn), lambda i, j, k: (i, j)),
            pl.BlockSpec((1, tn), lambda i, j, k: (0, j)),
            pl.BlockSpec((1, tn), lambda i, j, k: (0, j)),
        ]
        args += [residual, gamma.reshape(1, N), beta.reshape(1, N)]

    return pl.pallas_call(
        functools.partial(_matmul_kernel, relu=relu, ln=ln),
        out_shape=jax.ShapeDtypeStruct((M, N), out_dtype),
        grid_spec=pltpu.PrefetchScalarGridSpec(
            num_scalar_prefetch=0,
            grid=grid,
            in_specs=in_specs,
            out_specs=pl.BlockSpec((tm, tn), lambda i, j, k: (i, j)),
            scratch_shapes=[pltpu.VMEM((tm, tn), jnp.float32)]),
        compiler_params=pltpu.CompilerParams(
            dimension_semantics=("parallel", "parallel", "arbitrary"),
            vmem_limit_bytes=_vmem_limit()),
    )(*args)


# ----------------------------------------------------------------------------
# Attention kernel: softmax(q k^T) v  per head (q already pre-scaled by 1/sqrt(hd)).
# Grid = (batch, head-tiles); q/k/v are sliced out of the fused projection tensors
# by the BlockSpec index_maps (no XLA split / transpose between kernels).
# ----------------------------------------------------------------------------
def _attention_kernel(q_ref, k_ref, v_ref, o_ref):
    # q_ref: (T, hblk, hd)   k_ref / v_ref: (S, hblk, hd)   o_ref: (T, hblk, hd)
    hblk = q_ref.shape[1]
    for hh in range(hblk):                    # static unroll; plain 2-D MXU matmuls
        q = q_ref[:, hh, :]                   # (T, hd) bf16, pre-scaled
        k = k_ref[:, hh, :]                   # (S, hd) bf16
        v = v_ref[:, hh, :]                   # (S, hd) bf16
        s = jax.lax.dot_general(q, k, (((1,), (1,)), ((), ())),
                                preferred_element_type=jnp.float32)   # (T, S) f32
        m = jnp.max(s, axis=-1, keepdims=True)
        p = jnp.exp(s - m)
        l = jnp.sum(p, axis=-1, keepdims=True)                        # (T, 1)
        o = jnp.dot(p.astype(jnp.bfloat16), v,
                    preferred_element_type=jnp.float32)               # (T, hd) f32
        # Normalize AFTER the PV matmul (T*hd mults, not T*S); reciprocal on EUP slot.
        o_ref[:, hh, :] = (o * pl.reciprocal(l, approx=True)).astype(o_ref.dtype)
    # TODO(synk): lane-dense (T, D) output / fused out-projection inside this kernel
    #             (current per-head stores are hd-wide and lane-masked for hd < 128).


def _attention_call(args, in_specs, B, T, H, hd, hblk):
    return pl.pallas_call(
        _attention_kernel,
        out_shape=jax.ShapeDtypeStruct((B, T, H, hd), jnp.bfloat16),
        grid_spec=pltpu.PrefetchScalarGridSpec(
            num_scalar_prefetch=0,
            grid=(B, H // hblk),
            in_specs=in_specs,
            out_specs=pl.BlockSpec((pl.Squeezed(), T, hblk, hd),
                                   lambda b, h: (b, 0, h, 0))),
        compiler_params=pltpu.CompilerParams(
            dimension_semantics=("parallel", "parallel"),
            vmem_limit_bytes=_vmem_limit()),
    )(*args)


def self_attention(x_flat, B, T, p, num_heads):
    """Fused QKV projection + attention.  x_flat: (B*T, D) bf16, batch-major rows."""
    D = x_flat.shape[1]
    hd = D // num_heads
    qkv = fused_matmul(x_flat, p["w_qkv"], p["b_qkv"])           # (B*T, 3D) bf16
    qkv5 = qkv.reshape(B, T, 3, num_heads, hd)                   # free reshape
    hblk = _head_tile(num_heads, T, T, hd)
    sq = pl.Squeezed
    in_specs = [
        pl.BlockSpec((sq(), T, sq(), hblk, hd), lambda b, h: (b, 0, 0, h, 0)),  # q
        pl.BlockSpec((sq(), T, sq(), hblk, hd), lambda b, h: (b, 0, 1, h, 0)),  # k
        pl.BlockSpec((sq(), T, sq(), hblk, hd), lambda b, h: (b, 0, 2, h, 0)),  # v
    ]
    o = _attention_call((qkv5, qkv5, qkv5), in_specs, B, T, num_heads, hd, hblk)
    return o.reshape(B * T, D)                                   # free reshape


def cross_attention(x_flat, mem_flat, B, T, S, p, num_heads):
    D = x_flat.shape[1]
    hd = D // num_heads
    q = fused_matmul(x_flat, p["w_q"], p["b_q"])                 # (B*T, D)  bf16
    kv = fused_matmul(mem_flat, p["w_kv"], p["b_kv"])            # (B*S, 2D) bf16
    q4 = q.reshape(B, T, num_heads, hd)                          # free reshapes
    kv5 = kv.reshape(B, S, 2, num_heads, hd)
    hblk = _head_tile(num_heads, T, S, hd)
    sq = pl.Squeezed
    in_specs = [
        pl.BlockSpec((sq(), T, hblk, hd), lambda b, h: (b, 0, h, 0)),            # q
        pl.BlockSpec((sq(), S, sq(), hblk, hd), lambda b, h: (b, 0, 0, h, 0)),   # k
        pl.BlockSpec((sq(), S, sq(), hblk, hd), lambda b, h: (b, 0, 1, h, 0)),   # v
    ]
    o = _attention_call((q4, kv5, kv5), in_specs, B, T, num_heads, hd, hblk)
    return o.reshape(B * T, D)


# ----------------------------------------------------------------------------
# Plain LayerNorm kernel (used only for the decoder's final norm)
# ----------------------------------------------------------------------------
def _layernorm_kernel(x_ref, g_ref, b_ref, o_ref, *, eps):
    x = x_ref[...].astype(jnp.float32)
    mu = jnp.mean(x, axis=-1, keepdims=True)
    var = jnp.mean(jnp.square(x - mu), axis=-1, keepdims=True)
    o_ref[...] = ((x - mu) * jax.lax.rsqrt(var + eps) * g_ref[...] + b_ref[...]
                  ).astype(o_ref.dtype)


def layernorm(x, gamma, beta, eps=_LN_EPS):
    M, D = x.shape
    tm = _tile(M, 1024, 16 if x.dtype == jnp.bfloat16 else 8)
    return pl.pallas_call(
        functools.partial(_layernorm_kernel, eps=eps),
        out_shape=jax.ShapeDtypeStruct((M, D), jnp.float32),
        grid_spec=pltpu.PrefetchScalarGridSpec(
            num_scalar_prefetch=0,
            grid=(M // tm,),
            in_specs=[pl.BlockSpec((tm, D), lambda i: (i, 0)),
                      pl.BlockSpec((1, D), lambda i: (0, 0)),
                      pl.BlockSpec((1, D), lambda i: (0, 0))],
            out_specs=pl.BlockSpec((tm, D), lambda i: (i, 0))),
        compiler_params=pltpu.CompilerParams(
            dimension_semantics=("parallel",),
            vmem_limit_bytes=_vmem_limit()),
    )(x, gamma.reshape(1, D), beta.reshape(1, D))


# ----------------------------------------------------------------------------
# Decoder layer / decoder stack (post-LN, ReLU, eval-mode dropout = identity)
# ----------------------------------------------------------------------------
def decoder_layer(x0, mem, B, T, S, p, num_heads):
    """x0: (B*T, D) bf16 (batch-major token rows); mem: (B*S, D) bf16."""
    # self attention: x1 = LN1(out_proj(attn) + x0)   (bias+residual+LN fused epilogue)
    sa = self_attention(x0, B, T, p["self_attn"], num_heads)
    x1 = fused_matmul(sa, p["self_attn"]["w_out"], p["self_attn"]["b_out"],
                      residual=x0, gamma=p["norm1_w"], beta=p["norm1_b"])
    # cross attention: x2 = LN2(out_proj(attn) + x1)
    ca = cross_attention(x1, mem, B, T, S, p["cross_attn"], num_heads)
    x2 = fused_matmul(ca, p["cross_attn"]["w_out"], p["cross_attn"]["b_out"],
                      residual=x1, gamma=p["norm2_w"], beta=p["norm2_b"])
    # feed forward: x3 = LN3(linear2(relu(linear1(x2))) + x2)
    h = fused_matmul(x2, p["ff1_w"], p["ff1_b"], relu=True)
    x3 = fused_matmul(h, p["ff2_w"], p["ff2_b"],
                      residual=x2, gamma=p["norm3_w"], beta=p["norm3_b"])
    return x3


def transformer_decoder(tgt, memory, layer_params, final_norm, num_heads,
                        tgt_mask=None, memory_mask=None,
                        tgt_key_padding_mask=None, memory_key_padding_mask=None):
    # TODO(synk): attention masks / key-padding masks not implemented (reference passes None).
    if (tgt_mask is not None or memory_mask is not None or
            tgt_key_padding_mask is not None or memory_key_padding_mask is not None):
        raise NotImplementedError("masks are not supported")
    T, B, D = tgt.shape
    S = memory.shape[0]
    # (seq, batch, D) -> batch-major rows, once for the whole stack; inside the stack
    # there are no XLA transposes / head splits between pallas_calls.
    x = jnp.transpose(tgt, (1, 0, 2)).astype(jnp.bfloat16).reshape(B * T, D)
    mem = jnp.transpose(memory, (1, 0, 2)).astype(jnp.bfloat16).reshape(B * S, D)
    # TODO(synk): whole-layer kernel fusion / cross-call weight prefetch for
    #             launch-overhead-bound (small seq*batch) shapes not implemented.
    for p in layer_params:
        x = decoder_layer(x, mem, B, T, S, p, num_heads)
    if final_norm is not None:
        x = layernorm(x, final_norm["w"], final_norm["b"])       # f32 out
    else:
        x = x.astype(jnp.float32)
    return jnp.transpose(x.reshape(B, T, D), (1, 0, 2))          # back to (T, B, D)


# ----------------------------------------------------------------------------
# Deterministic parameter init.  Matmul weights are stored PRE-TRANSPOSED in (K, N)
# layout and in bf16, with Q/K/V (and K/V for cross-attn) fused along the output dim.
# The 1/sqrt(head_dim) attention scale is folded into the q projection weights here,
# so the attention kernel never rescales q.  (To import PyTorch weights, multiply
# W_q / b_q by 1/sqrt(head_dim) before use.)
# ----------------------------------------------------------------------------
def init_params(key, num_layers, d_model, nhead, dim_feedforward):
    hd = d_model // nhead
    q_scale = 1.0 / math.sqrt(hd)

    def w(k, shape, scale=1.0):
        return (jax.random.normal(k, shape, jnp.float32) * 0.02 * scale
                ).astype(jnp.bfloat16)

    layers = []
    for i in range(num_layers):
        ks = jax.random.split(jax.random.fold_in(key, i), 10)
        w_qkv = jnp.concatenate([w(ks[0], (d_model, d_model), q_scale),
                                 w(ks[1], (d_model, d_model)),
                                 w(ks[2], (d_model, d_model))], axis=1)   # [Wq|Wk|Wv]
        w_kv = jnp.concatenate([w(ks[5], (d_model, d_model)),
                                w(ks[6], (d_model, d_model))], axis=1)    # [Wk|Wv]
        layers.append({
            "self_attn": {
                "w_qkv": w_qkv,                                   # (D, 3D), (in,out), bf16
                "b_qkv": jnp.zeros((3 * d_model,), jnp.float32),
                "w_out": w(ks[3], (d_model, d_model)),
                "b_out": jnp.zeros((d_model,), jnp.float32),
            },
            "cross_attn": {
                "w_q": w(ks[4], (d_model, d_model), q_scale),
                "b_q": jnp.zeros((d_model,), jnp.float32),
                "w_kv": w_kv,                                     # (D, 2D)
                "b_kv": jnp.zeros((2 * d_model,), jnp.float32),
                "w_out": w(ks[7], (d_model, d_model)),
                "b_out": jnp.zeros((d_model,), jnp.float32),
            },
            "ff1_w": w(ks[8], (d_model, dim_feedforward)),
            "ff1_b": jnp.zeros((dim_feedforward,), jnp.float32),
            "ff2_w": w(ks[9], (dim_feedforward, d_model)),
            "ff2_b": jnp.zeros((d_model,), jnp.float32),
            "norm1_w": jnp.ones((d_model,), jnp.float32),
            "norm1_b": jnp.zeros((d_model,), jnp.float32),
            "norm2_w": jnp.ones((d_model,), jnp.float32),
            "norm2_b": jnp.zeros((d_model,), jnp.float32),
            "norm3_w": jnp.ones((d_model,), jnp.float32),
            "norm3_b": jnp.zeros((d_model,), jnp.float32),
        })
    final_norm = {"w": jnp.ones((d_model,), jnp.float32),
                  "b": jnp.zeros((d_model,), jnp.float32)}
    return layers, final_norm


# ----------------------------------------------------------------------------
if __name__ == "__main__":
    T, S, B = 8, 8, 2          # tgt seq, memory seq, batch
    D, NHEAD, DFF = 32, 4, 64  # d_model, heads, feed-forward width
    NUM_LAYERS = 2

    key = jax.random.PRNGKey(0)
    k_tgt, k_mem, k_par = jax.random.split(key, 3)
    tgt = jax.random.normal(k_tgt, (T, B, D), jnp.float32)
    memory = jax.random.normal(k_mem, (S, B, D), jnp.float32)

    layer_params, final_norm = init_params(k_par, NUM_LAYERS, D, NHEAD, DFF)

    fwd = jax.jit(lambda t, m, lp, fn: transformer_decoder(t, m, lp, fn, NHEAD))
    out = jax.block_until_ready(fwd(tgt, memory, layer_params, final_norm))

    assert out.shape == (T, B, D) and out.dtype == jnp.float32
    assert bool(jnp.all(jnp.isfinite(out)))
    print("KERNEL_OK")
</pallas_src>

<mosaic_0001>
module attributes {stable_mosaic.version = 11 : i64} {
  func.func @_matmul_kernel(%arg0: i32, %arg1: i32, %arg2: i32, %arg3: memref<16x32xbf16, #tpu.memory_space<vmem>>, %arg4: memref<32x96xbf16, #tpu.memory_space<vmem>>, %arg5: memref<1x96xf32, #tpu.memory_space<vmem>>, %arg6: memref<16x96xbf16, #tpu.memory_space<vmem>>, %arg7: memref<16x96xf32, #tpu.memory_space<vmem>>) attributes {dimension_semantics = [#tpu.dimension_semantics<parallel>, #tpu.dimension_semantics<parallel>, #tpu.dimension_semantics<arbitrary>], iteration_bounds = array<i64: 1, 1, 1>, scalar_prefetch = 0 : i64, scratch_operands = 1 : i64, tpu.core_type = #tpu.core_type<tc>, window_params = [{transform_indices = @transform_0, window_bounds = array<i64: 16, 32>}, {transform_indices = @transform_1, window_bounds = array<i64: 32, 96>}, {transform_indices = @transform_2, window_bounds = array<i64: 1, 96>}, {transform_indices = @transform_3, window_bounds = array<i64: 16, 96>}]} {
    %c0_i32 = arith.constant 0 : i32
    %0 = arith.cmpi eq, %arg2, %c0_i32 : i32
    %1 = arith.extui %0 : i1 to i32
    %c0_i32_0 = arith.constant 0 : i32
    %2 = arith.cmpi ne, %1, %c0_i32_0 : i32
    scf.if %2 {
      %cst_10 = arith.constant 0.000000e+00 : f32
      %12 = vector.broadcast %cst_10 : f32 to vector<16x96xf32>
      %c0_11 = arith.constant 0 : index
      %c0_12 = arith.constant 0 : index
      %13 = vector.load %arg7[%c0_11, %c0_12] : memref<16x96xf32, #tpu.memory_space<vmem>>, vector<16x96xf32>
      tpu.vector_store %arg7[%c0_11, %c0_12], %12 {strides = array<i32>} : memref<16x96xf32, #tpu.memory_space<vmem>>, vector<16x96xf32>,
    } else {
    }
    %c0 = arith.constant 0 : index
    %c0_1 = arith.constant 0 : index
    %3 = vector.load %arg7[%c0, %c0_1] : memref<16x96xf32, #tpu.memory_space<vmem>>, vector<16x96xf32>
    %c0_2 = arith.constant 0 : index
    %c0_3 = arith.constant 0 : index
    %4 = vector.load %arg3[%c0_2, %c0_3] : memref<16x32xbf16, #tpu.memory_space<vmem>>, vector<16x32xbf16>
    %c0_4 = arith.constant 0 : index
    %c0_5 = arith.constant 0 : index
    %5 = vector.load %arg4[%c0_4, %c0_5] : memref<32x96xbf16, #tpu.memory_space<vmem>>, vector<32x96xbf16>
    %cst = arith.constant dense<0.000000e+00> : vector<16x96xf32>
    %6 = tpu.matmul %4, %5, %cst {dimension_numbers = #tpu.dot_dimension_numbers<[1], [0], [0], [1], [0, 0, 1, 1], [], []>} : vector<16x32xbf16>, vector<32x96xbf16>, vector<16x96xf32> -> vector<16x96xf32>
    %7 = arith.addf %3, %6 : vector<16x96xf32>
    %c0_6 = arith.constant 0 : index
    %c0_7 = arith.constant 0 : index
    %8 = vector.load %arg7[%c0_6, %c0_7] : memref<16x96xf32, #tpu.memory_space<vmem>>, vector<16x96xf32>
    tpu.vector_store %arg7[%c0_6, %c0_7], %7 {strides = array<i32>} : memref<16x96xf32, #tpu.memory_space<vmem>>, vector<16x96xf32>,
    %c0_i32_8 = arith.constant 0 : i32
    %9 = arith.cmpi eq, %arg2, %c0_i32_8 : i32
    %10 = arith.extui %9 : i1 to i32
    %c0_i32_9 = arith.constant 0 : i32
    %11 = arith.cmpi ne, %10, %c0_i32_9 : i32
    scf.if %11 {
      %c0_10 = arith.constant 0 : index
      %c0_11 = arith.constant 0 : index
      %12 = vector.load %arg7[%c0_10, %c0_11] : memref<16x96xf32, #tpu.memory_space<vmem>>, vector<16x96xf32>
      %c0_12 = arith.constant 0 : index
      %c0_13 = arith.constant 0 : index
      %13 = vector.load %arg5[%c0_12, %c0_13] : memref<1x96xf32, #tpu.memory_space<vmem>>, vector<1x96xf32>
      %14 = vector.broadcast %13 : vector<1x96xf32> to vector<16x96xf32>
      %15 = arith.addf %12, %14 : vector<16x96xf32>
      %16 = arith.truncf %15 : vector<16x96xf32> to vector<16x96xbf16>
      %c0_14 = arith.constant 0 : index
      %c0_15 = arith.constant 0 : index
      %17 = vector.load %arg6[%c0_14, %c0_15] : memref<16x96xbf16, #tpu.memory_space<vmem>>, vector<16x96xbf16>
      tpu.vector_store %arg6[%c0_14, %c0_15], %16 {strides = array<i32>} : memref<16x96xbf16, #tpu.memory_space<vmem>>, vector<16x96xbf16>,
    } else {
    }
    return
  }
  func.func @transform_0(%arg0: i32, %arg1: i32, %arg2: i32) -> (i32, i32) {
    %c0_i32 = arith.constant 0 : i32
    return %arg0, %arg2 : i32, i32
  }
  func.func @transform_1(%arg0: i32, %arg1: i32, %arg2: i32) -> (i32, i32) {
    %c0_i32 = arith.constant 0 : i32
    return %arg2, %arg1 : i32, i32
  }
  func.func @transform_2(%arg0: i32, %arg1: i32, %arg2: i32) -> (i32, i32) {
    %c0_i32 = arith.constant 0 : i32
    %c0_i32_0 = arith.constant 0 : i32
    return %c0_i32, %arg1 : i32, i32
  }
  func.func @transform_3(%arg0: i32, %arg1: i32, %arg2: i32) -> (i32, i32) {
    %c0_i32 = arith.constant 0 : i32
    return %arg0, %arg1 : i32, i32
  }
}

module attributes {stable_mosaic.version = 11 : i64} {
  func.func @_attention_kernel(%arg0: i32, %arg1: i32, %arg2: memref<1x8x1x4x8xbf16, #tpu.memory_space<vmem>>, %arg3: memref<1x8x1x4x8xbf16, #tpu.memory_space<vmem>>, %arg4: memref<1x8x1x4x8xbf16, #tpu.memory_space<vmem>>, %arg5: memref<1x8x4x8xbf16, #tpu.memory_space<vmem>>) attributes {dimension_semantics = [#tpu.dimension_semantics<parallel>, #tpu.dimension_semantics<parallel>], iteration_bounds = array<i64: 2, 1>, scalar_prefetch = 0 : i64, scratch_operands = 0 : i64, tpu.core_type = #tpu.core_type<tc>, window_params = [{transform_indices = @transform_0, window_bounds = array<i64: 1, 8, 1, 4, 8>}, {transform_indices = @transform_1, window_bounds = array<i64: 1, 8, 1, 4, 8>}, {transform_indices = @transform_2, window_bounds = array<i64: 1, 8, 1, 4, 8>}, {transform_indices = @transform_3, window_bounds = array<i64: 1, 8, 4, 8>}]} {
    %c0 = arith.constant 0 : index
    %c0_0 = arith.constant 0 : index
    %c0_1 = arith.constant 0 : index
    %c0_2 = arith.constant 0 : index
    %c0_3 = arith.constant 0 : index
    %0 = vector.load %arg2[%c0, %c0_0, %c0_1, %c0_2, %c0_3] : memref<1x8x1x4x8xbf16, #tpu.memory_space<vmem>>, vector<1x8x1x1x8xbf16>
    %1 = vector.shape_cast %0 : vector<1x8x1x1x8xbf16> to vector<8x8xbf16>
    %c0_4 = arith.constant 0 : index
    %c0_5 = arith.constant 0 : index
    %c0_6 = arith.constant 0 : index
    %c0_7 = arith.constant 0 : index
    %c0_8 = arith.constant 0 : index
    %2 = vector.load %arg3[%c0_4, %c0_5, %c0_6, %c0_7, %c0_8] : memref<1x8x1x4x8xbf16, #tpu.memory_space<vmem>>, vector<1x8x1x1x8xbf16>
    %3 = vector.shape_cast %2 : vector<1x8x1x1x8xbf16> to vector<8x8xbf16>
    %c0_9 = arith.constant 0 : index
    %c0_10 = arith.constant 0 : index
    %c0_11 = arith.constant 0 : index
    %c0_12 = arith.constant 0 : index
    %c0_13 = arith.constant 0 : index
    %4 = vector.load %arg4[%c0_9, %c0_10, %c0_11, %c0_12, %c0_13] : memref<1x8x1x4x8xbf16, #tpu.memory_space<vmem>>, vector<1x8x1x1x8xbf16>
    %5 = vector.shape_cast %4 : vector<1x8x1x1x8xbf16> to vector<8x8xbf16>
    %cst = arith.constant dense<0.000000e+00> : vector<8x8xf32>
    %6 = tpu.matmul %1, %3, %cst {dimension_numbers = #tpu.dot_dimension_numbers<[1], [1], [0], [0], [0, 0, 1, 0], [], []>} : vector<8x8xbf16>, vector<8x8xbf16>, vector<8x8xf32> -> vector<8x8xf32>
    %cst_14 = arith.constant dense<0xFF800000> : vector<8xf32>
    %7 = vector.multi_reduction <maximumf>, %6, %cst_14 [1] : vector<8x8xf32> to vector<8xf32>
    %8 = vector.shape_cast %7 : vector<8xf32> to vector<8x1xf32>
    %9 = vector.broadcast %8 : vector<8x1xf32> to vector<8x8xf32>
    %10 = arith.subf %6, %9 : vector<8x8xf32>
    %11 = math.exp %10 : vector<8x8xf32>
    %cst_15 = arith.constant dense<0.000000e+00> : vector<8xf32>
    %12 = vector.multi_reduction <add>, %11, %cst_15 [1] : vector<8x8xf32> to vector<8xf32>
    %13 = vector.shape_cast %12 : vector<8xf32> to vector<8x1xf32>
    %14 = arith.truncf %11 : vector<8x8xf32> to vector<8x8xbf16>
    %cst_16 = arith.constant dense<0.000000e+00> : vector<8x8xf32>
    %15 = tpu.matmul %14, %5, %cst_16 {dimension_numbers = #tpu.dot_dimension_numbers<[1], [0], [0], [1], [0, 0, 1, 1], [], []>} : vector<8x8xbf16>, vector<8x8xbf16>, vector<8x8xf32> -> vector<8x8xf32>
    %16 = tpu.reciprocal %13 {approx = true} : vector<8x1xf32> -> vector<8x1xf32>
    %17 = vector.broadcast %16 : vector<8x1xf32> to vector<8x8xf32>
    %18 = arith.mulf %15, %17 : vector<8x8xf32>
    %19 = arith.truncf %18 : vector<8x8xf32> to vector<8x8xbf16>
    %c0_17 = arith.constant 0 : index
    %c0_18 = arith.constant 0 : index
    %c0_19 = arith.constant 0 : index
    %c0_20 = arith.constant 0 : index
    %20 = vector.load %arg5[%c0_17, %c0_18, %c0_19, %c0_20] : memref<1x8x4x8xbf16, #tpu.memory_space<vmem>>, vector<1x8x1x8xbf16>
    %21 = vector.shape_cast %20 : vector<1x8x1x8xbf16> to vector<8x8xbf16>
    %22 = vector.shape_cast %19 : vector<8x8xbf16> to vector<1x8x1x8xbf16>
    tpu.vector_store %arg5[%c0_17, %c0_18, %c0_19, %c0_20], %22 {strides = array<i32>} : memref<1x8x4x8xbf16, #tpu.memory_space<vmem>>, vector<1x8x1x8xbf16>,
    %c0_21 = arith.constant 0 : index
    %c0_22 = arith.constant 0 : index
    %c0_23 = arith.constant 0 : index
    %c1 = arith.constant 1 : index
    %c0_24 = arith.constant 0 : index
    %23 = vector.load %arg2[%c0_21, %c0_22, %c0_23, %c1, %c0_24] : memref<1x8x1x4x8xbf16, #tpu.memory_space<vmem>>, vector<1x8x1x1x8xbf16>
    %24 = vector.shape_cast %23 : vector<1x8x1x1x8xbf16> to vector<8x8xbf16>
    %c0_25 = arith.constant 0 : index
    %c0_26 = arith.constant 0 : index
    %c0_27 = arith.constant 0 : index
    %c1_28 = arith.constant 1 : index
    %c0_29 = arith.constant 0 : index
    %25 = vector.load %arg3[%c0_25, %c0_26, %c0_27, %c1_28, %c0_29] : memref<1x8x1x4x8xbf16, #tpu.memory_space<vmem>>, vector<1x8x1x1x8xbf16>
    %26 = vector.shape_cast %25 : vector<1x8x1x1x8xbf16> to vector<8x8xbf16>
    %c0_30 = arith.constant 0 : index
    %c0_31 = arith.constant 0 : index
    %c0_32 = arith.constant 0 : index
    %c1_33 = arith.constant 1 : index
    %c0_34 = arith.constant 0 : index
    %27 = vector.load %arg4[%c0_30, %c0_31, %c0_32, %c1_33, %c0_34] : memref<1x8x1x4x8xbf16, #tpu.memory_space<vmem>>, vector<1x8x1x1x8xbf16>
    %28 = vector.shape_cast %27 : vector<1x8x1x1x8xbf16> to vector<8x8xbf16>
    %cst_35 = arith.constant dense<0.000000e+00> : vector<8x8xf32>
    %29 = tpu.matmul %24, %26, %cst_35 {dimension_numbers = #tpu.dot_dimension_numbers<[1], [1], [0], [0], [0, 0, 1, 0], [], []>} : vector<8x8xbf16>, vector<8x8xbf16>, vector<8x8xf32> -> vector<8x8xf32>
    %cst_36 = arith.constant dense<0xFF800000> : vector<8xf32>
    %30 = vector.multi_reduction <maximumf>, %29, %cst_36 [1] : vector<8x8xf32> to vector<8xf32>
    %31 = vector.shape_cast %30 : vector<8xf32> to vector<8x1xf32>
    %32 = vector.broadcast %31 : vector<8x1xf32> to vector<8x8xf32>
    %33 = arith.subf %29, %32 : vector<8x8xf32>
    %34 = math.exp %33 : vector<8x8xf32>
    %cst_37 = arith.constant dense<0.000000e+00> : vector<8xf32>
    %35 = vector.multi_reduction <add>, %34, %cst_37 [1] : vector<8x8xf32> to vector<8xf32>
    %36 = vector.shape_cast %35 : vector<8xf32> to vector<8x1xf32>
    %37 = arith.truncf %34 : vector<8x8xf32> to vector<8x8xbf16>
    %cst_38 = arith.constant dense<0.000000e+00> : vector<8x8xf32>
    %38 = tpu.matmul %37, %28, %cst_38 {dimension_numbers = #tpu.dot_dimension_numbers<[1], [0], [0], [1], [0, 0, 1, 1], [], []>} : vector<8x8xbf16>, vector<8x8xbf16>, vector<8x8xf32> -> vector<8x8xf32>
    %39 = tpu.reciprocal %36 {approx = true} : vector<8x1xf32> -> vector<8x1xf32>
    %40 = vector.broadcast %39 : vector<8x1xf32> to vector<8x8xf32>
    %41 = arith.mulf %38, %40 : vector<8x8xf32>
    %42 = arith.truncf %41 : vector<8x8xf32> to vector<8x8xbf16>
    %c0_39 = arith.constant 0 : index
    %c0_40 = arith.constant 0 : index
    %c1_41 = arith.constant 1 : index
    %c0_42 = arith.constant 0 : index
    %43 = vector.load %arg5[%c0_39, %c0_40, %c1_41, %c0_42] : memref<1x8x4x8xbf16, #tpu.memory_space<vmem>>, vector<1x8x1x8xbf16>
    %44 = vector.shape_cast %43 : vector<1x8x1x8xbf16> to vector<8x8xbf16>
    %45 = vector.shape_cast %42 : vector<8x8xbf16> to vector<1x8x1x8xbf16>
    tpu.vector_store %arg5[%c0_39, %c0_40, %c1_41, %c0_42], %45 {strides = array<i32>} : memref<1x8x4x8xbf16, #tpu.memory_space<vmem>>, vector<1x8x1x8xbf16>,
    %c0_43 = arith.constant 0 : index
    %c0_44 = arith.constant 0 : index
    %c0_45 = arith.constant 0 : index
    %c2 = arith.constant 2 : index
    %c0_46 = arith.constant 0 : index
    %46 = vector.load %arg2[%c0_43, %c0_44, %c0_45, %c2, %c0_46] : memref<1x8x1x4x8xbf16, #tpu.memory_space<vmem>>, vector<1x8x1x1x8xbf16>
    %47 = vector.shape_cast %46 : vector<1x8x1x1x8xbf16> to vector<8x8xbf16>
    %c0_47 = arith.constant 0 : index
    %c0_48 = arith.constant 0 : index
    %c0_49 = arith.constant 0 : index
    %c2_50 = arith.constant 2 : index
    %c0_51 = arith.constant 0 : index
    %48 = vector.load %arg3[%c0_47, %c0_48, %c0_49, %c2_50, %c0_51] : memref<1x8x1x4x8xbf16, #tpu.memory_space<vmem>>, vector<1x8x1x1x8xbf16>
    %49 = vector.shape_cast %48 : vector<1x8x1x1x8xbf16> to vector<8x8xbf16>
    %c0_52 = arith.constant 0 : index
    %c0_53 = arith.constant 0 : index
    %c0_54 = arith.constant 0 : index
    %c2_55 = arith.constant 2 : index
    %c0_56 = arith.constant 0 : index
    %50 = vector.load %arg4[%c0_52, %c0_53, %c0_54, %c2_55, %c0_56] : memref<1x8x1x4x8xbf16, #tpu.memory_space<vmem>>, vector<1x8x1x1x8xbf16>
    %51 = vector.shape_cast %50 : vector<1x8x1x1x8xbf16> to vector<8x8xbf16>
    %cst_57 = arith.constant dense<0.000000e+00> : vector<8x8xf32>
    %52 = tpu.matmul %47, %49, %cst_57 {dimension_numbers = #tpu.dot_dimension_numbers<[1], [1], [0], [0], [0, 0, 1, 0], [], []>} : vector<8x8xbf16>, vector<8x8xbf16>, vector<8x8xf32> -> vector<8x8xf32>
    %cst_58 = arith.constant dense<0xFF800000> : vector<8xf32>
    %53 = vector.multi_reduction <maximumf>, %52, %cst_58 [1] : vector<8x8xf32> to vector<8xf32>
    %54 = vector.shape_cast %53 : vector<8xf32> to vector<8x1xf32>
    %55 = vector.broadcast %54 : vector<8x1xf32> to vector<8x8xf32>
    %56 = arith.subf %52, %55 : vector<8x8xf32>
    %57 = math.exp %56 : vector<8x8xf32>
    %cst_59 = arith.constant dense<0.000000e+00> : vector<8xf32>
    %58 = vector.multi_reduction <add>, %57, %cst_59 [1] : vector<8x8xf32> to vector<8xf32>
    %59 = vector.shape_cast %58 : vector<8xf32> to vector<8x1xf32>
    %60 = arith.truncf %57 : vector<8x8xf32> to vector<8x8xbf16>
    %cst_60 = arith.constant dense<0.000000e+00> : vector<8x8xf32>
    %61 = tpu.matmul %60, %51, %cst_60 {dimension_numbers = #tpu.dot_dimension_numbers<[1], [0], [0], [1], [0, 0, 1, 1], [], []>} : vector<8x8xbf16>, vector<8x8xbf16>, vector<8x8xf32> -> vector<8x8xf32>
    %62 = tpu.reciprocal %59 {approx = true} : vector<8x1xf32> -> vector<8x1xf32>
    %63 = vector.broadcast %62 : vector<8x1xf32> to vector<8x8xf32>
    %64 = arith.mulf %61, %63 : vector<8x8xf32>
    %65 = arith.truncf %64 : vector<8x8xf32> to vector<8x8xbf16>
    %c0_61 = arith.constant 0 : index
    %c0_62 = arith.constant 0 : index
    %c2_63 = arith.constant 2 : index
    %c0_64 = arith.constant 0 : index
    %66 = vector.load %arg5[%c0_61, %c0_62, %c2_63, %c0_64] : memref<1x8x4x8xbf16, #tpu.memory_space<vmem>>, vector<1x8x1x8xbf16>
    %67 = vector.shape_cast %66 : vector<1x8x1x8xbf16> to vector<8x8xbf16>
    %68 = vector.shape_cast %65 : vector<8x8xbf16> to vector<1x8x1x8xbf16>
    tpu.vector_store %arg5[%c0_61, %c0_62, %c2_63, %c0_64], %68 {strides = array<i32>} : memref<1x8x4x8xbf16, #tpu.memory_space<vmem>>, vector<1x8x1x8xbf16>,
    %c0_65 = arith.constant 0 : index
    %c0_66 = arith.constant 0 : index
    %c0_67 = arith.constant 0 : index
    %c3 = arith.constant 3 : index
    %c0_68 = arith.constant 0 : index
    %69 = vector.load %arg2[%c0_65, %c0_66, %c0_67, %c3, %c0_68] : memref<1x8x1x4x8xbf16, #tpu.memory_space<vmem>>, vector<1x8x1x1x8xbf16>
    %70 = vector.shape_cast %69 : vector<1x8x1x1x8xbf16> to vector<8x8xbf16>
    %c0_69 = arith.constant 0 : index
    %c0_70 = arith.constant 0 : index
    %c0_71 = arith.constant 0 : index
    %c3_72 = arith.constant 3 : index
    %c0_73 = arith.constant 0 : index
    %71 = vector.load %arg3[%c0_69, %c0_70, %c0_71, %c3_72, %c0_73] : memref<1x8x1x4x8xbf16, #tpu.memory_space<vmem>>, vector<1x8x1x1x8xbf16>
    %72 = vector.shape_cast %71 : vector<1x8x1x1x8xbf16> to vector<8x8xbf16>
    %c0_74 = arith.constant 0 : index
    %c0_75 = arith.constant 0 : index
    %c0_76 = arith.constant 0 : index
    %c3_77 = arith.constant 3 : index
    %c0_78 = arith.constant 0 : index
    %73 = vector.load %arg4[%c0_74, %c0_75, %c0_76, %c3_77, %c0_78] : memref<1x8x1x4x8xbf16, #tpu.memory_space<vmem>>, vector<1x8x1x1x8xbf16>
    %74 = vector.shape_cast %73 : vector<1x8x1x1x8xbf16> to vector<8x8xbf16>
    %cst_79 = arith.constant dense<0.000000e+00> : vector<8x8xf32>
    %75 = tpu.matmul %70, %72, %cst_79 {dimension_numbers = #tpu.dot_dimension_numbers<[1], [1], [0], [0], [0, 0, 1, 0], [], []>} : vector<8x8xbf16>, vector<8x8xbf16>, vector<8x8xf32> -> vector<8x8xf32>
    %cst_80 = arith.constant dense<0xFF800000> : vector<8xf32>
    %76 = vector.multi_reduction <maximumf>, %75, %cst_80 [1] : vector<8x8xf32> to vector<8xf32>
    %77 = vector.shape_cast %76 : vector<8xf32> to vector<8x1xf32>
    %78 = vector.broadcast %77 : vector<8x1xf32> to vector<8x8xf32>
    %79 = arith.subf %75, %78 : vector<8x8xf32>
    %80 = math.exp %79 : vector<8x8xf32>
    %cst_81 = arith.constant dense<0.000000e+00> : vector<8xf32>
    %81 = vector.multi_reduction <add>, %80, %cst_81 [1] : vector<8x8xf32> to vector<8xf32>
    %82 = vector.shape_cast %81 : vector<8xf32> to vector<8x1xf32>
    %83 = arith.truncf %80 : vector<8x8xf32> to vector<8x8xbf16>
    %cst_82 = arith.constant dense<0.000000e+00> : vector<8x8xf32>
    %84 = tpu.matmul %83, %74, %cst_82 {dimension_numbers = #tpu.dot_dimension_numbers<[1], [0], [0], [1], [0, 0, 1, 1], [], []>} : vector<8x8xbf16>, vector<8x8xbf16>, vector<8x8xf32> -> vector<8x8xf32>
    %85 = tpu.reciprocal %82 {approx = true} : vector<8x1xf32> -> vector<8x1xf32>
    %86 = vector.broadcast %85 : vector<8x1xf32> to vector<8x8xf32>
    %87 = arith.mulf %84, %86 : vector<8x8xf32>
    %88 = arith.truncf %87 : vector<8x8xf32> to vector<8x8xbf16>
    %c0_83 = arith.constant 0 : index
    %c0_84 = arith.constant 0 : index
    %c3_85 = arith.constant 3 : index
    %c0_86 = arith.constant 0 : index
    %89 = vector.load %arg5[%c0_83, %c0_84, %c3_85, %c0_86] : memref<1x8x4x8xbf16, #tpu.memory_space<vmem>>, vector<1x8x1x8xbf16>
    %90 = vector.shape_cast %89 : vector<1x8x1x8xbf16> to vector<8x8xbf16>
    %91 = vector.shape_cast %88 : vector<8x8xbf16> to vector<1x8x1x8xbf16>
    tpu.vector_store %arg5[%c0_83, %c0_84, %c3_85, %c0_86], %91 {strides = array<i32>} : memref<1x8x4x8xbf16, #tpu.memory_space<vmem>>, vector<1x8x1x8xbf16>,
    return
  }
  func.func @transform_0(%arg0: i32, %arg1: i32) -> (i32, i32, i32, i32, i32) {
    %c0_i32 = arith.constant 0 : i32
    %c0_i32_0 = arith.constant 0 : i32
    %c0_i32_1 = arith.constant 0 : i32
    %c0_i32_2 = arith.constant 0 : i32
    return %arg0, %c0_i32, %c0_i32_0, %arg1, %c0_i32_1 : i32, i32, i32, i32, i32
  }
  func.func @transform_1(%arg0: i32, %arg1: i32) -> (i32, i32, i32, i32, i32) {
    %c0_i32 = arith.constant 0 : i32
    %c1_i32 = arith.constant 1 : i32
    %c0_i32_0 = arith.constant 0 : i32
    %c0_i32_1 = arith.constant 0 : i32
    return %arg0, %c0_i32, %c1_i32, %arg1, %c0_i32_0 : i32, i32, i32, i32, i32
  }
  func.func @transform_2(%arg0: i32, %arg1: i32) -> (i32, i32, i32, i32, i32) {
    %c0_i32 = arith.constant 0 : i32
    %c2_i32 = arith.constant 2 : i32
    %c0_i32_0 = arith.constant 0 : i32
    %c0_i32_1 = arith.constant 0 : i32
    return %arg0, %c0_i32, %c2_i32, %arg1, %c0_i32_0 : i32, i32, i32, i32, i32
  }
  func.func @transform_3(%arg0: i32, %arg1: i32) -> (i32, i32, i32, i32) {
    %c0_i32 = arith.constant 0 : i32
    %c0_i32_0 = arith.constant 0 : i32
    %c0_i32_1 = arith.constant 0 : i32
    return %arg0, %c0_i32, %arg1, %c0_i32_0 : i32, i32, i32, i32
  }
}

module attributes {stable_mosaic.version = 11 : i64} {
  func.func @_matmul_kernel(%arg0: i32, %arg1: i32, %arg2: i32, %arg3: memref<16x32xbf16, #tpu.memory_space<vmem>>, %arg4: memref<32x32xbf16, #tpu.memory_space<vmem>>, %arg5: memref<1x32xf32, #tpu.memory_space<vmem>>, %arg6: memref<16x32xbf16, #tpu.memory_space<vmem>>, %arg7: memref<1x32xf32, #tpu.memory_space<vmem>>, %arg8: memref<1x32xf32, #tpu.memory_space<vmem>>, %arg9: memref<16x32xbf16, #tpu.memory_space<vmem>>, %arg10: memref<16x32xf32, #tpu.memory_space<vmem>>) attributes {dimension_semantics = [#tpu.dimension_semantics<parallel>, #tpu.dimension_semantics<parallel>, #tpu.dimension_semantics<arbitrary>], iteration_bounds = array<i64: 1, 1, 1>, scalar_prefetch = 0 : i64, scratch_operands = 1 : i64, tpu.core_type = #tpu.core_type<tc>, window_params = [{transform_indices = @transform_0, window_bounds = array<i64: 16, 32>}, {transform_indices = @transform_1, window_bounds = array<i64: 32, 32>}, {transform_indices = @transform_2, window_bounds = array<i64: 1, 32>}, {transform_indices = @transform_3, window_bounds = array<i64: 16, 32>}, {transform_indices = @transform_4, window_bounds = array<i64: 1, 32>}, {transform_indices = @transform_5, window_bounds = array<i64: 1, 32>}, {transform_indices = @transform_6, window_bounds = array<i64: 16, 32>}]} {
    %c0_i32 = arith.constant 0 : i32
    %0 = arith.cmpi eq, %arg2, %c0_i32 : i32
    %1 = arith.extui %0 : i1 to i32
    %c0_i32_0 = arith.constant 0 : i32
    %2 = arith.cmpi ne, %1, %c0_i32_0 : i32
    scf.if %2 {
      %cst_10 = arith.constant 0.000000e+00 : f32
      %12 = vector.broadcast %cst_10 : f32 to vector<16x32xf32>
      %c0_11 = arith.constant 0 : index
      %c0_12 = arith.constant 0 : index
      %13 = vector.load %arg10[%c0_11, %c0_12] : memref<16x32xf32, #tpu.memory_space<vmem>>, vector<16x32xf32>
      tpu.vector_store %arg10[%c0_11, %c0_12], %12 {strides = array<i32>} : memref<16x32xf32, #tpu.memory_space<vmem>>, vector<16x32xf32>,
    } else {
    }
    %c0 = arith.constant 0 : index
    %c0_1 = arith.constant 0 : index
    %3 = vector.load %arg10[%c0, %c0_1] : memref<16x32xf32, #tpu.memory_space<vmem>>, vector<16x32xf32>
    %c0_2 = arith.constant 0 : index
    %c0_3 = arith.constant 0 : index
    %4 = vector.load %arg3[%c0_2, %c0_3] : memref<16x32xbf16, #tpu.memory_space<vmem>>, vector<16x32xbf16>
    %c0_4 = arith.constant 0 : index
    %c0_5 = arith.constant 0 : index
    %5 = vector.load %arg4[%c0_4, %c0_5] : memref<32x32xbf16, #tpu.memory_space<vmem>>, vector<32x32xbf16>
    %cst = arith.constant dense<0.000000e+00> : vector<16x32xf32>
    %6 = tpu.matmul %4, %5, %cst {dimension_numbers = #tpu.dot_dimension_numbers<[1], [0], [0], [1], [0, 0, 1, 1], [], []>} : vector<16x32xbf16>, vector<32x32xbf16>, vector<16x32xf32> -> vector<16x32xf32>
    %7 = arith.addf %3, %6 : vector<16x32xf32>
    %c0_6 = arith.constant 0 : index
    %c0_7 = arith.constant 0 : index
    %8 = vector.load %arg10[%c0_6, %c0_7] : memref<16x32xf32, #tpu.memory_space<vmem>>, vector<16x32xf32>
    tpu.vector_store %arg10[%c0_6, %c0_7], %7 {strides = array<i32>} : memref<16x32xf32, #tpu.memory_space<vmem>>, vector<16x32xf32>,
    %c0_i32_8 = arith.constant 0 : i32
    %9 = arith.cmpi eq, %arg2, %c0_i32_8 : i32
    %10 = arith.extui %9 : i1 to i32
    %c0_i32_9 = arith.constant 0 : i32
    %11 = arith.cmpi ne, %10, %c0_i32_9 : i32
    scf.if %11 {
      %c0_10 = arith.constant 0 : index
      %c0_11 = arith.constant 0 : index
      %12 = vector.load %arg10[%c0_10, %c0_11] : memref<16x32xf32, #tpu.memory_space<vmem>>, vector<16x32xf32>
      %c0_12 = arith.constant 0 : index
      %c0_13 = arith.constant 0 : index
      %13 = vector.load %arg5[%c0_12, %c0_13] : memref<1x32xf32, #tpu.memory_space<vmem>>, vector<1x32xf32>
      %14 = vector.broadcast %13 : vector<1x32xf32> to vector<16x32xf32>
      %15 = arith.addf %12, %14 : vector<16x32xf32>
      %c0_14 = arith.constant 0 : index
      %c0_15 = arith.constant 0 : index
      %16 = vector.load %arg6[%c0_14, %c0_15] : memref<16x32xbf16, #tpu.memory_space<vmem>>, vector<16x32xbf16>
      %17 = arith.extf %16 : vector<16x32xbf16> to vector<16x32xf32>
      %18 = arith.addf %15, %17 : vector<16x32xf32>
      %cst_16 = arith.constant dense<0.000000e+00> : vector<16xf32>
      %19 = vector.multi_reduction <add>, %18, %cst_16 [1] : vector<16x32xf32> to vector<16xf32>
      %20 = vector.shape_cast %19 : vector<16xf32> to vector<16x1xf32>
      %cst_17 = arith.constant 3.200000e+01 : f32
      %21 = vector.broadcast %cst_17 : f32 to vector<16x1xf32>
      %22 = arith.divf %20, %21 : vector<16x1xf32>
      %23 = vector.broadcast %22 : vector<16x1xf32> to vector<16x32xf32>
      %24 = arith.subf %18, %23 : vector<16x32xf32>
      %25 = arith.mulf %24, %24 : vector<16x32xf32>
      %cst_18 = arith.constant dense<0.000000e+00> : vector<16xf32>
      %26 = vector.multi_reduction <add>, %25, %cst_18 [1] : vector<16x32xf32> to vector<16xf32>
      %27 = vector.shape_cast %26 : vector<16xf32> to vector<16x1xf32>
      %cst_19 = arith.constant 3.200000e+01 : f32
      %28 = vector.broadcast %cst_19 : f32 to vector<16x1xf32>
      %29 = arith.divf %27, %28 : vector<16x1xf32>
      %30 = vector.broadcast %22 : vector<16x1xf32> to vector<16x32xf32>
      %31 = arith.subf %18, %30 : vector<16x32xf32>
      %cst_20 = arith.constant 9.99999974E-6 : f32
      %32 = vector.broadcast %cst_20 : f32 to vector<16x1xf32>
      %33 = arith.addf %29, %32 : vector<16x1xf32>
      %34 = math.rsqrt %33 : vector<16x1xf32>
      %35 = vector.broadcast %34 : vector<16x1xf32> to vector<16x32xf32>
      %36 = arith.mulf %31, %35 : vector<16x32xf32>
      %c0_21 = arith.constant 0 : index
      %c0_22 = arith.constant 0 : index
      %37 = vector.load %arg7[%c0_21, %c0_22] : memref<1x32xf32, #tpu.memory_space<vmem>>, vector<1x32xf32>
      %38 = vector.broadcast %37 : vector<1x32xf32> to vector<16x32xf32>
      %39 = arith.mulf %36, %38 : vector<16x32xf32>
      %c0_23 = arith.constant 0 : index
      %c0_24 = arith.constant 0 : index
      %40 = vector.load %arg8[%c0_23, %c0_24] : memref<1x32xf32, #tpu.memory_space<vmem>>, vector<1x32xf32>
      %41 = vector.broadcast %40 : vector<1x32xf32> to vector<16x32xf32>
      %42 = arith.addf %39, %41 : vector<16x32xf32>
      %43 = arith.truncf %42 : vector<16x32xf32> to vector<16x32xbf16>
      %c0_25 = arith.constant 0 : index
      %c0_26 = arith.constant 0 : index
      %44 = vector.load %arg9[%c0_25, %c0_26] : memref<16x32xbf16, #tpu.memory_space<vmem>>, vector<16x32xbf16>
      tpu.vector_store %arg9[%c0_25, %c0_26], %43 {strides = array<i32>} : memref<16x32xbf16, #tpu.memory_space<vmem>>, vector<16x32xbf16>,
    } else {
    }
    return
  }
  func.func @transform_0(%arg0: i32, %arg1: i32, %arg2: i32) -> (i32, i32) {
    %c0_i32 = arith.constant 0 : i32
    return %arg0, %arg2 : i32, i32
  }
  func.func @transform_1(%arg0: i32, %arg1: i32, %arg2: i32) -> (i32, i32) {
    %c0_i32 = arith.constant 0 : i32
    return %arg2, %arg1 : i32, i32
  }
  func.func @transform_2(%arg0: i32, %arg1: i32, %arg2: i32) -> (i32, i32) {
    %c0_i32 = arith.constant 0 : i32
    %c0_i32_0 = arith.constant 0 : i32
    return %c0_i32, %arg1 : i32, i32
  }
  func.func @transform_3(%arg0: i32, %arg1: i32, %arg2: i32) -> (i32, i32) {
    %c0_i32 = arith.constant 0 : i32
    return %arg0, %arg1 : i32, i32
  }
  func.func @transform_4(%arg0: i32, %arg1: i32, %arg2: i32) -> (i32, i32) {
    %c0_i32 = arith.constant 0 : i32
    %c0_i32_0 = arith.constant 0 : i32
    return %c0_i32, %arg1 : i32, i32
  }
  func.func @transform_5(%arg0: i32, %arg1: i32, %arg2: i32) -> (i32, i32) {
    %c0_i32 = arith.constant 0 : i32
    %c0_i32_0 = arith.constant 0 : i32
    return %c0_i32, %arg1 : i32, i32
  }
  func.func @transform_6(%arg0: i32, %arg1: i32, %arg2: i32) -> (i32, i32) {
    %c0_i32 = arith.constant 0 : i32
    return %arg0, %arg1 : i32, i32
  }
}

module attributes {stable_mosaic.version = 11 : i64} {
  func.func @_matmul_kernel(%arg0: i32, %arg1: i32, %arg2: i32, %arg3: memref<16x32xbf16, #tpu.memory_space<vmem>>, %arg4: memref<32x32xbf16, #tpu.memory_space<vmem>>, %arg5: memref<1x32xf32, #tpu.memory_space<vmem>>, %arg6: memref<16x32xbf16, #tpu.memory_space<vmem>>, %arg7: memref<16x32xf32, #tpu.memory_space<vmem>>) attributes {dimension_semantics = [#tpu.dimension_semantics<parallel>, #tpu.dimension_semantics<parallel>, #tpu.dimension_semantics<arbitrary>], iteration_bounds = array<i64: 1, 1, 1>, scalar_prefetch = 0 : i64, scratch_operands = 1 : i64, tpu.core_type = #tpu.core_type<tc>, window_params = [{transform_indices = @transform_0, window_bounds = array<i64: 16, 32>}, {transform_indices = @transform_1, window_bounds = array<i64: 32, 32>}, {transform_indices = @transform_2, window_bounds = array<i64: 1, 32>}, {transform_indices = @transform_3, window_bounds = array<i64: 16, 32>}]} {
    %c0_i32 = arith.constant 0 : i32
    %0 = arith.cmpi eq, %arg2, %c0_i32 : i32
    %1 = arith.extui %0 : i1 to i32
    %c0_i32_0 = arith.constant 0 : i32
    %2 = arith.cmpi ne, %1, %c0_i32_0 : i32
    scf.if %2 {
      %cst_10 = arith.constant 0.000000e+00 : f32
      %12 = vector.broadcast %cst_10 : f32 to vector<16x32xf32>
      %c0_11 = arith.constant 0 : index
      %c0_12 = arith.constant 0 : index
      %13 = vector.load %arg7[%c0_11, %c0_12] : memref<16x32xf32, #tpu.memory_space<vmem>>, vector<16x32xf32>
      tpu.vector_store %arg7[%c0_11, %c0_12], %12 {strides = array<i32>} : memref<16x32xf32, #tpu.memory_space<vmem>>, vector<16x32xf32>,
    } else {
    }
    %c0 = arith.constant 0 : index
    %c0_1 = arith.constant 0 : index
    %3 = vector.load %arg7[%c0, %c0_1] : memref<16x32xf32, #tpu.memory_space<vmem>>, vector<16x32xf32>
    %c0_2 = arith.constant 0 : index
    %c0_3 = arith.constant 0 : index
    %4 = vector.load %arg3[%c0_2, %c0_3] : memref<16x32xbf16, #tpu.memory_space<vmem>>, vector<16x32xbf16>
    %c0_4 = arith.constant 0 : index
    %c0_5 = arith.constant 0 : index
    %5 = vector.load %arg4[%c0_4, %c0_5] : memref<32x32xbf16, #tpu.memory_space<vmem>>, vector<32x32xbf16>
    %cst = arith.constant dense<0.000000e+00> : vector<16x32xf32>
    %6 = tpu.matmul %4, %5, %cst {dimension_numbers = #tpu.dot_dimension_numbers<[1], [0], [0], [1], [0, 0, 1, 1], [], []>} : vector<16x32xbf16>, vector<32x32xbf16>, vector<16x32xf32> -> vector<16x32xf32>
    %7 = arith.addf %3, %6 : vector<16x32xf32>
    %c0_6 = arith.constant 0 : index
    %c0_7 = arith.constant 0 : index
    %8 = vector.load %arg7[%c0_6, %c0_7] : memref<16x32xf32, #tpu.memory_space<vmem>>, vector<16x32xf32>
    tpu.vector_store %arg7[%c0_6, %c0_7], %7 {strides = array<i32>} : memref<16x32xf32, #tpu.memory_space<vmem>>, vector<16x32xf32>,
    %c0_i32_8 = arith.constant 0 : i32
    %9 = arith.cmpi eq, %arg2, %c0_i32_8 : i32
    %10 = arith.extui %9 : i1 to i32
    %c0_i32_9 = arith.constant 0 : i32
    %11 = arith.cmpi ne, %10, %c0_i32_9 : i32
    scf.if %11 {
      %c0_10 = arith.constant 0 : index
      %c0_11 = arith.constant 0 : index
      %12 = vector.load %arg7[%c0_10, %c0_11] : memref<16x32xf32, #tpu.memory_space<vmem>>, vector<16x32xf32>
      %c0_12 = arith.constant 0 : index
      %c0_13 = arith.constant 0 : index
      %13 = vector.load %arg5[%c0_12, %c0_13] : memref<1x32xf32, #tpu.memory_space<vmem>>, vector<1x32xf32>
      %14 = vector.broadcast %13 : vector<1x32xf32> to vector<16x32xf32>
      %15 = arith.addf %12, %14 : vector<16x32xf32>
      %16 = arith.truncf %15 : vector<16x32xf32> to vector<16x32xbf16>
      %c0_14 = arith.constant 0 : index
      %c0_15 = arith.constant 0 : index
      %17 = vector.load %arg6[%c0_14, %c0_15] : memref<16x32xbf16, #tpu.memory_space<vmem>>, vector<16x32xbf16>
      tpu.vector_store %arg6[%c0_14, %c0_15], %16 {strides = array<i32>} : memref<16x32xbf16, #tpu.memory_space<vmem>>, vector<16x32xbf16>,
    } else {
    }
    return
  }
  func.func @transform_0(%arg0: i32, %arg1: i32, %arg2: i32) -> (i32, i32) {
    %c0_i32 = arith.constant 0 : i32
    return %arg0, %arg2 : i32, i32
  }
  func.func @transform_1(%arg0: i32, %arg1: i32, %arg2: i32) -> (i32, i32) {
    %c0_i32 = arith.constant 0 : i32
    return %arg2, %arg1 : i32, i32
  }
  func.func @transform_2(%arg0: i32, %arg1: i32, %arg2: i32) -> (i32, i32) {
    %c0_i32 = arith.constant 0 : i32
    %c0_i32_0 = arith.constant 0 : i32
    return %c0_i32, %arg1 : i32, i32
  }
  func.func @transform_3(%arg0: i32, %arg1: i32, %arg2: i32) -> (i32, i32) {
    %c0_i32 = arith.constant 0 : i32
    return %arg0, %arg1 : i32, i32
  }
}

module attributes {stable_mosaic.version = 11 : i64} {
  func.func @_matmul_kernel(%arg0: i32, %arg1: i32, %arg2: i32, %arg3: memref<16x32xbf16, #tpu.memory_space<vmem>>, %arg4: memref<32x64xbf16, #tpu.memory_space<vmem>>, %arg5: memref<1x64xf32, #tpu.memory_space<vmem>>, %arg6: memref<16x64xbf16, #tpu.memory_space<vmem>>, %arg7: memref<16x64xf32, #tpu.memory_space<vmem>>) attributes {dimension_semantics = [#tpu.dimension_semantics<parallel>, #tpu.dimension_semantics<parallel>, #tpu.dimension_semantics<arbitrary>], iteration_bounds = array<i64: 1, 1, 1>, scalar_prefetch = 0 : i64, scratch_operands = 1 : i64, tpu.core_type = #tpu.core_type<tc>, window_params = [{transform_indices = @transform_0, window_bounds = array<i64: 16, 32>}, {transform_indices = @transform_1, window_bounds = array<i64: 32, 64>}, {transform_indices = @transform_2, window_bounds = array<i64: 1, 64>}, {transform_indices = @transform_3, window_bounds = array<i64: 16, 64>}]} {
    %c0_i32 = arith.constant 0 : i32
    %0 = arith.cmpi eq, %arg2, %c0_i32 : i32
    %1 = arith.extui %0 : i1 to i32
    %c0_i32_0 = arith.constant 0 : i32
    %2 = arith.cmpi ne, %1, %c0_i32_0 : i32
    scf.if %2 {
      %cst_10 = arith.constant 0.000000e+00 : f32
      %12 = vector.broadcast %cst_10 : f32 to vector<16x64xf32>
      %c0_11 = arith.constant 0 : index
      %c0_12 = arith.constant 0 : index
      %13 = vector.load %arg7[%c0_11, %c0_12] : memref<16x64xf32, #tpu.memory_space<vmem>>, vector<16x64xf32>
      tpu.vector_store %arg7[%c0_11, %c0_12], %12 {strides = array<i32>} : memref<16x64xf32, #tpu.memory_space<vmem>>, vector<16x64xf32>,
    } else {
    }
    %c0 = arith.constant 0 : index
    %c0_1 = arith.constant 0 : index
    %3 = vector.load %arg7[%c0, %c0_1] : memref<16x64xf32, #tpu.memory_space<vmem>>, vector<16x64xf32>
    %c0_2 = arith.constant 0 : index
    %c0_3 = arith.constant 0 : index
    %4 = vector.load %arg3[%c0_2, %c0_3] : memref<16x32xbf16, #tpu.memory_space<vmem>>, vector<16x32xbf16>
    %c0_4 = arith.constant 0 : index
    %c0_5 = arith.constant 0 : index
    %5 = vector.load %arg4[%c0_4, %c0_5] : memref<32x64xbf16, #tpu.memory_space<vmem>>, vector<32x64xbf16>
    %cst = arith.constant dense<0.000000e+00> : vector<16x64xf32>
    %6 = tpu.matmul %4, %5, %cst {dimension_numbers = #tpu.dot_dimension_numbers<[1], [0], [0], [1], [0, 0, 1, 1], [], []>} : vector<16x32xbf16>, vector<32x64xbf16>, vector<16x64xf32> -> vector<16x64xf32>
    %7 = arith.addf %3, %6 : vector<16x64xf32>
    %c0_6 = arith.constant 0 : index
    %c0_7 = arith.constant 0 : index
    %8 = vector.load %arg7[%c0_6, %c0_7] : memref<16x64xf32, #tpu.memory_space<vmem>>, vector<16x64xf32>
    tpu.vector_store %arg7[%c0_6, %c0_7], %7 {strides = array<i32>} : memref<16x64xf32, #tpu.memory_space<vmem>>, vector<16x64xf32>,
    %c0_i32_8 = arith.constant 0 : i32
    %9 = arith.cmpi eq, %arg2, %c0_i32_8 : i32
    %10 = arith.extui %9 : i1 to i32
    %c0_i32_9 = arith.constant 0 : i32
    %11 = arith.cmpi ne, %10, %c0_i32_9 : i32
    scf.if %11 {
      %c0_10 = arith.constant 0 : index
      %c0_11 = arith.constant 0 : index
      %12 = vector.load %arg7[%c0_10, %c0_11] : memref<16x64xf32, #tpu.memory_space<vmem>>, vector<16x64xf32>
      %c0_12 = arith.constant 0 : index
      %c0_13 = arith.constant 0 : index
      %13 = vector.load %arg5[%c0_12, %c0_13] : memref<1x64xf32, #tpu.memory_space<vmem>>, vector<1x64xf32>
      %14 = vector.broadcast %13 : vector<1x64xf32> to vector<16x64xf32>
      %15 = arith.addf %12, %14 : vector<16x64xf32>
      %16 = arith.truncf %15 : vector<16x64xf32> to vector<16x64xbf16>
      %c0_14 = arith.constant 0 : index
      %c0_15 = arith.constant 0 : index
      %17 = vector.load %arg6[%c0_14, %c0_15] : memref<16x64xbf16, #tpu.memory_space<vmem>>, vector<16x64xbf16>
      tpu.vector_store %arg6[%c0_14, %c0_15], %16 {strides = array<i32>} : memref<16x64xbf16, #tpu.memory_space<vmem>>, vector<16x64xbf16>,
    } else {
    }
    return
  }
  func.func @transform_0(%arg0: i32, %arg1: i32, %arg2: i32) -> (i32, i32) {
    %c0_i32 = arith.constant 0 : i32
    return %arg0, %arg2 : i32, i32
  }
  func.func @transform_1(%arg0: i32, %arg1: i32, %arg2: i32) -> (i32, i32) {
    %c0_i32 = arith.constant 0 : i32
    return %arg2, %arg1 : i32, i32
  }
  func.func @transform_2(%arg0: i32, %arg1: i32, %arg2: i32) -> (i32, i32) {
    %c0_i32 = arith.constant 0 : i32
    %c0_i32_0 = arith.constant 0 : i32
    return %c0_i32, %arg1 : i32, i32
  }
  func.func @transform_3(%arg0: i32, %arg1: i32, %arg2: i32) -> (i32, i32) {
    %c0_i32 = arith.constant 0 : i32
    return %arg0, %arg1 : i32, i32
  }
}

module attributes {stable_mosaic.version = 11 : i64} {
  func.func @_attention_kernel(%arg0: i32, %arg1: i32, %arg2: memref<1x8x4x8xbf16, #tpu.memory_space<vmem>>, %arg3: memref<1x8x1x4x8xbf16, #tpu.memory_space<vmem>>, %arg4: memref<1x8x1x4x8xbf16, #tpu.memory_space<vmem>>, %arg5: memref<1x8x4x8xbf16, #tpu.memory_space<vmem>>) attributes {dimension_semantics = [#tpu.dimension_semantics<parallel>, #tpu.dimension_semantics<parallel>], iteration_bounds = array<i64: 2, 1>, scalar_prefetch = 0 : i64, scratch_operands = 0 : i64, tpu.core_type = #tpu.core_type<tc>, window_params = [{transform_indices = @transform_0, window_bounds = array<i64: 1, 8, 4, 8>}, {transform_indices = @transform_1, window_bounds = array<i64: 1, 8, 1, 4, 8>}, {transform_indices = @transform_2, window_bounds = array<i64: 1, 8, 1, 4, 8>}, {transform_indices = @transform_3, window_bounds = array<i64: 1, 8, 4, 8>}]} {
    %c0 = arith.constant 0 : index
    %c0_0 = arith.constant 0 : index
    %c0_1 = arith.constant 0 : index
    %c0_2 = arith.constant 0 : index
    %0 = vector.load %arg2[%c0, %c0_0, %c0_1, %c0_2] : memref<1x8x4x8xbf16, #tpu.memory_space<vmem>>, vector<1x8x1x8xbf16>
    %1 = vector.shape_cast %0 : vector<1x8x1x8xbf16> to vector<8x8xbf16>
    %c0_3 = arith.constant 0 : index
    %c0_4 = arith.constant 0 : index
    %c0_5 = arith.constant 0 : index
    %c0_6 = arith.constant 0 : index
    %c0_7 = arith.constant 0 : index
    %2 = vector.load %arg3[%c0_3, %c0_4, %c0_5, %c0_6, %c0_7] : memref<1x8x1x4x8xbf16, #tpu.memory_space<vmem>>, vector<1x8x1x1x8xbf16>
    %3 = vector.shape_cast %2 : vector<1x8x1x1x8xbf16> to vector<8x8xbf16>
    %c0_8 = arith.constant 0 : index
    %c0_9 = arith.constant 0 : index
    %c0_10 = arith.constant 0 : index
    %c0_11 = arith.constant 0 : index
    %c0_12 = arith.constant 0 : index
    %4 = vector.load %arg4[%c0_8, %c0_9, %c0_10, %c0_11, %c0_12] : memref<1x8x1x4x8xbf16, #tpu.memory_space<vmem>>, vector<1x8x1x1x8xbf16>
    %5 = vector.shape_cast %4 : vector<1x8x1x1x8xbf16> to vector<8x8xbf16>
    %cst = arith.constant dense<0.000000e+00> : vector<8x8xf32>
    %6 = tpu.matmul %1, %3, %cst {dimension_numbers = #tpu.dot_dimension_numbers<[1], [1], [0], [0], [0, 0, 1, 0], [], []>} : vector<8x8xbf16>, vector<8x8xbf16>, vector<8x8xf32> -> vector<8x8xf32>
    %cst_13 = arith.constant dense<0xFF800000> : vector<8xf32>
    %7 = vector.multi_reduction <maximumf>, %6, %cst_13 [1] : vector<8x8xf32> to vector<8xf32>
    %8 = vector.shape_cast %7 : vector<8xf32> to vector<8x1xf32>
    %9 = vector.broadcast %8 : vector<8x1xf32> to vector<8x8xf32>
    %10 = arith.subf %6, %9 : vector<8x8xf32>
    %11 = math.exp %10 : vector<8x8xf32>
    %cst_14 = arith.constant dense<0.000000e+00> : vector<8xf32>
    %12 = vector.multi_reduction <add>, %11, %cst_14 [1] : vector<8x8xf32> to vector<8xf32>
    %13 = vector.shape_cast %12 : vector<8xf32> to vector<8x1xf32>
    %14 = arith.truncf %11 : vector<8x8xf32> to vector<8x8xbf16>
    %cst_15 = arith.constant dense<0.000000e+00> : vector<8x8xf32>
    %15 = tpu.matmul %14, %5, %cst_15 {dimension_numbers = #tpu.dot_dimension_numbers<[1], [0], [0], [1], [0, 0, 1, 1], [], []>} : vector<8x8xbf16>, vector<8x8xbf16>, vector<8x8xf32> -> vector<8x8xf32>
    %16 = tpu.reciprocal %13 {approx = true} : vector<8x1xf32> -> vector<8x1xf32>
    %17 = vector.broadcast %16 : vector<8x1xf32> to vector<8x8xf32>
    %18 = arith.mulf %15, %17 : vector<8x8xf32>
    %19 = arith.truncf %18 : vector<8x8xf32> to vector<8x8xbf16>
    %c0_16 = arith.constant 0 : index
    %c0_17 = arith.constant 0 : index
    %c0_18 = arith.constant 0 : index
    %c0_19 = arith.constant 0 : index
    %20 = vector.load %arg5[%c0_16, %c0_17, %c0_18, %c0_19] : memref<1x8x4x8xbf16, #tpu.memory_space<vmem>>, vector<1x8x1x8xbf16>
    %21 = vector.shape_cast %20 : vector<1x8x1x8xbf16> to vector<8x8xbf16>
    %22 = vector.shape_cast %19 : vector<8x8xbf16> to vector<1x8x1x8xbf16>
    tpu.vector_store %arg5[%c0_16, %c0_17, %c0_18, %c0_19], %22 {strides = array<i32>} : memref<1x8x4x8xbf16, #tpu.memory_space<vmem>>, vector<1x8x1x8xbf16>,
    %c0_20 = arith.constant 0 : index
    %c0_21 = arith.constant 0 : index
    %c1 = arith.constant 1 : index
    %c0_22 = arith.constant 0 : index
    %23 = vector.load %arg2[%c0_20, %c0_21, %c1, %c0_22] : memref<1x8x4x8xbf16, #tpu.memory_space<vmem>>, vector<1x8x1x8xbf16>
    %24 = vector.shape_cast %23 : vector<1x8x1x8xbf16> to vector<8x8xbf16>
    %c0_23 = arith.constant 0 : index
    %c0_24 = arith.constant 0 : index
    %c0_25 = arith.constant 0 : index
    %c1_26 = arith.constant 1 : index
    %c0_27 = arith.constant 0 : index
    %25 = vector.load %arg3[%c0_23, %c0_24, %c0_25, %c1_26, %c0_27] : memref<1x8x1x4x8xbf16, #tpu.memory_space<vmem>>, vector<1x8x1x1x8xbf16>
    %26 = vector.shape_cast %25 : vector<1x8x1x1x8xbf16> to vector<8x8xbf16>
    %c0_28 = arith.constant 0 : index
    %c0_29 = arith.constant 0 : index
    %c0_30 = arith.constant 0 : index
    %c1_31 = arith.constant 1 : index
    %c0_32 = arith.constant 0 : index
    %27 = vector.load %arg4[%c0_28, %c0_29, %c0_30, %c1_31, %c0_32] : memref<1x8x1x4x8xbf16, #tpu.memory_space<vmem>>, vector<1x8x1x1x8xbf16>
    %28 = vector.shape_cast %27 : vector<1x8x1x1x8xbf16> to vector<8x8xbf16>
    %cst_33 = arith.constant dense<0.000000e+00> : vector<8x8xf32>
    %29 = tpu.matmul %24, %26, %cst_33 {dimension_numbers = #tpu.dot_dimension_numbers<[1], [1], [0], [0], [0, 0, 1, 0], [], []>} : vector<8x8xbf16>, vector<8x8xbf16>, vector<8x8xf32> -> vector<8x8xf32>
    %cst_34 = arith.constant dense<0xFF800000> : vector<8xf32>
    %30 = vector.multi_reduction <maximumf>, %29, %cst_34 [1] : vector<8x8xf32> to vector<8xf32>
    %31 = vector.shape_cast %30 : vector<8xf32> to vector<8x1xf32>
    %32 = vector.broadcast %31 : vector<8x1xf32> to vector<8x8xf32>
    %33 = arith.subf %29, %32 : vector<8x8xf32>
    %34 = math.exp %33 : vector<8x8xf32>
    %cst_35 = arith.constant dense<0.000000e+00> : vector<8xf32>
    %35 = vector.multi_reduction <add>, %34, %cst_35 [1] : vector<8x8xf32> to vector<8xf32>
    %36 = vector.shape_cast %35 : vector<8xf32> to vector<8x1xf32>
    %37 = arith.truncf %34 : vector<8x8xf32> to vector<8x8xbf16>
    %cst_36 = arith.constant dense<0.000000e+00> : vector<8x8xf32>
    %38 = tpu.matmul %37, %28, %cst_36 {dimension_numbers = #tpu.dot_dimension_numbers<[1], [0], [0], [1], [0, 0, 1, 1], [], []>} : vector<8x8xbf16>, vector<8x8xbf16>, vector<8x8xf32> -> vector<8x8xf32>
    %39 = tpu.reciprocal %36 {approx = true} : vector<8x1xf32> -> vector<8x1xf32>
    %40 = vector.broadcast %39 : vector<8x1xf32> to vector<8x8xf32>
    %41 = arith.mulf %38, %40 : vector<8x8xf32>
    %42 = arith.truncf %41 : vector<8x8xf32> to vector<8x8xbf16>
    %c0_37 = arith.constant 0 : index
    %c0_38 = arith.constant 0 : index
    %c1_39 = arith.constant 1 : index
    %c0_40 = arith.constant 0 : index
    %43 = vector.load %arg5[%c0_37, %c0_38, %c1_39, %c0_40] : memref<1x8x4x8xbf16, #tpu.memory_space<vmem>>, vector<1x8x1x8xbf16>
    %44 = vector.shape_cast %43 : vector<1x8x1x8xbf16> to vector<8x8xbf16>
    %45 = vector.shape_cast %42 : vector<8x8xbf16> to vector<1x8x1x8xbf16>
    tpu.vector_store %arg5[%c0_37, %c0_38, %c1_39, %c0_40], %45 {strides = array<i32>} : memref<1x8x4x8xbf16, #tpu.memory_space<vmem>>, vector<1x8x1x8xbf16>,
    %c0_41 = arith.constant 0 : index
    %c0_42 = arith.constant 0 : index
    %c2 = arith.constant 2 : index
    %c0_43 = arith.constant 0 : index
    %46 = vector.load %arg2[%c0_41, %c0_42, %c2, %c0_43] : memref<1x8x4x8xbf16, #tpu.memory_space<vmem>>, vector<1x8x1x8xbf16>
    %47 = vector.shape_cast %46 : vector<1x8x1x8xbf16> to vector<8x8xbf16>
    %c0_44 = arith.constant 0 : index
    %c0_45 = arith.constant 0 : index
    %c0_46 = arith.constant 0 : index
    %c2_47 = arith.constant 2 : index
    %c0_48 = arith.constant 0 : index
    %48 = vector.load %arg3[%c0_44, %c0_45, %c0_46, %c2_47, %c0_48] : memref<1x8x1x4x8xbf16, #tpu.memory_space<vmem>>, vector<1x8x1x1x8xbf16>
    %49 = vector.shape_cast %48 : vector<1x8x1x1x8xbf16> to vector<8x8xbf16>
    %c0_49 = arith.constant 0 : index
    %c0_50 = arith.constant 0 : index
    %c0_51 = arith.constant 0 : index
    %c2_52 = arith.constant 2 : index
    %c0_53 = arith.constant 0 : index
    %50 = vector.load %arg4[%c0_49, %c0_50, %c0_51, %c2_52, %c0_53] : memref<1x8x1x4x8xbf16, #tpu.memory_space<vmem>>, vector<1x8x1x1x8xbf16>
    %51 = vector.shape_cast %50 : vector<1x8x1x1x8xbf16> to vector<8x8xbf16>
    %cst_54 = arith.constant dense<0.000000e+00> : vector<8x8xf32>
    %52 = tpu.matmul %47, %49, %cst_54 {dimension_numbers = #tpu.dot_dimension_numbers<[1], [1], [0], [0], [0, 0, 1, 0], [], []>} : vector<8x8xbf16>, vector<8x8xbf16>, vector<8x8xf32> -> vector<8x8xf32>
    %cst_55 = arith.constant dense<0xFF800000> : vector<8xf32>
    %53 = vector.multi_reduction <maximumf>, %52, %cst_55 [1] : vector<8x8xf32> to vector<8xf32>
    %54 = vector.shape_cast %53 : vector<8xf32> to vector<8x1xf32>
    %55 = vector.broadcast %54 : vector<8x1xf32> to vector<8x8xf32>
    %56 = arith.subf %52, %55 : vector<8x8xf32>
    %57 = math.exp %56 : vector<8x8xf32>
    %cst_56 = arith.constant dense<0.000000e+00> : vector<8xf32>
    %58 = vector.multi_reduction <add>, %57, %cst_56 [1] : vector<8x8xf32> to vector<8xf32>
    %59 = vector.shape_cast %58 : vector<8xf32> to vector<8x1xf32>
    %60 = arith.truncf %57 : vector<8x8xf32> to vector<8x8xbf16>
    %cst_57 = arith.constant dense<0.000000e+00> : vector<8x8xf32>
    %61 = tpu.matmul %60, %51, %cst_57 {dimension_numbers = #tpu.dot_dimension_numbers<[1], [0], [0], [1], [0, 0, 1, 1], [], []>} : vector<8x8xbf16>, vector<8x8xbf16>, vector<8x8xf32> -> vector<8x8xf32>
    %62 = tpu.reciprocal %59 {approx = true} : vector<8x1xf32> -> vector<8x1xf32>
    %63 = vector.broadcast %62 : vector<8x1xf32> to vector<8x8xf32>
    %64 = arith.mulf %61, %63 : vector<8x8xf32>
    %65 = arith.truncf %64 : vector<8x8xf32> to vector<8x8xbf16>
    %c0_58 = arith.constant 0 : index
    %c0_59 = arith.constant 0 : index
    %c2_60 = arith.constant 2 : index
    %c0_61 = arith.constant 0 : index
    %66 = vector.load %arg5[%c0_58, %c0_59, %c2_60, %c0_61] : memref<1x8x4x8xbf16, #tpu.memory_space<vmem>>, vector<1x8x1x8xbf16>
    %67 = vector.shape_cast %66 : vector<1x8x1x8xbf16> to vector<8x8xbf16>
    %68 = vector.shape_cast %65 : vector<8x8xbf16> to vector<1x8x1x8xbf16>
    tpu.vector_store %arg5[%c0_58, %c0_59, %c2_60, %c0_61], %68 {strides = array<i32>} : memref<1x8x4x8xbf16, #tpu.memory_space<vmem>>, vector<1x8x1x8xbf16>,
    %c0_62 = arith.constant 0 : index
    %c0_63 = arith.constant 0 : index
    %c3 = arith.constant 3 : index
    %c0_64 = arith.constant 0 : index
    %69 = vector.load %arg2[%c0_62, %c0_63, %c3, %c0_64] : memref<1x8x4x8xbf16, #tpu.memory_space<vmem>>, vector<1x8x1x8xbf16>
    %70 = vector.shape_cast %69 : vector<1x8x1x8xbf16> to vector<8x8xbf16>
    %c0_65 = arith.constant 0 : index
    %c0_66 = arith.constant 0 : index
    %c0_67 = arith.constant 0 : index
    %c3_68 = arith.constant 3 : index
    %c0_69 = arith.constant 0 : index
    %71 = vector.load %arg3[%c0_65, %c0_66, %c0_67, %c3_68, %c0_69] : memref<1x8x1x4x8xbf16, #tpu.memory_space<vmem>>, vector<1x8x1x1x8xbf16>
    %72 = vector.shape_cast %71 : vector<1x8x1x1x8xbf16> to vector<8x8xbf16>
    %c0_70 = arith.constant 0 : index
    %c0_71 = arith.constant 0 : index
    %c0_72 = arith.constant 0 : index
    %c3_73 = arith.constant 3 : index
    %c0_74 = arith.constant 0 : index
    %73 = vector.load %arg4[%c0_70, %c0_71, %c0_72, %c3_73, %c0_74] : memref<1x8x1x4x8xbf16, #tpu.memory_space<vmem>>, vector<1x8x1x1x8xbf16>
    %74 = vector.shape_cast %73 : vector<1x8x1x1x8xbf16> to vector<8x8xbf16>
    %cst_75 = arith.constant dense<0.000000e+00> : vector<8x8xf32>
    %75 = tpu.matmul %70, %72, %cst_75 {dimension_numbers = #tpu.dot_dimension_numbers<[1], [1], [0], [0], [0, 0, 1, 0], [], []>} : vector<8x8xbf16>, vector<8x8xbf16>, vector<8x8xf32> -> vector<8x8xf32>
    %cst_76 = arith.constant dense<0xFF800000> : vector<8xf32>
    %76 = vector.multi_reduction <maximumf>, %75, %cst_76 [1] : vector<8x8xf32> to vector<8xf32>
    %77 = vector.shape_cast %76 : vector<8xf32> to vector<8x1xf32>
    %78 = vector.broadcast %77 : vector<8x1xf32> to vector<8x8xf32>
    %79 = arith.subf %75, %78 : vector<8x8xf32>
    %80 = math.exp %79 : vector<8x8xf32>
    %cst_77 = arith.constant dense<0.000000e+00> : vector<8xf32>
    %81 = vector.multi_reduction <add>, %80, %cst_77 [1] : vector<8x8xf32> to vector<8xf32>
    %82 = vector.shape_cast %81 : vector<8xf32> to vector<8x1xf32>
    %83 = arith.truncf %80 : vector<8x8xf32> to vector<8x8xbf16>
    %cst_78 = arith.constant dense<0.000000e+00> : vector<8x8xf32>
    %84 = tpu.matmul %83, %74, %cst_78 {dimension_numbers = #tpu.dot_dimension_numbers<[1], [0], [0], [1], [0, 0, 1, 1], [], []>} : vector<8x8xbf16>, vector<8x8xbf16>, vector<8x8xf32> -> vector<8x8xf32>
    %85 = tpu.reciprocal %82 {approx = true} : vector<8x1xf32> -> vector<8x1xf32>
    %86 = vector.broadcast %85 : vector<8x1xf32> to vector<8x8xf32>
    %87 = arith.mulf %84, %86 : vector<8x8xf32>
    %88 = arith.truncf %87 : vector<8x8xf32> to vector<8x8xbf16>
    %c0_79 = arith.constant 0 : index
    %c0_80 = arith.constant 0 : index
    %c3_81 = arith.constant 3 : index
    %c0_82 = arith.constant 0 : index
    %89 = vector.load %arg5[%c0_79, %c0_80, %c3_81, %c0_82] : memref<1x8x4x8xbf16, #tpu.memory_space<vmem>>, vector<1x8x1x8xbf16>
    %90 = vector.shape_cast %89 : vector<1x8x1x8xbf16> to vector<8x8xbf16>
    %91 = vector.shape_cast %88 : vector<8x8xbf16> to vector<1x8x1x8xbf16>
    tpu.vector_store %arg5[%c0_79, %c0_80, %c3_81, %c0_82], %91 {strides = array<i32>} : memref<1x8x4x8xbf16, #tpu.memory_space<vmem>>, vector<1x8x1x8xbf16>,
    return
  }
  func.func @transform_0(%arg0: i32, %arg1: i32) -> (i32, i32, i32, i32) {
    %c0_i32 = arith.constant 0 : i32
    %c0_i32_0 = arith.constant 0 : i32
    %c0_i32_1 = arith.constant 0 : i32
    return %arg0, %c0_i32, %arg1, %c0_i32_0 : i32, i32, i32, i32
  }
  func.func @transform_1(%arg0: i32, %arg1: i32) -> (i32, i32, i32, i32, i32) {
    %c0_i32 = arith.constant 0 : i32
    %c0_i32_0 = arith.constant 0 : i32
    %c0_i32_1 = arith.constant 0 : i32
    %c0_i32_2 = arith.constant 0 : i32
    return %arg0, %c0_i32, %c0_i32_0, %arg1, %c0_i32_1 : i32, i32, i32, i32, i32
  }
  func.func @transform_2(%arg0: i32, %arg1: i32) -> (i32, i32, i32, i32, i32) {
    %c0_i32 = arith.constant 0 : i32
    %c1_i32 = arith.constant 1 : i32
    %c0_i32_0 = arith.constant 0 : i32
    %c0_i32_1 = arith.constant 0 : i32
    return %arg0, %c0_i32, %c1_i32, %arg1, %c0_i32_0 : i32, i32, i32, i32, i32
  }
  func.func @transform_3(%arg0: i32, %arg1: i32) -> (i32, i32, i32, i32) {
    %c0_i32 = arith.constant 0 : i32
    %c0_i32_0 = arith.constant 0 : i32
    %c0_i32_1 = arith.constant 0 : i32
    return %arg0, %c0_i32, %arg1, %c0_i32_0 : i32, i32, i32, i32
  }
}

module attributes {stable_mosaic.version = 11 : i64} {
  func.func @_matmul_kernel(%arg0: i32, %arg1: i32, %arg2: i32, %arg3: memref<16x32xbf16, #tpu.memory_space<vmem>>, %arg4: memref<32x64xbf16, #tpu.memory_space<vmem>>, %arg5: memref<1x64xf32, #tpu.memory_space<vmem>>, %arg6: memref<16x64xbf16, #tpu.memory_space<vmem>>, %arg7: memref<16x64xf32, #tpu.memory_space<vmem>>) attributes {dimension_semantics = [#tpu.dimension_semantics<parallel>, #tpu.dimension_semantics<parallel>, #tpu.dimension_semantics<arbitrary>], iteration_bounds = array<i64: 1, 1, 1>, scalar_prefetch = 0 : i64, scratch_operands = 1 : i64, tpu.core_type = #tpu.core_type<tc>, window_params = [{transform_indices = @transform_0, window_bounds = array<i64: 16, 32>}, {transform_indices = @transform_1, window_bounds = array<i64: 32, 64>}, {transform_indices = @transform_2, window_bounds = array<i64: 1, 64>}, {transform_indices = @transform_3, window_bounds = array<i64: 16, 64>}]} {
    %c0_i32 = arith.constant 0 : i32
    %0 = arith.cmpi eq, %arg2, %c0_i32 : i32
    %1 = arith.extui %0 : i1 to i32
    %c0_i32_0 = arith.constant 0 : i32
    %2 = arith.cmpi ne, %1, %c0_i32_0 : i32
    scf.if %2 {
      %cst_10 = arith.constant 0.000000e+00 : f32
      %12 = vector.broadcast %cst_10 : f32 to vector<16x64xf32>
      %c0_11 = arith.constant 0 : index
      %c0_12 = arith.constant 0 : index
      %13 = vector.load %arg7[%c0_11, %c0_12] : memref<16x64xf32, #tpu.memory_space<vmem>>, vector<16x64xf32>
      tpu.vector_store %arg7[%c0_11, %c0_12], %12 {strides = array<i32>} : memref<16x64xf32, #tpu.memory_space<vmem>>, vector<16x64xf32>,
    } else {
    }
    %c0 = arith.constant 0 : index
    %c0_1 = arith.constant 0 : index
    %3 = vector.load %arg7[%c0, %c0_1] : memref<16x64xf32, #tpu.memory_space<vmem>>, vector<16x64xf32>
    %c0_2 = arith.constant 0 : index
    %c0_3 = arith.constant 0 : index
    %4 = vector.load %arg3[%c0_2, %c0_3] : memref<16x32xbf16, #tpu.memory_space<vmem>>, vector<16x32xbf16>
    %c0_4 = arith.constant 0 : index
    %c0_5 = arith.constant 0 : index
    %5 = vector.load %arg4[%c0_4, %c0_5] : memref<32x64xbf16, #tpu.memory_space<vmem>>, vector<32x64xbf16>
    %cst = arith.constant dense<0.000000e+00> : vector<16x64xf32>
    %6 = tpu.matmul %4, %5, %cst {dimension_numbers = #tpu.dot_dimension_numbers<[1], [0], [0], [1], [0, 0, 1, 1], [], []>} : vector<16x32xbf16>, vector<32x64xbf16>, vector<16x64xf32> -> vector<16x64xf32>
    %7 = arith.addf %3, %6 : vector<16x64xf32>
    %c0_6 = arith.constant 0 : index
    %c0_7 = arith.constant 0 : index
    %8 = vector.load %arg7[%c0_6, %c0_7] : memref<16x64xf32, #tpu.memory_space<vmem>>, vector<16x64xf32>
    tpu.vector_store %arg7[%c0_6, %c0_7], %7 {strides = array<i32>} : memref<16x64xf32, #tpu.memory_space<vmem>>, vector<16x64xf32>,
    %c0_i32_8 = arith.constant 0 : i32
    %9 = arith.cmpi eq, %arg2, %c0_i32_8 : i32
    %10 = arith.extui %9 : i1 to i32
    %c0_i32_9 = arith.constant 0 : i32
    %11 = arith.cmpi ne, %10, %c0_i32_9 : i32
    scf.if %11 {
      %c0_10 = arith.constant 0 : index
      %c0_11 = arith.constant 0 : index
      %12 = vector.load %arg7[%c0_10, %c0_11] : memref<16x64xf32, #tpu.memory_space<vmem>>, vector<16x64xf32>
      %c0_12 = arith.constant 0 : index
      %c0_13 = arith.constant 0 : index
      %13 = vector.load %arg5[%c0_12, %c0_13] : memref<1x64xf32, #tpu.memory_space<vmem>>, vector<1x64xf32>
      %14 = vector.broadcast %13 : vector<1x64xf32> to vector<16x64xf32>
      %15 = arith.addf %12, %14 : vector<16x64xf32>
      %cst_14 = arith.constant 0.000000e+00 : f32
      %16 = vector.broadcast %cst_14 : f32 to vector<16x64xf32>
      %17 = arith.maximumf %15, %16 : vector<16x64xf32>
      %18 = arith.truncf %17 : vector<16x64xf32> to vector<16x64xbf16>
      %c0_15 = arith.constant 0 : index
      %c0_16 = arith.constant 0 : index
      %19 = vector.load %arg6[%c0_15, %c0_16] : memref<16x64xbf16, #tpu.memory_space<vmem>>, vector<16x64xbf16>
      tpu.vector_store %arg6[%c0_15, %c0_16], %18 {strides = array<i32>} : memref<16x64xbf16, #tpu.memory_space<vmem>>, vector<16x64xbf16>,
    } else {
    }
    return
  }
  func.func @transform_0(%arg0: i32, %arg1: i32, %arg2: i32) -> (i32, i32) {
    %c0_i32 = arith.constant 0 : i32
    return %arg0, %arg2 : i32, i32
  }
  func.func @transform_1(%arg0: i32, %arg1: i32, %arg2: i32) -> (i32, i32) {
    %c0_i32 = arith.constant 0 : i32
    return %arg2, %arg1 : i32, i32
  }
  func.func @transform_2(%arg0: i32, %arg1: i32, %arg2: i32) -> (i32, i32) {
    %c0_i32 = arith.constant 0 : i32
    %c0_i32_0 = arith.constant 0 : i32
    return %c0_i32, %arg1 : i32, i32
  }
  func.func @transform_3(%arg0: i32, %arg1: i32, %arg2: i32) -> (i32, i32) {
    %c0_i32 = arith.constant 0 : i32
    return %arg0, %arg1 : i32, i32
  }
}

module attributes {stable_mosaic.version = 11 : i64} {
  func.func @_matmul_kernel(%arg0: i32, %arg1: i32, %arg2: i32, %arg3: memref<16x64xbf16, #tpu.memory_space<vmem>>, %arg4: memref<64x32xbf16, #tpu.memory_space<vmem>>, %arg5: memref<1x32xf32, #tpu.memory_space<vmem>>, %arg6: memref<16x32xbf16, #tpu.memory_space<vmem>>, %arg7: memref<1x32xf32, #tpu.memory_space<vmem>>, %arg8: memref<1x32xf32, #tpu.memory_space<vmem>>, %arg9: memref<16x32xbf16, #tpu.memory_space<vmem>>, %arg10: memref<16x32xf32, #tpu.memory_space<vmem>>) attributes {dimension_semantics = [#tpu.dimension_semantics<parallel>, #tpu.dimension_semantics<parallel>, #tpu.dimension_semantics<arbitrary>], iteration_bounds = array<i64: 1, 1, 1>, scalar_prefetch = 0 : i64, scratch_operands = 1 : i64, tpu.core_type = #tpu.core_type<tc>, window_params = [{transform_indices = @transform_0, window_bounds = array<i64: 16, 64>}, {transform_indices = @transform_1, window_bounds = array<i64: 64, 32>}, {transform_indices = @transform_2, window_bounds = array<i64: 1, 32>}, {transform_indices = @transform_3, window_bounds = array<i64: 16, 32>}, {transform_indices = @transform_4, window_bounds = array<i64: 1, 32>}, {transform_indices = @transform_5, window_bounds = array<i64: 1, 32>}, {transform_indices = @transform_6, window_bounds = array<i64: 16, 32>}]} {
    %c0_i32 = arith.constant 0 : i32
    %0 = arith.cmpi eq, %arg2, %c0_i32 : i32
    %1 = arith.extui %0 : i1 to i32
    %c0_i32_0 = arith.constant 0 : i32
    %2 = arith.cmpi ne, %1, %c0_i32_0 : i32
    scf.if %2 {
      %cst_10 = arith.constant 0.000000e+00 : f32
      %12 = vector.broadcast %cst_10 : f32 to vector<16x32xf32>
      %c0_11 = arith.constant 0 : index
      %c0_12 = arith.constant 0 : index
      %13 = vector.load %arg10[%c0_11, %c0_12] : memref<16x32xf32, #tpu.memory_space<vmem>>, vector<16x32xf32>
      tpu.vector_store %arg10[%c0_11, %c0_12], %12 {strides = array<i32>} : memref<16x32xf32, #tpu.memory_space<vmem>>, vector<16x32xf32>,
    } else {
    }
    %c0 = arith.constant 0 : index
    %c0_1 = arith.constant 0 : index
    %3 = vector.load %arg10[%c0, %c0_1] : memref<16x32xf32, #tpu.memory_space<vmem>>, vector<16x32xf32>
    %c0_2 = arith.constant 0 : index
    %c0_3 = arith.constant 0 : index
    %4 = vector.load %arg3[%c0_2, %c0_3] : memref<16x64xbf16, #tpu.memory_space<vmem>>, vector<16x64xbf16>
    %c0_4 = arith.constant 0 : index
    %c0_5 = arith.constant 0 : index
    %5 = vector.load %arg4[%c0_4, %c0_5] : memref<64x32xbf16, #tpu.memory_space<vmem>>, vector<64x32xbf16>
    %cst = arith.constant dense<0.000000e+00> : vector<16x32xf32>
    %6 = tpu.matmul %4, %5, %cst {dimension_numbers = #tpu.dot_dimension_numbers<[1], [0], [0], [1], [0, 0, 1, 1], [], []>} : vector<16x64xbf16>, vector<64x32xbf16>, vector<16x32xf32> -> vector<16x32xf32>
    %7 = arith.addf %3, %6 : vector<16x32xf32>
    %c0_6 = arith.constant 0 : index
    %c0_7 = arith.constant 0 : index
    %8 = vector.load %arg10[%c0_6, %c0_7] : memref<16x32xf32, #tpu.memory_space<vmem>>, vector<16x32xf32>
    tpu.vector_store %arg10[%c0_6, %c0_7], %7 {strides = array<i32>} : memref<16x32xf32, #tpu.memory_space<vmem>>, vector<16x32xf32>,
    %c0_i32_8 = arith.constant 0 : i32
    %9 = arith.cmpi eq, %arg2, %c0_i32_8 : i32
    %10 = arith.extui %9 : i1 to i32
    %c0_i32_9 = arith.constant 0 : i32
    %11 = arith.cmpi ne, %10, %c0_i32_9 : i32
    scf.if %11 {
      %c0_10 = arith.constant 0 : index
      %c0_11 = arith.constant 0 : index
      %12 = vector.load %arg10[%c0_10, %c0_11] : memref<16x32xf32, #tpu.memory_space<vmem>>, vector<16x32xf32>
      %c0_12 = arith.constant 0 : index
      %c0_13 = arith.constant 0 : index
      %13 = vector.load %arg5[%c0_12, %c0_13] : memref<1x32xf32, #tpu.memory_space<vmem>>, vector<1x32xf32>
      %14 = vector.broadcast %13 : vector<1x32xf32> to vector<16x32xf32>
      %15 = arith.addf %12, %14 : vector<16x32xf32>
      %c0_14 = arith.constant 0 : index
      %c0_15 = arith.constant 0 : index
      %16 = vector.load %arg6[%c0_14, %c0_15] : memref<16x32xbf16, #tpu.memory_space<vmem>>, vector<16x32xbf16>
      %17 = arith.extf %16 : vector<16x32xbf16> to vector<16x32xf32>
      %18 = arith.addf %15, %17 : vector<16x32xf32>
      %cst_16 = arith.constant dense<0.000000e+00> : vector<16xf32>
      %19 = vector.multi_reduction <add>, %18, %cst_16 [1] : vector<16x32xf32> to vector<16xf32>
      %20 = vector.shape_cast %19 : vector<16xf32> to vector<16x1xf32>
      %cst_17 = arith.constant 3.200000e+01 : f32
      %21 = vector.broadcast %cst_17 : f32 to vector<16x1xf32>
      %22 = arith.divf %20, %21 : vector<16x1xf32>
      %23 = vector.broadcast %22 : vector<16x1xf32> to vector<16x32xf32>
      %24 = arith.subf %18, %23 : vector<16x32xf32>
      %25 = arith.mulf %24, %24 : vector<16x32xf32>
      %cst_18 = arith.constant dense<0.000000e+00> : vector<16xf32>
      %26 = vector.multi_reduction <add>, %25, %cst_18 [1] : vector<16x32xf32> to vector<16xf32>
      %27 = vector.shape_cast %26 : vector<16xf32> to vector<16x1xf32>
      %cst_19 = arith.constant 3.200000e+01 : f32
      %28 = vector.broadcast %cst_19 : f32 to vector<16x1xf32>
      %29 = arith.divf %27, %28 : vector<16x1xf32>
      %30 = vector.broadcast %22 : vector<16x1xf32> to vector<16x32xf32>
      %31 = arith.subf %18, %30 : vector<16x32xf32>
      %cst_20 = arith.constant 9.99999974E-6 : f32
      %32 = vector.broadcast %cst_20 : f32 to vector<16x1xf32>
      %33 = arith.addf %29, %32 : vector<16x1xf32>
      %34 = math.rsqrt %33 : vector<16x1xf32>
      %35 = vector.broadcast %34 : vector<16x1xf32> to vector<16x32xf32>
      %36 = arith.mulf %31, %35 : vector<16x32xf32>
      %c0_21 = arith.constant 0 : index
      %c0_22 = arith.constant 0 : index
      %37 = vector.load %arg7[%c0_21, %c0_22] : memref<1x32xf32, #tpu.memory_space<vmem>>, vector<1x32xf32>
      %38 = vector.broadcast %37 : vector<1x32xf32> to vector<16x32xf32>
      %39 = arith.mulf %36, %38 : vector<16x32xf32>
      %c0_23 = arith.constant 0 : index
      %c0_24 = arith.constant 0 : index
      %40 = vector.load %arg8[%c0_23, %c0_24] : memref<1x32xf32, #tpu.memory_space<vmem>>, vector<1x32xf32>
      %41 = vector.broadcast %40 : vector<1x32xf32> to vector<16x32xf32>
      %42 = arith.addf %39, %41 : vector<16x32xf32>
      %43 = arith.truncf %42 : vector<16x32xf32> to vector<16x32xbf16>
      %c0_25 = arith.constant 0 : index
      %c0_26 = arith.constant 0 : index
      %44 = vector.load %arg9[%c0_25, %c0_26] : memref<16x32xbf16, #tpu.memory_space<vmem>>, vector<16x32xbf16>
      tpu.vector_store %arg9[%c0_25, %c0_26], %43 {strides = array<i32>} : memref<16x32xbf16, #tpu.memory_space<vmem>>, vector<16x32xbf16>,
    } else {
    }
    return
  }
  func.func @transform_0(%arg0: i32, %arg1: i32, %arg2: i32) -> (i32, i32) {
    %c0_i32 = arith.constant 0 : i32
    return %arg0, %arg2 : i32, i32
  }
  func.func @transform_1(%arg0: i32, %arg1: i32, %arg2: i32) -> (i32, i32) {
    %c0_i32 = arith.constant 0 : i32
    return %arg2, %arg1 : i32, i32
  }
  func.func @transform_2(%arg0: i32, %arg1: i32, %arg2: i32) -> (i32, i32) {
    %c0_i32 = arith.constant 0 : i32
    %c0_i32_0 = arith.constant 0 : i32
    return %c0_i32, %arg1 : i32, i32
  }
  func.func @transform_3(%arg0: i32, %arg1: i32, %arg2: i32) -> (i32, i32) {
    %c0_i32 = arith.constant 0 : i32
    return %arg0, %arg1 : i32, i32
  }
  func.func @transform_4(%arg0: i32, %arg1: i32, %arg2: i32) -> (i32, i32) {
    %c0_i32 = arith.constant 0 : i32
    %c0_i32_0 = arith.constant 0 : i32
    return %c0_i32, %arg1 : i32, i32
  }
  func.func @transform_5(%arg0: i32, %arg1: i32, %arg2: i32) -> (i32, i32) {
    %c0_i32 = arith.constant 0 : i32
    %c0_i32_0 = arith.constant 0 : i32
    return %c0_i32, %arg1 : i32, i32
  }
  func.func @transform_6(%arg0: i32, %arg1: i32, %arg2: i32) -> (i32, i32) {
    %c0_i32 = arith.constant 0 : i32
    return %arg0, %arg1 : i32, i32
  }
}

module attributes {stable_mosaic.version = 11 : i64} {
  func.func @_layernorm_kernel(%arg0: i32, %arg1: memref<16x32xbf16, #tpu.memory_space<vmem>>, %arg2: memref<1x32xf32, #tpu.memory_space<vmem>>, %arg3: memref<1x32xf32, #tpu.memory_space<vmem>>, %arg4: memref<16x32xf32, #tpu.memory_space<vmem>>) attributes {dimension_semantics = [#tpu.dimension_semantics<parallel>], iteration_bounds = array<i64: 1>, scalar_prefetch = 0 : i64, scratch_operands = 0 : i64, tpu.core_type = #tpu.core_type<tc>, window_params = [{transform_indices = @transform_0, window_bounds = array<i64: 16, 32>}, {pipeline_mode = #tpu.pipeline_mode<synchronous>, transform_indices = @transform_1, window_bounds = array<i64: 1, 32>}, {pipeline_mode = #tpu.pipeline_mode<synchronous>, transform_indices = @transform_2, window_bounds = array<i64: 1, 32>}, {transform_indices = @transform_3, window_bounds = array<i64: 16, 32>}]} {
    %c0 = arith.constant 0 : index
    %c0_0 = arith.constant 0 : index
    %0 = vector.load %arg1[%c0, %c0_0] : memref<16x32xbf16, #tpu.memory_space<vmem>>, vector<16x32xbf16>
    %1 = arith.extf %0 : vector<16x32xbf16> to vector<16x32xf32>
    %cst = arith.constant dense<0.000000e+00> : vector<16xf32>
    %2 = vector.multi_reduction <add>, %1, %cst [1] : vector<16x32xf32> to vector<16xf32>
    %3 = vector.shape_cast %2 : vector<16xf32> to vector<16x1xf32>
    %cst_1 = arith.constant 3.200000e+01 : f32
    %4 = vector.broadcast %cst_1 : f32 to vector<16x1xf32>
    %5 = arith.divf %3, %4 : vector<16x1xf32>
    %6 = vector.broadcast %5 : vector<16x1xf32> to vector<16x32xf32>
    %7 = arith.subf %1, %6 : vector<16x32xf32>
    %8 = arith.mulf %7, %7 : vector<16x32xf32>
    %cst_2 = arith.constant dense<0.000000e+00> : vector<16xf32>
    %9 = vector.multi_reduction <add>, %8, %cst_2 [1] : vector<16x32xf32> to vector<16xf32>
    %10 = vector.shape_cast %9 : vector<16xf32> to vector<16x1xf32>
    %cst_3 = arith.constant 3.200000e+01 : f32
    %11 = vector.broadcast %cst_3 : f32 to vector<16x1xf32>
    %12 = arith.divf %10, %11 : vector<16x1xf32>
    %13 = vector.broadcast %5 : vector<16x1xf32> to vector<16x32xf32>
    %14 = arith.subf %1, %13 : vector<16x32xf32>
    %cst_4 = arith.constant 9.99999974E-6 : f32
    %15 = vector.broadcast %cst_4 : f32 to vector<16x1xf32>
    %16 = arith.addf %12, %15 : vector<16x1xf32>
    %17 = math.rsqrt %16 : vector<16x1xf32>
    %18 = vector.broadcast %17 : vector<16x1xf32> to vector<16x32xf32>
    %19 = arith.mulf %14, %18 : vector<16x32xf32>
    %c0_5 = arith.constant 0 : index
    %c0_6 = arith.constant 0 : index
    %20 = vector.load %arg2[%c0_5, %c0_6] : memref<1x32xf32, #tpu.memory_space<vmem>>, vector<1x32xf32>
    %21 = vector.broadcast %20 : vector<1x32xf32> to vector<16x32xf32>
    %22 = arith.mulf %19, %21 : vector<16x32xf32>
    %c0_7 = arith.constant 0 : index
    %c0_8 = arith.constant 0 : index
    %23 = vector.load %arg3[%c0_7, %c0_8] : memref<1x32xf32, #tpu.memory_space<vmem>>, vector<1x32xf32>
    %24 = vector.broadcast %23 : vector<1x32xf32> to vector<16x32xf32>
    %25 = arith.addf %22, %24 : vector<16x32xf32>
    %c0_9 = arith.constant 0 : index
    %c0_10 = arith.constant 0 : index
    %26 = vector.load %arg4[%c0_9, %c0_10] : memref<16x32xf32, #tpu.memory_space<vmem>>, vector<16x32xf32>
    tpu.vector_store %arg4[%c0_9, %c0_10], %25 {strides = array<i32>} : memref<16x32xf32, #tpu.memory_space<vmem>>, vector<16x32xf32>,
    return
  }
  func.func @transform_0(%arg0: i32) -> (i32, i32) {
    %c0_i32 = arith.constant 0 : i32
    %c0_i32_0 = arith.constant 0 : i32
    return %arg0, %c0_i32 : i32, i32
  }
  func.func @transform_1(%arg0: i32) -> (i32, i32) {
    %c0_i32 = arith.constant 0 : i32
    %c0_i32_0 = arith.constant 0 : i32
    %c0_i32_1 = arith.constant 0 : i32
    return %c0_i32, %c0_i32_0 : i32, i32
  }
  func.func @transform_2(%arg0: i32) -> (i32, i32) {
    %c0_i32 = arith.constant 0 : i32
    %c0_i32_0 = arith.constant 0 : i32
    %c0_i32_1 = arith.constant 0 : i32
    return %c0_i32, %c0_i32_0 : i32, i32
  }
  func.func @transform_3(%arg0: i32) -> (i32, i32) {
    %c0_i32 = arith.constant 0 : i32
    %c0_i32_0 = arith.constant 0 : i32
    return %arg0, %c0_i32 : i32, i32
  }
}

</mosaic_0001>

<bundles_post_ra>
// kernel: _lambda_.19
= control target key start
LH: loop header
LB: loop body
LE: loop exit
PB: predicated region body
PF: predicated region fallthrough
CT: control target
= control target key end

     0   :  { %vm19_vm0 = vcmask 785408   ;;  %v151_v0 = vmov 0.0   ;;  %vm152_vm1 = vmmov 0   ;;  %vm47_vm2 = vcmask 261120   ;;  %s195_s1 = inlined_call_operand.vmem [shape: bf16[32,96], index: 1, kind: input, shape index: {}]   ;;  %s196_s0 = inlined_call_operand.vmem [shape: bf16[16,32], index: 0, kind: input, shape index: {}]   ;;  %s197_s2 = inlined_call_operand.vmem [shape: f32[1,96], index: 2, kind: input, shape index: {}]   ;;  %s198_s3 = inlined_call_operand.vmem [shape: bf16[16,96], index: 3, kind: output, shape index: {}]  }
   0x1   :  { %138 = vmatprep.subr.bf16.mxu0 %v151_v0  ;;  %v148_v1 = vld [vmem:[%s195_s1] sm:$0xff]   ;;  %142 = vmatprep.mubr.msk.bf16.mxu0 %vm152_vm1, %v151_v0  ;;  %20 = vst.msk [vmem:[#allocation2] sm:$0xff] %vm19_vm0, %v151_v0  ;;  %21 = vst.msk [vmem:[#allocation2 + $0x8] sm:$0xff] %vm19_vm0, %v151_v0  ;;  %v149_v2 = vld [vmem:[%s195_s1 + $0x8] sm:$0xff]   ;;  %vm119_vm3 = vcmask 781312  }
   0x2   :  { %139 = vmatpush3.bf16.msra.mxu0 %v148_v1  ;;  %v150_v3 = vld [vmem:[%s196_s0] sm:$0xff]  }
   0x3   :  { %140 = vmatprep.subr.bf16.mxu0 %v151_v0  ;;  %v130_v12 = vld [vmem:[%s197_s2] ss:$0 sm:$0xff] }
   0x6   :  { %141 = vmatpush3.bf16.msra.mxu0 %v149_v2 }
   0x8   :  { %v22_v4 = vld [vmem:[#allocation2] sm:$0xff]  ;;  %v23_v6 = vld [vmem:[#allocation2 + $0x8] sm:$0xff] }
   0x9   :  { %143 = vmatmul.mubr.msk.bf16.vlgmr.msra.gmra.mrb[0].mxu0 %vm47_vm2, %v150_v3 }
  0xdc   :  { %v85_v5 = vpop.f32.mrb[0].mxu0 }
  0xdd   :  { %v92_v7 = vadd.f32 %v85_v5, %v22_v4  ;;  %v144_v8 = vpop.f32.mrb[1].mxu0 }
  0xde   :  { %v88_v9 = vpop.f32.mrb[2].mxu0 }
  0xdf   :  { %95 = vst.msk [vmem:[#allocation2] sm:$0xff] %vm19_vm0, %v92_v7  ;;  %v93_v10 = vadd.f32 %v88_v9, %v23_v6  ;;  %v145_v11 = vpop.f32.mrb[3].mxu0 }
  0xe1   :  { %96 = vst.msk [vmem:[#allocation2 + $0x8] sm:$0xff] %vm19_vm0, %v93_v10 }
  0xe6   :  { %v100_v13 = vld [vmem:[#allocation2] sm:$0xff] }
  0xe7   :  { %v109_v14 = vadd.f32 %v130_v12, %v100_v13 }
  0xe8   :  { %v101_v15 = vld [vmem:[#allocation2 + $0x8] sm:$0xff] }
  0xe9   :  { %v133_v16 = vpack.c.bf16 %v109_v14, %v109_v14  ;;  %v110_v17 = vadd.f32 %v130_v12, %v101_v15 }
  0xeb   :  { %120 = vst.msk [vmem:[%s198_s3] sm:$0xf] %vm119_vm3, %v133_v16  ;;  %v134_v18 = vpack.c.bf16 %v110_v17, %v110_v17 }
  0xed   :  { %121 = vst.msk [vmem:[%s198_s3 + $0x4] sm:$0xf] %vm119_vm3, %v134_v18 }

// kernel: _lambda_.22
= control target key start
LH: loop header
LB: loop body
LE: loop exit
PB: predicated region body
PF: predicated region fallthrough
CT: control target
= control target key end

     0   :  { %vm19_vm0 = vcmask 261120   ;;  %v150_v0 = vmov 0.0   ;;  %vm151_vm1 = vmmov 0   ;;  %vm118_vm2 = vcmask 257024   ;;  %s195_s1 = inlined_call_operand.vmem [shape: bf16[32,32], index: 1, kind: input, shape index: {}]   ;;  %s196_s0 = inlined_call_operand.vmem [shape: bf16[16,32], index: 0, kind: input, shape index: {}]   ;;  %s197_s2 = inlined_call_operand.vmem [shape: f32[1,32], index: 2, kind: input, shape index: {}]   ;;  %s198_s3 = inlined_call_operand.vmem [shape: bf16[16,32], index: 3, kind: output, shape index: {}]  }
   0x1   :  { %137 = vmatprep.subr.bf16.mxu0 %v150_v0  ;;  %v147_v1 = vld [vmem:[%s195_s1] sm:$0xff]   ;;  %141 = vmatprep.mubr.msk.bf16.mxu0 %vm151_vm1, %v150_v0  ;;  %20 = vst.msk [vmem:[#allocation2] sm:$0xff] %vm19_vm0, %v150_v0  ;;  %21 = vst.msk [vmem:[#allocation2 + $0x8] sm:$0xff] %vm19_vm0, %v150_v0  ;;  %v148_v2 = vld [vmem:[%s195_s1 + $0x8] sm:$0xff]  }
   0x2   :  { %138 = vmatpush3.bf16.msra.mxu0 %v147_v1  ;;  %v149_v3 = vld [vmem:[%s196_s0] sm:$0xff]  }
   0x3   :  { %139 = vmatprep.subr.bf16.mxu0 %v150_v0  ;;  %v129_v12 = vld [vmem:[%s197_s2] ss:$0 sm:$0xff] }
   0x6   :  { %140 = vmatpush3.bf16.msra.mxu0 %v148_v2 }
   0x8   :  { %v22_v4 = vld [vmem:[#allocation2] sm:$0xff]  ;;  %v23_v6 = vld [vmem:[#allocation2 + $0x8] sm:$0xff] }
   0x9   :  { %142 = vmatmul.mubr.msk.bf16.vlgmr.msra.gmra.mrb[0].mxu0 %vm19_vm0, %v149_v3 }
  0xdc   :  { %v85_v5 = vpop.f32.mrb[0].mxu0 }
  0xdd   :  { %v92_v7 = vadd.f32 %v85_v5, %v22_v4  ;;  %v143_v8 = vpop.f32.mrb[1].mxu0 }
  0xde   :  { %v88_v9 = vpop.f32.mrb[2].mxu0 }
  0xdf   :  { %94 = vst.msk [vmem:[#allocation2] sm:$0xff] %vm19_vm0, %v92_v7  ;;  %v93_v10 = vadd.f32 %v88_v9, %v23_v6  ;;  %v144_v11 = vpop.f32.mrb[3].mxu0 }
  0xe1   :  { %95 = vst.msk [vmem:[#allocation2 + $0x8] sm:$0xff] %vm19_vm0, %v93_v10 }
  0xe6   :  { %v99_v13 = vld [vmem:[#allocation2] sm:$0xff] }
  0xe7   :  { %v108_v14 = vadd.f32 %v129_v12, %v99_v13 }
  0xe8   :  { %v100_v15 = vld [vmem:[#allocation2 + $0x8] sm:$0xff] }
  0xe9   :  { %v132_v16 = vpack.c.bf16 %v108_v14, %v108_v14  ;;  %v109_v17 = vadd.f32 %v129_v12, %v100_v15 }
  0xeb   :  { %119 = vst.msk [vmem:[%s198_s3] sm:$0xf] %vm118_vm2, %v132_v16  ;;  %v133_v18 = vpack.c.bf16 %v109_v17, %v109_v17 }
  0xed   :  { %120 = vst.msk [vmem:[%s198_s3 + $0x4] sm:$0xf] %vm118_vm2, %v133_v18 }

// kernel: _lambda_.21
= control target key start
LH: loop header
LB: loop body
LE: loop exit
PB: predicated region body
PF: predicated region fallthrough
CT: control target
= control target key end

     0   :  { %vm28_vm0 = vcmask 261120   ;;  %v220_v0 = vmov 0.0   ;;  %vm221_vm1 = vmmov 0   ;;  %vm178_vm2 = vcmask 257024   ;;  %s293_s1 = inlined_call_operand.vmem [shape: bf16[32,32], index: 1, kind: input, shape index: {}]   ;;  %s294_s0 = inlined_call_operand.vmem [shape: bf16[16,32], index: 0, kind: input, shape index: {}]   ;;  %s295_s3 = inlined_call_operand.vmem [shape: bf16[16,32], index: 3, kind: input, shape index: {}]   ;;  %s296_s2 = inlined_call_operand.vmem [shape: f32[1,32], index: 2, kind: input, shape index: {}]   ;;  %s297_s4 = inlined_call_operand.vmem [shape: f32[1,32], index: 4, kind: input, shape index: {}]   ;;  %s298_s5 = inlined_call_operand.vmem [shape: f32[1,32], index: 5, kind: input, shape index: {}]   ;;  %s299_s6 = inlined_call_operand.vmem [shape: bf16[16,32], index: 6, kind: output, shape index: {}]  }
   0x1   :  { %203 = vmatprep.subr.bf16.mxu0 %v220_v0  ;;  %v213_v1 = vld [vmem:[%s293_s1] sm:$0xff]   ;;  %207 = vmatprep.mubr.msk.bf16.mxu0 %vm221_vm1, %v220_v0  ;;  %29 = vst.msk [vmem:[#allocation2] sm:$0xff] %vm28_vm0, %v220_v0  ;;  %30 = vst.msk [vmem:[#allocation2 + $0x8] sm:$0xff] %vm28_vm0, %v220_v0  ;;  %v214_v2 = vld [vmem:[%s293_s1 + $0x8] sm:$0xff]  }
   0x2   :  { %204 = vmatpush3.bf16.msra.mxu0 %v213_v1  ;;  %v215_v3 = vld [vmem:[%s294_s0] sm:$0xff]  }
   0x3   :  { %205 = vmatprep.subr.bf16.mxu0 %v220_v0  ;;  %v197_v12 = vld [vmem:[%s295_s3] sm:$0xff]  }
   0x4   :  { %v189_v13 = vld [vmem:[%s296_s2] ss:$0 sm:$0xff]  ;;  %v198_v14 = vunpack.c.l.bf16 %v197_v12  ;;  %v199_v17 = vunpack.c.h.bf16 %v197_v12 }
   0x5   :  { %v190_v41 = vld [vmem:[%s297_s4] ss:$0 sm:$0xff] }
   0x6   :  { %206 = vmatpush3.bf16.msra.mxu0 %v214_v2  ;;  %v191_v43 = vld [vmem:[%s298_s5] ss:$0 sm:$0xff] }
   0x8   :  { %v31_v4 = vld [vmem:[#allocation2] sm:$0xff]  ;;  %v32_v6 = vld [vmem:[#allocation2 + $0x8] sm:$0xff] }
   0x9   :  { %208 = vmatmul.mubr.msk.bf16.vlgmr.msra.gmra.mrb[0].mxu0 %vm28_vm0, %v215_v3 }
  0xdc   :  { %v94_v5 = vpop.f32.mrb[0].mxu0 }
  0xdd   :  { %v101_v7 = vadd.f32 %v94_v5, %v31_v4  ;;  %v209_v8 = vpop.f32.mrb[1].mxu0 }
  0xde   :  { %v97_v9 = vpop.f32.mrb[2].mxu0 }
  0xdf   :  { %103 = vst.msk [vmem:[#allocation2] sm:$0xff] %vm28_vm0, %v101_v7  ;;  %v102_v10 = vadd.f32 %v97_v9, %v32_v6  ;;  %v210_v11 = vpop.f32.mrb[3].mxu0 }
  0xe1   :  { %104 = vst.msk [vmem:[#allocation2 + $0x8] sm:$0xff] %vm28_vm0, %v102_v10 }
  0xe6   :  { %v108_v15 = vld [vmem:[#allocation2] sm:$0xff] }
  0xe7   :  { %v117_v16 = vadd.f32 %v189_v13, %v108_v15 }
  0xe8   :  { %v109_v18 = vld [vmem:[#allocation2 + $0x8] sm:$0xff] }
  0xe9   :  { %v123_v19 = vadd.f32 %v198_v14, %v117_v16  ;;  %v118_v20 = vadd.f32 %v189_v13, %v109_v18 }
  0xeb   :  { %v125_v21 = vsel %vm28_vm0, %v123_v19, 0.0  ;;  %v124_v22 = vadd.f32 %v199_v17, %v118_v20 }
  0xec   :  { %126 = vadd.xlane.f32.xlu0 %v125_v21 }
  0xed   :  { %v128_v23 = vsel %vm28_vm0, %v124_v22, 0.0 }
  0xf0   :  { %129 = vadd.xlane.f32.xlu0 %v128_v23 }
 0x179   :  { %v127_v24 = vpop.xlane.xlu0 %126 }
 0x17a   :  { %v132_v25 = vmul.f32 0.03125, %v127_v24 }
 0x17c   :  { %v134_v26 = vsub.f32 %v123_v19, %v132_v25 }
 0x17d   :  { %v130_v27 = vpop.xlane.xlu0 %129 }
 0x17e   :  { %v133_v28 = vmul.f32 0.03125, %v130_v27  ;;  %v136_v29 = vmul.f32 %v134_v26, %v134_v26 }
 0x180   :  { %v135_v30 = vsub.f32 %v124_v22, %v133_v28  ;;  %v138_v31 = vsel %vm28_vm0, %v136_v29, 0.0 }
 0x181   :  { %139 = vadd.xlane.f32.xlu1 %v138_v31 }
 0x182   :  { %v137_v32 = vmul.f32 %v135_v30, %v135_v30 }
 0x184   :  { %v141_v33 = vsel %vm28_vm0, %v137_v32, 0.0 }
 0x185   :  { %142 = vadd.xlane.f32.xlu1 %v141_v33 }
 0x20e   :  { %v140_v34 = vpop.xlane.xlu1 %139 }
 0x20f   :  { %v144_v35 = vmul.f32 0.03125, %v140_v34 }
 0x211   :  { %v146_v36 = vadd.f32 1e-05, %v144_v35 }
 0x212   :  { %v143_v37 = vpop.xlane.xlu1 %142 }
 0x213   :  { %216 = vrsqrt.f32 %v146_v36  ;;  %v145_v38 = vmul.f32 0.03125, %v143_v37 }
 0x215   :  { %v147_v39 = vadd.f32 1e-05, %v145_v38 }
 0x217   :  { %218 = vrsqrt.f32 %v147_v39 }
 0x21d   :  { %v217_v40 = vpop.eup %216 }
 0x21e   :  { %v150_v42 = vmul.f32 %v217_v40, %v134_v26 }
 0x220   :  { %v159_v44 = vmul.f32 %v190_v41, %v150_v42 }
 0x221   :  { %v219_v45 = vpop.eup %218 }
 0x222   :  { %v168_v46 = vadd.f32 %v191_v43, %v159_v44  ;;  %v151_v47 = vmul.f32 %v219_v45, %v135_v30 }
 0x224   :  { %v194_v48 = vpack.c.bf16 %v168_v46, %v168_v46  ;;  %v160_v49 = vmul.f32 %v190_v41, %v151_v47 }
 0x226   :  { %179 = vst.msk [vmem:[%s299_s6] sm:$0xf] %vm178_vm2, %v194_v48  ;;  %v169_v50 = vadd.f32 %v191_v43, %v160_v49 }
 0x228   :  { %v195_v51 = vpack.c.bf16 %v169_v50, %v169_v50 }
 0x22a   :  { %180 = vst.msk [vmem:[%s299_s6 + $0x4] sm:$0xf] %vm178_vm2, %v195_v51 }

// kernel: _lambda_.23
= control target key start
LH: loop header
LB: loop body
LE: loop exit
PB: predicated region body
PF: predicated region fallthrough
CT: control target
= control target key end

     0   :  { %vm19_vm0 = vcmask 523264   ;;  %v151_v0 = vmov 0.0   ;;  %vm152_vm1 = vmmov 0   ;;  %vm47_vm2 = vcmask 261120   ;;  %s195_s1 = inlined_call_operand.vmem [shape: bf16[32,64], index: 1, kind: input, shape index: {}]   ;;  %s196_s0 = inlined_call_operand.vmem [shape: bf16[16,32], index: 0, kind: input, shape index: {}]   ;;  %s197_s2 = inlined_call_operand.vmem [shape: f32[1,64], index: 2, kind: input, shape index: {}]   ;;  %s198_s3 = inlined_call_operand.vmem [shape: bf16[16,64], index: 3, kind: output, shape index: {}]  }
   0x1   :  { %138 = vmatprep.subr.bf16.mxu0 %v151_v0  ;;  %v148_v1 = vld [vmem:[%s195_s1] sm:$0xff]   ;;  %142 = vmatprep.mubr.msk.bf16.mxu0 %vm152_vm1, %v151_v0  ;;  %20 = vst.msk [vmem:[#allocation2] sm:$0xff] %vm19_vm0, %v151_v0  ;;  %21 = vst.msk [vmem:[#allocation2 + $0x8] sm:$0xff] %vm19_vm0, %v151_v0  ;;  %v149_v2 = vld [vmem:[%s195_s1 + $0x8] sm:$0xff]   ;;  %vm119_vm3 = vcmask 519168  }
   0x2   :  { %139 = vmatpush3.bf16.msra.mxu0 %v148_v1  ;;  %v150_v3 = vld [vmem:[%s196_s0] sm:$0xff]  }
   0x3   :  { %140 = vmatprep.subr.bf16.mxu0 %v151_v0  ;;  %v130_v12 = vld [vmem:[%s197_s2] ss:$0 sm:$0xff] }
   0x6   :  { %141 = vmatpush3.bf16.msra.mxu0 %v149_v2 }
   0x8   :  { %v22_v4 = vld [vmem:[#allocation2] sm:$0xff]  ;;  %v23_v6 = vld [vmem:[#allocation2 + $0x8] sm:$0xff] }
   0x9   :  { %143 = vmatmul.mubr.msk.bf16.vlgmr.msra.gmra.mrb[0].mxu0 %vm47_vm2, %v150_v3 }
  0xdc   :  { %v85_v5 = vpop.f32.mrb[0].mxu0 }
  0xdd   :  { %v92_v7 = vadd.f32 %v85_v5, %v22_v4  ;;  %v144_v8 = vpop.f32.mrb[1].mxu0 }
  0xde   :  { %v88_v9 = vpop.f32.mrb[2].mxu0 }
  0xdf   :  { %95 = vst.msk [vmem:[#allocation2] sm:$0xff] %vm19_vm0, %v92_v7  ;;  %v93_v10 = vadd.f32 %v88_v9, %v23_v6  ;;  %v145_v11 = vpop.f32.mrb[3].mxu0 }
  0xe1   :  { %96 = vst.msk [vmem:[#allocation2 + $0x8] sm:$0xff] %vm19_vm0, %v93_v10 }
  0xe6   :  { %v100_v13 = vld [vmem:[#allocation2] sm:$0xff] }
  0xe7   :  { %v109_v14 = vadd.f32 %v130_v12, %v100_v13 }
  0xe8   :  { %v101_v15 = vld [vmem:[#allocation2 + $0x8] sm:$0xff] }
  0xe9   :  { %v133_v16 = vpack.c.bf16 %v109_v14, %v109_v14  ;;  %v110_v17 = vadd.f32 %v130_v12, %v101_v15 }
  0xeb   :  { %120 = vst.msk [vmem:[%s198_s3] sm:$0xf] %vm119_vm3, %v133_v16  ;;  %v134_v18 = vpack.c.bf16 %v110_v17, %v110_v17 }
  0xed   :  { %121 = vst.msk [vmem:[%s198_s3 + $0x4] sm:$0xf] %vm119_vm3, %v134_v18 }

// kernel: _lambda_.20
= control target key start
LH: loop header
LB: loop body
LE: loop exit
PB: predicated region body
PF: predicated region fallthrough
CT: control target
= control target key end

     0   :  { %s3019_s12 = smov 0   ;;  %s3021_s13 = smov 0   ;;  %s3714_s0 = inlined_call_operand.vmem [shape: bf16[2,8,3,4,8], index: 0, kind: input, shape index: {}, may-alias: {0,1,2}]   ;;  %s3715_s1 = inlined_call_operand.vmem [shape: bf16[2,8,3,4,8], index: 1, kind: input, shape index: {}, may-alias: {0,1,2}]   ;;  %s3716_s2 = inlined_call_operand.vmem [shape: bf16[2,8,3,4,8], index: 2, kind: input, shape index: {}, may-alias: {0,1,2}]   ;;  %s3717_s3 = inlined_call_operand.vmem [shape: bf16[2,8,4,8], index: 3, kind: output, shape index: {}]  }
   0x1   :  { %s3023_s14 = smov 0   ;;  %s3025_s15 = smov 0  }
   0x2   :  { %s3027_s16 = smov 0  }
   0x3 LB: > { %s25_s17 = sadd.s32 1, %s2989_s15  ;;  %p41_p1 = scmp.ne.s32.totalorder %s2981_s13, %s2977_s12  ;;  %s2993_s16 = sphi %s3027_s16, %s13_s16   ;;  %s2989_s15 = sphi %s3025_s15, %s3730_s15   ;;  %s2985_s14 = sphi %s3023_s14, %s3729_s14   ;;  %s2981_s13 = sphi %s3021_s13, %s3728_s13   ;;  %s2977_s12 = sphi %s3019_s12, %s3727_s12  }
   0x4   : > { %p27_p0 = scmp.ge.s32.totalorder %s25_s17, 2  ;;  %p42_p2 = scmp.eq.s32.totalorder %s2993_s16, 0 }
   0x5   : > { %s34_s20 = sadd.s32 1, %s2981_s13  ;;  %p2678_p5 = scmp.ge.s32.totalorder %s2993_s16, 2 }
   0x6   : > { %s3732_s17 = smov (%p27_p0, %s25_s17), 0  ;;  %p3050_p3 = por %p42_p2, %p41_p1 }
   0x7   : > { %s29_s19 = ssub.s32 %s2989_s15, %s3732_s17  ;;  %151 = sbr.rel (%p2678_p5) target bundleno = 44 (0x2c), region = 16 }
   0x8   : > { %p32_p4 = scmp.eq.s32.totalorder %s29_s19, 0 }
   0xa   : > { %s3058_s21 = scalar_select %p32_p4, %s2981_s13, %s34_s20  }
   0xe   : > { %154 = sbr.rel (!%p3050_p3) target bundleno = 24 (0x18), region = 20  ;;  %s156_s22 = sand.u32 (%p3050_p3), 1, %s2981_s13  }
   0xf   : > { %s2894_s23 = smul.u32 (%p3050_p3), 48, %s2989_s15  ;;  %s2679_s24 = sshll.u32 (%p3050_p3), %s156_s22, 4 }
  0x10   : > { %s158_s28 = scalar_lea.vmem (%p3050_p3), [#allocation2], %s2679_s24 }
  0x11   : > { %s162_s27 = scalar_lea.vmem (%p3050_p3), %s3714_s0, %s2894_s23 }
  0x12   : > { %v178_v0 = vld [vmem:[%s162_s27] sm:$0x3] (%p3050_p3)  ;;  %v180_v1 = vld [vmem:[%s162_s27 + $0x6] sm:$0x3] (%p3050_p3)  ;;  %v182_v2 = vld [vmem:[%s162_s27 + $0xc] sm:$0x3] (%p3050_p3) }
  0x13   : > { %179 = vst [vmem:[%s158_s28] sm:$0x3] (%p3050_p3), %v178_v0  ;;  %181 = vst [vmem:[%s158_s28 + $0x2] sm:$0x3] (%p3050_p3), %v180_v1  ;;  %v184_v3 = vld [vmem:[%s162_s27 + $0x12] sm:$0x3] (%p3050_p3) }
  0x14   : > { %183 = vst [vmem:[%s158_s28 + $0x4] sm:$0x3] (%p3050_p3), %v182_v2  ;;  %v186_v4 = vld [vmem:[%s162_s27 + $0x18] sm:$0x3] (%p3050_p3)  ;;  %v188_v5 = vld [vmem:[%s162_s27 + $0x1e] sm:$0x3] (%p3050_p3) }
  0x15   : > { %185 = vst [vmem:[%s158_s28 + $0x6] sm:$0x3] %v184_v3  ;;  %187 = vst [vmem:[%s158_s28 + $0x8] sm:$0x3] %v186_v4  ;;  %v190_v6 = vld [vmem:[%s162_s27 + $0x24] sm:$0x3] }
  0x16   : > { %189 = vst [vmem:[%s158_s28 + $0xa] sm:$0x3] %v188_v5  ;;  %v192_v7 = vld [vmem:[%s162_s27 + $0x2a] sm:$0x3]  ;;  %191 = vst [vmem:[%s158_s28 + $0xc] sm:$0x3] %v190_v6 }
  0x17   : > { %193 = vst [vmem:[%s158_s28 + $0xe] sm:$0x3] %v192_v7 }
  0x18 PF: > { %232 = sbr.rel (!%p3050_p3) target bundleno = 34 (0x22), region = 61  ;;  %s234_s29 = sand.u32 (%p3050_p3), 1, %s2981_s13  }
  0x19   : > { %s2682_s30 = smul.u32 (%p3050_p3), 48, %s2989_s15  ;;  %s2681_s4 = sshll.u32 (%p3050_p3), %s234_s29, 4 }
  0x1a   : > { %s236_s8 = scalar_lea.vmem (%p3050_p3), [#allocation3], %s2681_s4 }
  0x1b   : > { %s2586_s7 = scalar_lea.vmem (%p3050_p3), %s3715_s1, %s2682_s30 }
  0x1c   : > { %v2683_v8 = vld [vmem:[%s2586_s7 + $0x2] sm:$0x3] (%p3050_p3)  ;;  %v2684_v9 = vld [vmem:[%s2586_s7 + $0x8] sm:$0x3] (%p3050_p3)  ;;  %v2685_v10 = vld [vmem:[%s2586_s7 + $0xe] sm:$0x3] (%p3050_p3) }
  0x1d   : > { %258 = vst [vmem:[%s236_s8] sm:$0x3] (%p3050_p3), %v2683_v8  ;;  %260 = vst [vmem:[%s236_s8 + $0x2] sm:$0x3] (%p3050_p3), %v2684_v9  ;;  %v2686_v11 = vld [vmem:[%s2586_s7 + $0x14] sm:$0x3] (%p3050_p3) }
  0x1e   : > { %262 = vst [vmem:[%s236_s8 + $0x4] sm:$0x3] (%p3050_p3), %v2685_v10  ;;  %v2687_v12 = vld [vmem:[%s2586_s7 + $0x1a] sm:$0x3] (%p3050_p3)  ;;  %v2688_v13 = vld [vmem:[%s2586_s7 + $0x20] sm:$0x3] (%p3050_p3) }
  0x1f   : > { %264 = vst [vmem:[%s236_s8 + $0x6] sm:$0x3] %v2686_v11  ;;  %266 = vst [vmem:[%s236_s8 + $0x8] sm:$0x3] %v2687_v12  ;;  %v2689_v14 = vld [vmem:[%s2586_s7 + $0x26] sm:$0x3] }
  0x20   : > { %268 = vst [vmem:[%s236_s8 + $0xa] sm:$0x3] %v2688_v13  ;;  %v2690_v15 = vld [vmem:[%s2586_s7 + $0x2c] sm:$0x3]  ;;  %270 = vst [vmem:[%s236_s8 + $0xc] sm:$0x3] %v2689_v14 }
  0x21   : > { %272 = vst [vmem:[%s236_s8 + $0xe] sm:$0x3] %v2690_v15 }
  0x22 PF: > { %311 = sbr.rel (!%p3050_p3) target bundleno = 44 (0x2c), region = 102  ;;  %s313_s9 = sand.u32 (%p3050_p3), 1, %s2981_s13  }
  0x23   : > { %s2692_s10 = smul.u32 (%p3050_p3), 48, %s2989_s15  ;;  %s2691_s11 = sshll.u32 (%p3050_p3), %s313_s9, 4 }
  0x24   : > { %s315_s23 = scalar_lea.vmem (%p3050_p3), [#allocation4], %s2691_s11 }
  0x25   : > { %s2593_s22 = scalar_lea.vmem (%p3050_p3), %s3716_s2, %s2692_s10 }
  0x26   : > { %v2693_v16 = vld [vmem:[%s2593_s22 + $0x4] sm:$0x3] (%p3050_p3)  ;;  %v2694_v17 = vld [vmem:[%s2593_s22 + $0xa] sm:$0x3] (%p3050_p3)  ;;  %v2695_v18 = vld [vmem:[%s2593_s22 + $0x10] sm:$0x3] (%p3050_p3) }
  0x27   : > { %337 = vst [vmem:[%s315_s23] sm:$0x3] (%p3050_p3), %v2693_v16  ;;  %339 = vst [vmem:[%s315_s23 + $0x2] sm:$0x3] (%p3050_p3), %v2694_v17  ;;  %v2696_v19 = vld [vmem:[%s2593_s22 + $0x16] sm:$0x3] (%p3050_p3) }
  0x28   : > { %341 = vst [vmem:[%s315_s23 + $0x4] sm:$0x3] (%p3050_p3), %v2695_v18  ;;  %v2697_v20 = vld [vmem:[%s2593_s22 + $0x1c] sm:$0x3] (%p3050_p3)  ;;  %v2698_v21 = vld [vmem:[%s2593_s22 + $0x22] sm:$0x3] (%p3050_p3) }
  0x29   : > { %343 = vst [vmem:[%s315_s23 + $0x6] sm:$0x3] %v2696_v19  ;;  %345 = vst [vmem:[%s315_s23 + $0x8] sm:$0x3] %v2697_v20  ;;  %v2699_v22 = vld [vmem:[%s2593_s22 + $0x28] sm:$0x3] }
  0x2a   : > { %347 = vst [vmem:[%s315_s23 + $0xa] sm:$0x3] %v2698_v21  ;;  %v2700_v23 = vld [vmem:[%s2593_s22 + $0x2e] sm:$0x3]  ;;  %349 = vst [vmem:[%s315_s23 + $0xc] sm:$0x3] %v2699_v22 }
  0x2b   : > { %351 = vst [vmem:[%s315_s23 + $0xe] sm:$0x3] %v2700_v23 }
  0x2c PF: > { %p2701_p6 = scmp.ge.s32.totalorder %s2993_s16, 1  ;;  %p389_p7 = scmp.lt.s32.totalorder %s2993_s16, 3 }
  0x2e   : > { %p390_p8 = pnand %p2701_p6, %p389_p7 }
  0x2f   : > { %s396_s18 = sand.u32 (!%p390_p8), 1, %s2977_s12   ;;  %v2995_v24 = vmov (!%p390_p8), 0.0   ;;  %vm2996_vm0 = vmmov (!%p390_p8), 0   ;;  %vm550_vm1 = vcmask (!%p390_p8), 1041409   ;;  %vm553_vm2 = vcmask (!%p390_p8), 1042434   ;;  %p444_p9 = scmp.lt.s32.totalorder (!%p390_p8), %s2985_s14, 1 }
  0x30   : > { %393 = sbr.rel (%p390_p8) target bundleno = 1078 (0x436), region = 143  ;;  %2846 = vmatprep.subr.bf16.mxu0 (!%p390_p8), %v2995_v24  ;;  %s3086_s24 = sshll.u32 (!%p390_p8), %s396_s18, 4  ;;  %2852 = vmatprep.subr.bf16.mxu1 (!%p390_p8), %v2995_v24  ;;  %vm556_vm3 = vcmask (!%p390_p8), 1043459   ;;  %vm559_vm4 = vcmask (!%p390_p8), 1044484   ;;  %vm562_vm5 = vcmask (!%p390_p8), 1045509   ;;  %vm565_vm6 = vcmask (!%p390_p8), 1046534  }
  0x31   : > { %s3090_s25 = scalar_lea.vmem (!%p390_p8), [#allocation3], %s3086_s24  ;;  %2848 = vmatprep.mubr.msk.bf16.mxu0 (!%p390_p8), %vm2996_vm0, %v2995_v24  ;;  %2854 = vmatprep.mubr.msk.bf16.mxu1 (!%p390_p8), %vm2996_vm0, %v2995_v24  ;;  %s3144_s12 = scalar_lea.vmem (!%p390_p8), [#allocation2], %s3086_s24  ;;  %vm568_vm7 = vcmask (!%p390_p8), 1047559   ;;  %vm658_vm8 = vcmask (!%p390_p8), 64512   ;;  %vm805_vm9 = vcmask (!%p390_p8), 1043456   ;;  %vm957_vm10 = vcmask (!%p390_p8), 57344  }
  0x32   : > { %v3093_v25 = vld.sshfl [vmem:[%s3090_s25] sm:$0x1 pattern:$0x76325410] (!%p390_p8)  ;;  %s3219_s26 = scalar_lea.vmem (!%p390_p8), [#allocation4], %s3086_s24  ;;  %vm2000_vm15 = vcmask (!%p390_p8), 58369  }
  0x33   : > { %v3100_v26 = vld.sshfl [vmem:[%s3090_s25 + $0x2] sm:$0x1 pattern:$0x76325410] (!%p390_p8)  ;;  %v635_v28 = vunpack.c.l.b16 (!%p390_p8), %v3093_v25  ;;  %vm958_vm11 = vsmask.f32 (!%p390_p8), 256 }
  0x34   : > { %v3103_v27 = vld.sshfl [vmem:[%s3090_s25 + $0x4] sm:$0x1 pattern:$0x76325410] (!%p390_p8)  ;;  %v636_v29 = vunpack.c.l.b16 (!%p390_p8), %v3100_v26  ;;  %vm3506_vm12 = vmand (!%p390_p8), %vm957_vm10, %vm958_vm11  ;;  %vm1479_vm13 = vsmask.f32 (!%p390_p8), 7938 }
  0x35   : > { %v3108_v30 = vld.sshfl [vmem:[%s3090_s25 + $0x6] sm:$0x1 pattern:$0x76325410] (!%p390_p8)  ;;  %v637_v31 = vunpack.c.l.b16 (!%p390_p8), %v3103_v27  ;;  %vm3558_vm14 = vmand (!%p390_p8), %vm957_vm10, %vm1479_vm13 }
  0x36   : > { %v3112_v32 = vld.sshfl [vmem:[%s3090_s25 + $0x8] sm:$0x1 pattern:$0x76325410] (!%p390_p8)  ;;  %v638_v33 = vunpack.c.l.b16 (!%p390_p8), %v3108_v30  ;;  %v643_v34 = vrot.slane (!%p390_p8), %v636_v29, 7 }
  0x37   : > { %v3118_v35 = vld.sshfl [vmem:[%s3090_s25 + $0xa] sm:$0x1 pattern:$0x76325410]  ;;  %v639_v36 = vunpack.c.l.b16 %v3112_v32  ;;  %v645_v37 = vrot.slane %v637_v31, 6  ;;  %s3734_s14 = smov (!%p444_p9, %s2985_s14), 1 }
  0x38   : > { %v3124_v38 = vld.sshfl [vmem:[%s3090_s25 + $0xc] sm:$0x1 pattern:$0x76325410]  ;;  %v640_v39 = vunpack.c.l.b16 %v3118_v35  ;;  %v644_v40 = vsel %vm550_vm1, %v643_v34, %v635_v28  ;;  %v647_v41 = vrot.slane %v638_v33, 5  ;;  %s2829_s27 = sshll.u32 %s3734_s14, 4 }
  0x39   : > { %v3133_v42 = vld.sshfl [vmem:[%s3090_s25 + $0xe] sm:$0x1 pattern:$0x76325410]  ;;  %v641_v43 = vunpack.c.l.b16 %v3124_v38  ;;  %v646_v44 = vsel %vm553_vm2, %v645_v37, %v644_v40  ;;  %v649_v45 = vrot.slane %v639_v36, 4  ;;  %v1173_v27 = vrot.slane %v639_v36, 5  ;;  %s3497_s30 = scalar_lea.vmem %s3717_s3, %s2829_s27 }
  0x3a   : > { %v642_v46 = vunpack.c.l.b16 %v3133_v42  ;;  %v648_v47 = vsel %vm556_vm3, %v647_v41, %v646_v44  ;;  %v651_v48 = vrot.slane %v640_v39, 3  ;;  %v3147_v49 = vld.sshfl [vmem:[%s3144_s12] sm:$0x1 pattern:$0x76325410] }
  0x3b   : > { %v650_v50 = vsel %vm559_vm4, %v649_v45, %v648_v47  ;;  %v653_v51 = vrot.slane %v641_v43, 2  ;;  %v3153_v52 = vld.sshfl [vmem:[%s3144_s12 + $0x2] sm:$0x1 pattern:$0x76325410]  ;;  %v541_v56 = vunpack.c.l.b16 %v3147_v49 }
  0x3c   : > { %v652_v53 = vsel %vm562_vm5, %v651_v48, %v650_v50  ;;  %v655_v54 = vrot.slane %v642_v46, 1  ;;  %v3159_v55 = vld.sshfl [vmem:[%s3144_s12 + $0x4] sm:$0x1 pattern:$0x76325410]  ;;  %v542_v57 = vunpack.c.l.b16 %v3153_v52 }
  0x3d   : > { %v654_v58 = vsel %vm565_vm6, %v653_v51, %v652_v53  ;;  %v3165_v59 = vld.sshfl [vmem:[%s3144_s12 + $0x6] sm:$0x1 pattern:$0x76325410]  ;;  %v543_v60 = vunpack.c.l.b16 %v3159_v55  ;;  %v1080_v26 = vrot.slane %v541_v56, 1 }
  0x3e   : > { %v656_v61 = vsel %vm568_vm7, %v655_v54, %v654_v58  ;;  %v3170_v62 = vld.sshfl [vmem:[%s3144_s12 + $0x8] sm:$0x1 pattern:$0x76325410]  ;;  %v544_v63 = vunpack.c.l.b16 %v3165_v59  ;;  %v549_v0 = vrot.slane %v542_v57, 7 }
  0x3f   : > { %v657_v1 = vpack.c.b16 %v656_v61, %v656_v61  ;;  %v3176_v2 = vld.sshfl [vmem:[%s3144_s12 + $0xa] sm:$0x1 pattern:$0x76325410]  ;;  %v545_v3 = vunpack.c.l.b16 %v3170_v62  ;;  %v552_v4 = vrot.slane %v543_v60, 6  ;;  %v1082_v49 = vrot.slane %v543_v60, 7 }
  0x40   : > { %v3182_v5 = vld.sshfl [vmem:[%s3144_s12 + $0xc] sm:$0x1 pattern:$0x76325410]  ;;  %v546_v6 = vunpack.c.l.b16 %v3176_v2  ;;  %v551_v7 = vsel %vm550_vm1, %v549_v0, %v541_v56  ;;  %v555_v8 = vrot.slane %v544_v63, 5 }
  0x41   : > { %v663_v9 = vsel %vm658_vm8, %v657_v1, 0  ;;  %v3192_v10 = vld.sshfl [vmem:[%s3144_s12 + $0xe] sm:$0x1 pattern:$0x76325410]  ;;  %v547_v11 = vunpack.c.l.b16 %v3182_v5  ;;  %v554_v12 = vsel %vm553_vm2, %v552_v4, %v551_v7  ;;  %v558_v13 = vrot.slane %v545_v3, 4 }
  0x42   : > { %2847 = vmatpush3.bf16.xpose.msra.mxu0 %v663_v9  ;;  %v548_v14 = vunpack.c.l.b16 %v3192_v10  ;;  %v557_v15 = vsel %vm556_vm3, %v555_v8, %v554_v12  ;;  %v561_v16 = vrot.slane %v546_v6, 3  ;;  %v3222_v45 = vld.sshfl [vmem:[%s3219_s26 + $0x2] sm:$0x1 pattern:$0x76325410] }
  0x43   : > { %v560_v17 = vsel %vm559_vm4, %v558_v13, %v557_v15  ;;  %v564_v18 = vrot.slane %v547_v11, 2  ;;  %2864 = vmatprep.subr.bf16.mxu0 %v2995_v24  ;;  %v3225_v47 = vld.sshfl [vmem:[%s3219_s26 + $0x4] sm:$0x1 pattern:$0x76325410]  ;;  %v780_v48 = vunpack.c.l.b16 %v3222_v45  ;;  %v1090_v2 = vrot.slane %v547_v11, 3 }
  0x44   : > { %v563_v19 = vsel %vm562_vm5, %v561_v16, %v560_v17  ;;  %v567_v20 = vrot.slane %v548_v14, 1  ;;  %v3229_v50 = vld.sshfl [vmem:[%s3219_s26] sm:$0x1 pattern:$0x76325410]  ;;  %v781_v51 = vunpack.c.l.b16 %v3225_v47 }
  0x45   : > { %v566_v21 = vsel %vm565_vm6, %v564_v18, %v563_v19  ;;  %v3233_v53 = vld.sshfl [vmem:[%s3219_s26 + $0x6] sm:$0x1 pattern:$0x76325410]  ;;  %v779_v54 = vunpack.c.l.b16 %v3229_v50  ;;  %v787_v58 = vrot.slane %v780_v48, 7 }
  0x46   : > { %v569_v22 = vsel %vm568_vm7, %v567_v20, %v566_v21  ;;  %v3239_v61 = vld.sshfl [vmem:[%s3219_s26 + $0x8] sm:$0x1 pattern:$0x76325410]  ;;  %v782_v0 = vunpack.c.l.b16 %v3233_v53  ;;  %v789_v1 = vrot.slane %v781_v51, 6 }
  0x47   : > { %v570_v23 = vpack.c.b16 %v569_v22, %v569_v22  ;;  %v3245_v4 = vld.sshfl [vmem:[%s3219_s26 + $0xa] sm:$0x1 pattern:$0x76325410]  ;;  %v783_v7 = vunpack.c.l.b16 %v3239_v61  ;;  %v788_v8 = vsel %vm550_vm1, %v787_v58, %v779_v54 }
  0x48   : > { %v3252_v9 = vld.sshfl [vmem:[%s3219_s26 + $0xc] sm:$0x1 pattern:$0x76325410]  ;;  %v784_v12 = vunpack.c.l.b16 %v3245_v4  ;;  %v790_v13 = vsel %vm553_vm2, %v789_v1, %v788_v8  ;;  %v791_v15 = vrot.slane %v782_v0, 5  ;;  %v1167_v8 = vrot.slane %v635_v28, 1 }
  0x49   : > { %2849 = vmatmul.mubr.msk.bf16.vlgmr.msra.gmra.mrb[0].mxu0 %vm658_vm8, %v570_v23  ;;  %v3259_v16 = vld.sshfl [vmem:[%s3219_s26 + $0xe] sm:$0x1 pattern:$0x76325410]  ;;  %v785_v17 = vunpack.c.l.b16 %v3252_v9  ;;  %v793_v18 = vrot.slane %v783_v7, 4 }
  0x4a   : > { %2866 = vmatprep.mubr.msk.bf16.mxu0 %vm2996_vm0, %v2995_v24  ;;  %v786_v19 = vunpack.c.l.b16 %v3259_v16  ;;  %v792_v20 = vsel %vm556_vm3, %v791_v15, %v790_v13  ;;  %v795_v21 = vrot.slane %v784_v12, 3  ;;  %v1169_v13 = vrot.slane %v637_v31, 7  ;;  %v2775_v15 = vld.sshfl [vmem:[%s3090_s25] sm:$0x2 pattern:$0x76325410] }
  0x4b   : > { %v794_v22 = vsel %vm559_vm4, %v793_v18, %v792_v20  ;;  %v797_v23 = vrot.slane %v785_v17, 2  ;;  %v1168_v18 = vsel %vm550_vm1, %v636_v29, %v1167_v8  ;;  %v2776_v20 = vld.sshfl [vmem:[%s3090_s25 + $0x2] sm:$0x2 pattern:$0x76325410]  ;;  %v1177_v8 = vrot.slane %v641_v43, 3 }
  0x4c   : > { %v1681_v25 = vunpack.c.l.b16 %v2776_v20  ;;  %v3296_v31 = vld.sshfl [vmem:[%s3090_s25 + $0x6] sm:$0x2 pattern:$0x76325410]  ;;  %v1084_v43 = vrot.slane %v544_v63, 6  ;;  %v1318_v50 = vrot.slane %v784_v12, 4 }
  0x4d   : > { %v2777_v29 = vld.sshfl [vmem:[%s3090_s25 + $0x4] sm:$0x2 pattern:$0x76325410]  ;;  %v1683_v32 = vunpack.c.l.b16 %v3296_v31 }
  0x4e   : > { %v3307_v36 = vld.sshfl [vmem:[%s3144_s12] sm:$0x2 pattern:$0x76325410]  ;;  %v1682_v56 = vunpack.c.l.b16 %v2777_v29 }
  0x4f   : > { %v1692_v52 = vrot.slane %v1683_v32, 7  ;;  %v3333_v20 = vld.sshfl [vmem:[%s3090_s25 + $0xc] sm:$0x2 pattern:$0x76325410] }
  0x50   : > { %v3344_v59 = vld.sshfl [vmem:[%s3144_s12 + $0x6] sm:$0x2 pattern:$0x76325410] }
  0x51   : > { %v2771_v62 = vld.sshfl [vmem:[%s3144_s12 + $0x8] sm:$0x2 pattern:$0x76325410] }
  0x52   : > { %v2785_v9 = vld.sshfl [vmem:[%s3219_s26 + $0x2] sm:$0x2 pattern:$0x76325410] }
 0x11c   : > { %v3214_v34 = vpop.f32.mrb[0].mxu0 }
 0x11d   : > { %v2850_v37 = vpop.f32.mrb[1].mxu0  ;;  %v705_v40 = vsel %vm658_vm8, %v3214_v34, -inf }
 0x11e   : > { %706 = vmax.xlane.f32.xlu0 %v705_v40  ;;  %v702_v41 = vpop.f32.mrb[2].mxu0  ;;  %v796_v37 = vsel %vm562_vm5, %v795_v21, %v794_v22  ;;  %v799_v40 = vrot.slane %v786_v19, 1  ;;  %v1171_v21 = vrot.slane %v638_v33, 6  ;;  %v1170_v22 = vsel %vm553_vm2, %v1169_v13, %v1168_v18 }
 0x11f   : > { %v2851_v44 = vpop.f32.mrb[3].mxu0  ;;  %v798_v41 = vsel %vm565_vm6, %v797_v23, %v796_v37  ;;  %v1680_v23 = vunpack.c.l.b16 %v2775_v15  ;;  %v1689_v37 = vrot.slane %v1681_v25, 1  ;;  %v1175_v33 = vrot.slane %v640_v39, 4 }
 0x120   : > { %v800_v44 = vsel %vm568_vm7, %v799_v40, %v798_v41  ;;  %v1172_v28 = vsel %vm556_vm3, %v1171_v21, %v1170_v22  ;;  %v3302_v40 = vld.sshfl [vmem:[%s3090_s25 + $0x8] sm:$0x2 pattern:$0x76325410]  ;;  %v1179_v18 = vrot.slane %v642_v46, 2  ;;  %v1086_v46 = vrot.slane %v545_v3, 5 }
 0x121   : > { %v801_v58 = vpack.c.b16 %v800_v44, %v800_v44  ;;  %v1688_v30 = vrot.slane %v1680_v23, 2  ;;  %v1174_v41 = vsel %vm559_vm4, %v1173_v27, %v1172_v28  ;;  %v2768_v44 = vld.sshfl [vmem:[%s3144_s12 + $0x2] sm:$0x2 pattern:$0x76325410]  ;;  %v1684_v55 = vunpack.c.l.b16 %v3302_v40 }
 0x122   : > { %v3320_v13 = vld.sshfl [vmem:[%s3090_s25 + $0xa] sm:$0x2 pattern:$0x76325410]  ;;  %v1594_v15 = vunpack.c.l.b16 %v2768_v44  ;;  %v2210_v28 = vrot.slane %v1680_v23, 3  ;;  %v1686_v23 = vunpack.c.l.b16 %v3333_v20  ;;  %v1596_v3 = vunpack.c.l.b16 %v3344_v59 }
 0x123   : > { %v807_v1 = vsel %vm805_vm9, %v801_v58, 0  ;;  %v1081_v58 = vsel %vm550_vm1, %v542_v57, %v1080_v26  ;;  %v1690_v35 = vsel %vm550_vm1, %v1689_v37, %v1688_v30  ;;  %v1593_v57 = vunpack.c.l.b16 %v3307_v36  ;;  %v3337_v22 = vld.sshfl [vmem:[%s3090_s25 + $0xe] sm:$0x2 pattern:$0x76325410] }
 0x124   : > { %2853 = vmatpush3.bf16.msra.mxu1 %v807_v1  ;;  %v1176_v1 = vsel %vm562_vm5, %v1175_v33, %v1174_v41  ;;  %v1083_v38 = vsel %vm553_vm2, %v1082_v49, %v1081_v58  ;;  %v1685_v27 = vunpack.c.l.b16 %v3320_v13  ;;  %v2211_v26 = vrot.slane %v1681_v25, 2  ;;  %v2769_v30 = vld.sshfl [vmem:[%s3144_s12 + $0x4] sm:$0x2 pattern:$0x76325410] }
 0x125   : > { %2858 = vmatprep.subr.bf16.mxu1 %v2995_v24  ;;  %v1178_v42 = vsel %vm565_vm6, %v1177_v8, %v1176_v1  ;;  %v1694_v29 = vrot.slane %v1684_v55, 6  ;;  %v1601_v37 = vrot.slane %v1593_v57, 2  ;;  %v1602_v33 = vrot.slane %v1594_v15, 1 }
 0x126   : > { %v1085_v40 = vsel %vm556_vm3, %v1084_v43, %v1083_v38  ;;  %v2213_v25 = vrot.slane %v1682_v56, 1  ;;  %v1180_v41 = vsel %vm568_vm7, %v1179_v18, %v1178_v42  ;;  %v1696_v36 = vrot.slane %v1685_v27, 5 }
 0x127   : > { %v2212_v49 = vsel %vm550_vm1, %v2211_v26, %v2210_v28  ;;  %v1088_v44 = vrot.slane %v546_v6, 4  ;;  %v1687_v58 = vunpack.c.l.b16 %v3337_v22  ;;  %v1087_v1 = vsel %vm559_vm4, %v1086_v46, %v1085_v40  ;;  %v2773_v22 = vld.sshfl [vmem:[%s3144_s12 + $0xc] sm:$0x2 pattern:$0x76325410] }
 0x128   : > { %v1181_v8 = vpack.c.b16 %v1180_v41, %v1180_v41  ;;  %v1698_v13 = vrot.slane %v1686_v23, 4  ;;  %v2214_v18 = vsel %vm553_vm2, %v2213_v25, %v2212_v49  ;;  %v1605_v38 = vrot.slane %v1596_v3, 7 }
 0x129   : > { %v1089_v43 = vsel %vm562_vm5, %v1088_v44, %v1087_v1  ;;  %v1700_v20 = vrot.slane %v1687_v58, 3  ;;  %v2215_v26 = vsel %vm556_vm3, %v1683_v32, %v2214_v18  ;;  %v2123_v42 = vrot.slane %v1593_v57, 3  ;;  %v2774_v32 = vld.sshfl [vmem:[%s3144_s12 + $0xe] sm:$0x2 pattern:$0x76325410] }
 0x12a   : > { %v2124_v46 = vrot.slane %v1594_v15, 2  ;;  %v1186_v5 = vsel %vm658_vm8, %v1181_v8, 0  ;;  %v1599_v57 = vunpack.c.l.b16 %v2773_v22  ;;  %v2222_v1 = vrot.slane %v1687_v58, 4 }
 0x12c   : > { %v2125_v41 = vsel %vm550_vm1, %v2124_v46, %v2123_v42  ;;  %v1611_v44 = vrot.slane %v1599_v57, 4 }
 0x1ab   : > { %v707_v39 = vpop.xlane.xlu0 %706 }
 0x1ac   : > { %v708_v60 = vsub.f32 %v3214_v34, %v707_v39  ;;  %v1691_v34 = vsel %vm553_vm2, %v1682_v56, %v1690_v35  ;;  %v1595_v39 = vunpack.c.l.b16 %v2769_v30  ;;  %v1603_v56 = vsel %vm550_vm1, %v1602_v33, %v1601_v37 }
 0x1ad   : > { %v1693_v63 = vsel %vm556_vm3, %v1692_v52, %v1691_v34  ;;  %v1597_v52 = vunpack.c.l.b16 %v2771_v62  ;;  %v2218_v37 = vrot.slane %v1685_v27, 6 }
 0x1ae   : > { %v709_v21 = vmul.f32 1.442695, %v708_v60  ;;  %v1695_v35 = vsel %vm559_vm4, %v1694_v29, %v1693_v63  ;;  %v2772_v60 = vld.sshfl [vmem:[%s3144_s12 + $0xa] sm:$0x2 pattern:$0x76325410]  ;;  %v1604_v34 = vsel %vm553_vm2, %v1595_v39, %v1603_v56  ;;  %v1091_v63 = vsel %vm565_vm6, %v1090_v2, %v1089_v43 }
 0x1af   : > { %v1697_v6 = vsel %vm562_vm5, %v1696_v36, %v1695_v35  ;;  %v1598_v28 = vunpack.c.l.b16 %v2772_v60  ;;  %v1607_v29 = vrot.slane %v1597_v52, 6  ;;  %v1606_v30 = vsel %vm556_vm3, %v1605_v38, %v1604_v34 }
 0x1b0   : > { %2939 = vpow2.f32 %v709_v21  ;;  %v2216_v21 = vrot.slane %v1684_v55, 7  ;;  %v1699_v11 = vsel %vm565_vm6, %v1698_v13, %v1697_v6  ;;  %v1092_v55 = vrot.slane %v548_v14, 2 }
 0x1b1   : > { %v2126_v33 = vrot.slane %v1595_v39, 1  ;;  %v1701_v40 = vsel %vm568_vm7, %v1700_v20, %v1699_v11  ;;  %v1609_v25 = vrot.slane %v1598_v28, 5  ;;  %v1608_v10 = vsel %vm559_vm4, %v1607_v29, %v1606_v30 }
 0x1b2   : > { %v2217_v15 = vsel %vm559_vm4, %v2216_v21, %v2215_v26  ;;  %v2220_v14 = vrot.slane %v1686_v23, 5  ;;  %v1093_v27 = vsel %vm568_vm7, %v1092_v55, %v1091_v63  ;;  %v1600_v36 = vunpack.c.l.b16 %v2774_v32 }
 0x1b3   : > { %v2219_v62 = vsel %vm562_vm5, %v2218_v37, %v2217_v15  ;;  %v1702_v49 = vpack.c.b16 %v1701_v40, %v1701_v40  ;;  %v2127_v35 = vsel %vm553_vm2, %v2126_v33, %v2125_v41  ;;  %v1610_v39 = vsel %vm562_vm5, %v1609_v25, %v1608_v10 }
 0x1b4   : > { %v1094_v56 = vpack.c.b16 %v1093_v27, %v1093_v27  ;;  %v2221_v23 = vsel %vm565_vm6, %v2220_v14, %v2219_v62  ;;  %v2129_v8 = vrot.slane %v1597_v52, 7  ;;  %v1613_v13 = vrot.slane %v1600_v36, 3 }
 0x1b5   : > { %v2128_v60 = vsel %vm556_vm3, %v1596_v3, %v2127_v35  ;;  %v1707_v18 = vsel %vm658_vm8, %v1702_v49, 0  ;;  %v1612_v2 = vsel %vm565_vm6, %v1611_v44, %v1610_v39  ;;  %v2223_v6 = vsel %vm568_vm7, %v2222_v1, %v2221_v23  ;;  %v2787_v1 = vld.sshfl [vmem:[%s3219_s26 + $0x6] sm:$0x2 pattern:$0x76325410] }
 0x1b6   : > { %v2131_v38 = vrot.slane %v1598_v28, 6  ;;  %v2130_v43 = vsel %vm559_vm4, %v2129_v8, %v2128_v60  ;;  %v1614_v58 = vsel %vm568_vm7, %v1613_v13, %v1612_v2  ;;  %v2224_v3 = vpack.c.b16 %v2223_v6, %v2223_v6 }
 0x1b7   : > { %v2133_v52 = vrot.slane %v1599_v57, 5  ;;  %v1615_v34 = vpack.c.b16 %v1614_v58, %v1614_v58  ;;  %v2135_v21 = vrot.slane %v1600_v36, 4  ;;  %v1312_v62 = vrot.slane %v781_v51, 7 }
 0x1b8   : > { %v2132_v20 = vsel %vm562_vm5, %v2131_v38, %v2130_v43  ;;  %v2229_v22 = vsel %vm658_vm8, %v2224_v3, 0  ;;  %v1314_v49 = vrot.slane %v782_v0, 6  ;;  %v1316_v35 = vrot.slane %v783_v7, 5 }
 0x1b9   : > { %v2134_v28 = vsel %vm565_vm6, %v2133_v52, %v2132_v20  ;;  %v1320_v51 = vrot.slane %v785_v17, 3  ;;  %v2784_v7 = vld.sshfl [vmem:[%s3219_s26] sm:$0x2 pattern:$0x76325410]  ;;  %v1824_v17 = vunpack.c.l.b16 %v2785_v9  ;;  %v1826_v8 = vunpack.c.l.b16 %v2787_v1 }
 0x1ba   : > { %v3373_v59 = vpop.eup %2939  ;;  %v2136_v26 = vsel %vm568_vm7, %v2135_v21, %v2134_v28  ;;  %v1823_v12 = vunpack.c.l.b16 %v2784_v7  ;;  %v2790_v43 = vld.sshfl [vmem:[%s3219_s26 + $0xc] sm:$0x2 pattern:$0x76325410] }
 0x1bb   : > { %v714_v31 = vpack.c.bf16 %v3373_v59, %v3373_v59  ;;  %v2137_v42 = vpack.c.b16 %v2136_v26, %v2136_v26  ;;  %v711_v32 = vsel %vm658_vm8, %v3373_v59, 0.0  ;;  %v1310_v59 = vrot.slane %v779_v54, 1  ;;  %v2791_v21 = vld.sshfl [vmem:[%s3219_s26 + $0xe] sm:$0x2 pattern:$0x76325410] }
 0x1bc   : > { %v1322_v54 = vrot.slane %v786_v19, 2  ;;  %v1831_v23 = vrot.slane %v1823_v12, 2  ;;  %v1832_v16 = vrot.slane %v1824_v17, 1  ;;  %v1835_v6 = vrot.slane %v1826_v8, 7 }
 0x1bd   : > { %2855 = vmatmul.mubr.msk.bf16.vlgmr.msra.gmra.mrb[0].mxu1 %vm658_vm8, %v714_v31  ;;  %v1311_v44 = vsel %vm550_vm1, %v780_v48, %v1310_v59  ;;  %v2788_v19 = vld.sshfl [vmem:[%s3219_s26 + $0x8] sm:$0x2 pattern:$0x76325410]  ;;  %v2353_v3 = vrot.slane %v1823_v12, 3  ;;  %v2354_v52 = vrot.slane %v1824_v17, 2 }
 0x1be   : > { %2859 = vmatpush3.bf16.xpose.msra.mxu1 %v1186_v5  ;;  %2860 = vmatprep.mubr.msk.bf16.mxu1 %vm2996_vm0, %v2995_v24  ;;  %v1313_v39 = vsel %vm553_vm2, %v1312_v62, %v1311_v44  ;;  %v1833_v60 = vsel %vm550_vm1, %v1832_v16, %v1831_v23  ;;  %v1827_v2 = vunpack.c.l.b16 %v2788_v19  ;;  %v856_v62 = vlaneseq }
 0x1bf   : > { %2870 = vmatprep.subr.bf16.mxu1 %v2995_v24  ;;  %v1315_v47 = vsel %vm556_vm3, %v1314_v49, %v1313_v39 }
 0x1c0   : > { %v1317_v45 = vsel %vm559_vm4, %v1316_v35, %v1315_v47  ;;  %v1837_v20 = vrot.slane %v1827_v2, 6 }
 0x1c1   : > { %v1319_v48 = vsel %vm562_vm5, %v1318_v50, %v1317_v45  ;;  %v857_v45 = vshrl.u32 %v856_v62, 7 }
 0x1c2   : > { %v1321_v53 = vsel %vm565_vm6, %v1320_v51, %v1319_v48 }
 0x1c3   : > { %v1323_v61 = vsel %vm568_vm7, %v1322_v54, %v1321_v53 }
 0x1c4   : > { %v1324_v0 = vpack.c.b16 %v1323_v61, %v1323_v61 }
 0x1c5   : > { %2861 = vmatmul.mubr.msk.bf16.vlgmr.msra.gmra.mrb[4].mxu1 %vm658_vm8, %v1094_v56  ;;  %v2786_v56 = vld.sshfl [vmem:[%s3219_s26 + $0x4] sm:$0x2 pattern:$0x76325410] }
 0x1c6   : > { %2871 = vmatpush3.bf16.xpose.msra.mxu1 %v1707_v18  ;;  %2872 = vmatprep.mubr.msk.bf16.mxu1 %vm2996_vm0, %v2995_v24  ;;  %v1329_v4 = vsel %vm805_vm9, %v1324_v0, 0  ;;  %v1825_v13 = vunpack.c.l.b16 %v2786_v56  ;;  %v2789_v18 = vld.sshfl [vmem:[%s3219_s26 + $0xa] sm:$0x2 pattern:$0x76325410] }
 0x1c7   : > { %2882 = vmatprep.subr.bf16.mxu1 %v2995_v24  ;;  %2865 = vmatpush3.bf16.msra.mxu0 %v1329_v4  ;;  %v1828_v58 = vunpack.c.l.b16 %v2789_v18  ;;  %v2998_v0 = vmov 857870592  }
 0x1c8   : > { %2876 = vmatprep.subr.bf16.mxu0 %v2995_v24  ;;  %v1834_v38 = vsel %vm553_vm2, %v1825_v13, %v1833_v60  ;;  %v2356_v28 = vrot.slane %v1825_v13, 1 }
 0x1c9   : > { %v1839_v26 = vrot.slane %v1828_v58, 5 }
 0x1cd   : > { %2873 = vmatmul.mubr.msk.bf16.vlgmr.msra.gmra.mrb[8].mxu1 %vm658_vm8, %v1615_v34  ;;  %v1836_v34 = vsel %vm556_vm3, %v1835_v6, %v1834_v38 }
 0x1ce   : > { %2883 = vmatpush3.bf16.xpose.msra.mxu1 %v2229_v22  ;;  %2884 = vmatprep.mubr.msk.bf16.mxu1 %vm2996_vm0, %v2995_v24  ;;  %v1829_v22 = vunpack.c.l.b16 %v2790_v43 }
 0x1d0   : > { %v2363_v35 = vrot.slane %v1829_v22, 5 }
 0x1d5   : > { %2885 = vmatmul.mubr.msk.bf16.vlgmr.msra.gmra.mrb[12].mxu1 %vm658_vm8, %v2137_v42  ;;  %v2355_v42 = vsel %vm550_vm1, %v2354_v52, %v2353_v3 }
 0x290   : > { %v3413_v46 = vpop.f32.mrb[0].mxu1 }
 0x291   : > { %v2856_v5 = vpop.f32.mrb[1].mxu1 }
 0x292   : > { %v846_v11 = vpop.f32.mrb[2].mxu1 }
 0x293   : > { %v2857_v29 = vpop.f32.mrb[3].mxu1  ;;  %v1838_v11 = vsel %vm559_vm4, %v1837_v20, %v1836_v34 }
 0x298   : > { %v3415_v63 = vpop.f32.mrb[4].mxu1 }
 0x299   : > { %v2862_v55 = vpop.f32.mrb[5].mxu1  ;;  %v1228_v30 = vsel %vm658_vm8, %v3415_v63, -inf }
 0x29a   : > { %1229 = vmax.xlane.f32.xlu0 %v1228_v30  ;;  %v1225_v37 = vpop.f32.mrb[6].mxu1  ;;  %v1830_v55 = vunpack.c.l.b16 %v2791_v21  ;;  %v1841_v30 = vrot.slane %v1829_v22, 4  ;;  %v960_v21 = vld [vmem:[%s3497_s30] sm:$0x1] }
 0x29b   : > { %v2863_v31 = vpop.f32.mrb[7].mxu1  ;;  %v2357_v37 = vsel %vm553_vm2, %v2356_v28, %v2355_v42  ;;  %vm2522_vm2 = vsmask.f32 7942 }
 0x29c   : > { %v2365_v48 = vrot.slane %v1830_v55, 4 }
 0x29e   : > { %712 = vadd.xlane.f32.xlu0 %v711_v32  ;;  %v1840_v32 = vsel %vm562_vm5, %v1839_v26, %v1838_v11 }
 0x2a0   : > { %v3421_v57 = vpop.f32.mrb[8].mxu1 }
 0x2a1   : > { %v2874_v15 = vpop.f32.mrb[9].mxu1  ;;  %v1749_v33 = vsel %vm658_vm8, %v3421_v57, -inf }
 0x2a2   : > { %1750 = vmax.xlane.f32.xlu1 %v1749_v33  ;;  %v1746_v40 = vpop.f32.mrb[10].mxu1  ;;  %v2359_v33 = vrot.slane %v1827_v2, 7 }
 0x2a3   : > { %v2875_v25 = vpop.f32.mrb[11].mxu1  ;;  %v1843_v40 = vrot.slane %v1830_v55, 3  ;;  %v963_v55 = vld [vmem:[%s3497_s30 + $0x2] sm:$0x1] }
 0x2a4   : > { %v2358_v25 = vsel %vm556_vm3, %v1826_v8, %v2357_v37  ;;  %v972_v37 = vld [vmem:[%s3497_s30 + $0x8] sm:$0x1]  ;;  %vm3655_vm3 = vmand %vm2000_vm15, %vm2522_vm2 }
 0x2a8   : > { %v3425_v41 = vpop.f32.mrb[12].mxu1 }
 0x2a9   : > { %v2886_v10 = vpop.f32.mrb[13].mxu1  ;;  %v2271_v14 = vsel %vm658_vm8, %v3425_v41, -inf }
 0x2aa   : > { %2272 = vmax.xlane.f32.xlu1 %v2271_v14  ;;  %v2268_v27 = vpop.f32.mrb[14].mxu1  ;;  %v1842_v10 = vsel %vm565_vm6, %v1841_v30, %v1840_v32  ;;  %v2361_v14 = vrot.slane %v1828_v58, 6  ;;  %v966_v30 = vld [vmem:[%s3497_s30 + $0x4] sm:$0x1] }
 0x2ab   : > { %v2887_v36 = vpop.f32.mrb[15].mxu1  ;;  %v1844_v44 = vsel %vm568_vm7, %v1843_v40, %v1842_v10  ;;  %v969_v40 = vld [vmem:[%s3497_s30 + $0x6] sm:$0x1]  ;;  %v978_v10 = vld [vmem:[%s3497_s30 + $0xc] sm:$0x1] }
 0x2ac   : > { %v2997_v36 = vmov 1966171168   ;;  %v1845_v47 = vpack.c.b16 %v1844_v44, %v1844_v44 }
 0x2ad   : > { %v854_v59 = vunpack.c.l.s4 %v2997_v36 }
 0x2ae   : > { %v1850_v12 = vsel %vm805_vm9, %v1845_v47, 0 }
 0x2af   : > { %v855_v51 = vunpack.c.0.s8 %v854_v59 }
 0x2b1   : > { %v3483_v17 = vsub.s32 %v855_v51, %v857_v45 }
 0x327   : > { %v1230_v5 = vpop.xlane.xlu0 %1229 }
 0x328   : > { %v1231_v29 = vsub.f32 %v3415_v63, %v1230_v5  ;;  %v2360_v63 = vsel %vm559_vm4, %v2359_v33, %v2358_v25  ;;  %v975_v25 = vld [vmem:[%s3497_s30 + $0xa] sm:$0x1] }
 0x329   : > { %v2362_v50 = vsel %vm562_vm5, %v2361_v14, %v2360_v63 }
 0x32a   : > { %v1232_v31 = vmul.f32 1.442695, %v1231_v29  ;;  %v2364_v53 = vsel %vm565_vm6, %v2363_v35, %v2362_v50  ;;  %v981_v35 = vld [vmem:[%s3497_s30 + $0xe] sm:$0x1] }
 0x32b   : > { %v713_v15 = vpop.xlane.xlu0 %712  ;;  %v2366_v23 = vsel %vm568_vm7, %v2365_v48, %v2364_v53 }
 0x32c   : > { %2941 = vpow2.f32 %v1232_v31  ;;  %v2367_v13 = vpack.c.b16 %v2366_v23, %v2366_v23 }
 0x32d   : > { %2943 = vrcp.f32 %v713_v15 }
 0x32e   : > { %v2372_v43 = vsel %vm805_vm9, %v2367_v13, 0 }
 0x32f   : > { %v1751_v27 = vpop.xlane.xlu1 %1750 }
 0x330   : > { %v1752_v49 = vsub.f32 %v3421_v57, %v1751_v27  ;;  %v894_v57 = vunpack.c.l.s4 %v2998_v0 }
 0x332   : > { %v1753_v39 = vmul.f32 1.442695, %v1752_v49  ;;  %v895_v8 = vunpack.c.0.s8 %v894_v57 }
 0x334   : > { %2945 = vpow2.f32 %v1753_v39  ;;  %v3499_v2 = vsub.s32 %v895_v8, %v857_v45 }
 0x336   : > { %v2942_v54 = vpop.eup %2941 }
 0x337   : > { %v2944_v61 = vpop.eup %2943  ;;  %v2273_v4 = vpop.xlane.xlu1 %2272  ;;  %v1234_v7 = vsel %vm658_vm8, %v2942_v54, 0.0  ;;  %v1237_v9 = vpack.c.bf16 %v2942_v54, %v2942_v54 }
 0x338   : > { %v850_v1 = vmul.f32 %v2944_v61, %v3413_v46  ;;  %v2274_v56 = vsub.f32 %v3425_v41, %v2273_v4  ;;  %1235 = vadd.xlane.f32.xlu0 %v1234_v7 }
 0x339   : > { %2867 = vmatmul.mubr.msk.bf16.vlgmr.msra.gmra.mrb[4].mxu0 %vm658_vm8, %v1237_v9 }
 0x33a   : > { %v851_v16 = vpack.c.bf16 %v850_v1, %v850_v1  ;;  %v2275_v19 = vmul.f32 1.442695, %v2274_v56  ;;  %2877 = vmatpush3.bf16.msra.mxu0 %v1850_v12  ;;  %2878 = vmatprep.mubr.msk.bf16.mxu0 %vm2996_vm0, %v2995_v24 }
 0x33b   : > { %2888 = vmatprep.subr.bf16.mxu0 %v2995_v24 }
 0x33c   : > { %v859_v46 = vrot.slane %v851_v16, %v3483_v17  ;;  %2947 = vpow2.f32 %v2275_v19 }
 0x33e   : > { %v2946_v41 = vpop.eup %2945  ;;  %v860_v60 = vcombine.high %v859_v46, %v859_v46  ;;  %v867_v18 = vrot.slane %v859_v46, %v3483_v17 }
 0x33f   : > { %v1755_v6 = vsel %vm658_vm8, %v2946_v41, 0.0  ;;  %v1758_v38 = vpack.c.bf16 %v2946_v41, %v2946_v41 }
 0x340   : > { %v874_v58 = vrot.slane %v860_v60, %v3483_v17  ;;  %v875_v3 = vcombine.high %v867_v18, %v867_v18  ;;  %v878_v52 = vunpack.i.h.s16 %v867_v18  ;;  %v2733_v20 = vpack.i.b16 %v867_v18, %v867_v18  ;;  %1756 = vadd.xlane.f32.xlu1 %v1755_v6 }
 0x341   : > { %2879 = vmatmul.mubr.msk.bf16.vlgmr.msra.gmra.mrb[8].mxu0 %vm658_vm8, %v1758_v38 }
 0x342   : > { %v876_v22 = vcombine.high %v874_v58, %v874_v58  ;;  %v880_v28 = vunpack.i.h.s16 %v874_v58  ;;  %v882_v26 = vunpack.i.h.s16 %v875_v3  ;;  %v886_v42 = vpack.i.b16 %v878_v52, %v878_v52  ;;  %2889 = vmatpush3.bf16.msra.mxu0 %v2372_v43  ;;  %2890 = vmatprep.mubr.msk.bf16.mxu0 %vm2996_vm0, %v2995_v24 }
 0x343   : > { %v2734_v5 = vpack.i.b16 %v874_v58, %v874_v58  ;;  %v2735_v11 = vpack.i.b16 %v875_v3, %v875_v3  ;;  %v899_v29 = vrot.slane %v2733_v20, %v3499_v2  ;;  %vm2001_vm0 = vsmask.f32 1280 }
 0x344   : > { %v884_v31 = vunpack.i.h.s16 %v876_v22  ;;  %v888_v32 = vpack.i.b16 %v880_v28, %v880_v28  ;;  %v890_v15 = vpack.i.b16 %v882_v26, %v882_v26  ;;  %v2736_v33 = vpack.i.b16 %v876_v22, %v876_v22  ;;  %vm3607_vm1 = vmand %vm2000_vm15, %vm2001_vm0  ;;  %v2006_v28 = vld [vmem:[%s3497_s30 + $0x2] sm:$0x2] }
 0x345   : > { %v906_v14 = vrot.slane %v886_v42, %v3499_v2  ;;  %v913_v24 = vrot.slane %v2734_v5, %v3499_v2  ;;  %v927_v27 = vrot.slane %v2735_v11, %v3499_v2  ;;  %v961_v63 = vsel %vm3506_vm12, %v899_v29, %v960_v21 }
 0x346   : > { %v2948_v36 = vpop.eup %2947  ;;  %v892_v59 = vpack.i.b16 %v884_v31, %v884_v31  ;;  %v920_v62 = vrot.slane %v888_v32, %v3499_v2  ;;  %v934_v49 = vrot.slane %v890_v15, %v3499_v2  ;;  %v941_v44 = vrot.slane %v2736_v33, %v3499_v2  ;;  %962 = vst [vmem:[%s3497_s30] sm:$0x1] %v961_v63 }
 0x347   : > { %v964_v39 = vsel %vm3506_vm12, %v906_v14, %v963_v55  ;;  %v967_v50 = vsel %vm3506_vm12, %v913_v24, %v966_v30  ;;  %v973_v47 = vsel %vm3506_vm12, %v927_v27, %v972_v37  ;;  %v2277_v51 = vsel %vm658_vm8, %v2948_v36, 0.0 }
 0x348   : > { %v948_v45 = vrot.slane %v892_v59, %v3499_v2  ;;  %v970_v48 = vsel %vm3506_vm12, %v920_v62, %v969_v40  ;;  %v976_v53 = vsel %vm3506_vm12, %v934_v49, %v975_v25  ;;  %v979_v54 = vsel %vm3506_vm12, %v941_v44, %v978_v10  ;;  %965 = vst [vmem:[%s3497_s30 + $0x2] sm:$0x1] %v964_v39 }
 0x349   : > { %968 = vst [vmem:[%s3497_s30 + $0x4] sm:$0x1] %v967_v50  ;;  %974 = vst [vmem:[%s3497_s30 + $0x8] sm:$0x1] %v973_v47  ;;  %2278 = vadd.xlane.f32.xlu1 %v2277_v51  ;;  %v2280_v61 = vpack.c.bf16 %v2948_v36, %v2948_v36 }
 0x34a   : > { %971 = vst [vmem:[%s3497_s30 + $0x6] sm:$0x1] %v970_v48  ;;  %977 = vst [vmem:[%s3497_s30 + $0xa] sm:$0x1] %v976_v53  ;;  %v982_v0 = vsel %vm3506_vm12, %v948_v45, %v981_v35 }
 0x34b   : > { %980 = vst [vmem:[%s3497_s30 + $0xc] sm:$0x1] %v979_v54  ;;  %983 = vst [vmem:[%s3497_s30 + $0xe] sm:$0x1] %v982_v0  ;;  %2891 = vmatmul.mubr.msk.bf16.vlgmr.msra.gmra.mrb[12].mxu0 %vm658_vm8, %v2280_v61 }
 0x34d   : > { %v1481_v32 = vld [vmem:[%s3497_s30] sm:$0x1] }
 0x34f   : > { %v1484_v63 = vld [vmem:[%s3497_s30 + $0x2] sm:$0x1] }
 0x350   : > { %v1487_v36 = vld [vmem:[%s3497_s30 + $0x4] sm:$0x1]  ;;  %v1493_v59 = vld [vmem:[%s3497_s30 + $0x8] sm:$0x1] }
 0x351   : > { %v1490_v44 = vld [vmem:[%s3497_s30 + $0x6] sm:$0x1]  ;;  %v1496_v39 = vld [vmem:[%s3497_s30 + $0xa] sm:$0x1] }
 0x352   : > { %v1499_v50 = vld [vmem:[%s3497_s30 + $0xc] sm:$0x1]  ;;  %v1502_v61 = vld [vmem:[%s3497_s30 + $0xe] sm:$0x1] }
 0x3c5   : > { %v1236_v57 = vpop.xlane.xlu0 %1235 }
 0x3c6   : > { %2949 = vrcp.f32 %v1236_v57 }
 0x3cd   : > { %v1757_v4 = vpop.xlane.xlu1 %1756 }
 0x3ce   : > { %2951 = vrcp.f32 %v1757_v4 }
 0x3d0   : > { %v2950_v7 = vpop.eup %2949 }
 0x3d6   : > { %v2279_v19 = vpop.xlane.xlu1 %2278 }
 0x3d7   : > { %2953 = vrcp.f32 %v2279_v19 }
 0x3d8   : > { %v2952_v60 = vpop.eup %2951 }
 0x3e1   : > { %v2954_v54 = vpop.eup %2953 }
 0x40c   : > { %v1365_v9 = vpop.f32.mrb[4].mxu0 }
 0x40d   : > { %v1372_v12 = vmul.f32 %v2950_v7, %v1365_v9  ;;  %v2868_v1 = vpop.f32.mrb[5].mxu0 }
 0x40e   : > { %v1368_v56 = vpop.f32.mrb[6].mxu0 }
 0x40f   : > { %v1373_v23 = vpack.c.bf16 %v1372_v12, %v1372_v12  ;;  %v2869_v16 = vpop.f32.mrb[7].mxu0 }
 0x411   : > { %v1381_v8 = vrot.slane %v1373_v23, %v3483_v17 }
 0x413   : > { %v1382_v13 = vcombine.high %v1381_v8, %v1381_v8  ;;  %v1389_v46 = vrot.slane %v1381_v8, %v3483_v17 }
 0x414   : > { %v1886_v41 = vpop.f32.mrb[8].mxu0 }
 0x415   : > { %v1396_v18 = vrot.slane %v1382_v13, %v3483_v17  ;;  %v1397_v6 = vcombine.high %v1389_v46, %v1389_v46  ;;  %v1400_v38 = vunpack.i.h.s16 %v1389_v46  ;;  %v2763_v43 = vpack.i.b16 %v1389_v46, %v1389_v46  ;;  %v2880_v58 = vpop.f32.mrb[9].mxu0 }
 0x416   : > { %v1893_v3 = vmul.f32 %v2952_v60, %v1886_v41  ;;  %v1889_v52 = vpop.f32.mrb[10].mxu0 }
 0x417   : > { %v1398_v20 = vcombine.high %v1396_v18, %v1396_v18  ;;  %v1402_v34 = vunpack.i.h.s16 %v1396_v18  ;;  %v1404_v21 = vunpack.i.h.s16 %v1397_v6  ;;  %v1408_v22 = vpack.i.b16 %v1400_v38, %v1400_v38  ;;  %v2881_v26 = vpop.f32.mrb[11].mxu0  ;;  %v2003_v38 = vld [vmem:[%s3497_s30] sm:$0x2] }
 0x418   : > { %v2764_v42 = vpack.i.b16 %v1396_v18, %v1396_v18  ;;  %v2765_v5 = vpack.i.b16 %v1397_v6, %v1397_v6  ;;  %v1421_v11 = vrot.slane %v2763_v43, %v3499_v2  ;;  %v1894_v29 = vpack.c.bf16 %v1893_v3, %v1893_v3  ;;  %v2009_v26 = vld [vmem:[%s3497_s30 + $0x4] sm:$0x2] }
 0x419   : > { %v1406_v55 = vunpack.i.h.s16 %v1398_v20  ;;  %v1410_v30 = vpack.i.b16 %v1402_v34, %v1402_v34  ;;  %v1412_v37 = vpack.i.b16 %v1404_v21, %v1404_v21  ;;  %v2766_v31 = vpack.i.b16 %v1398_v20, %v1398_v20 }
 0x41a   : > { %v1428_v15 = vrot.slane %v1408_v22, %v3499_v2  ;;  %v1435_v33 = vrot.slane %v2764_v42, %v3499_v2  ;;  %v1449_v40 = vrot.slane %v2765_v5, %v3499_v2  ;;  %v1482_v25 = vsel %vm3558_vm14, %v1421_v11, %v1481_v32  ;;  %v2015_v42 = vld [vmem:[%s3497_s30 + $0x8] sm:$0x2] }
 0x41b   : > { %v1414_v10 = vpack.i.b16 %v1406_v55, %v1406_v55  ;;  %v1442_v14 = vrot.slane %v1410_v30, %v3499_v2  ;;  %v1456_v24 = vrot.slane %v1412_v37, %v3499_v2  ;;  %v1463_v27 = vrot.slane %v2766_v31, %v3499_v2  ;;  %1483 = vst [vmem:[%s3497_s30] sm:$0x1] %v1482_v25  ;;  %v2012_v30 = vld [vmem:[%s3497_s30 + $0x6] sm:$0x2]  ;;  %v2018_v37 = vld [vmem:[%s3497_s30 + $0xa] sm:$0x2] }
 0x41c   : > { %v1485_v62 = vsel %vm3558_vm14, %v1428_v15, %v1484_v63  ;;  %v1488_v49 = vsel %vm3558_vm14, %v1435_v33, %v1487_v36  ;;  %v1494_v35 = vsel %vm3558_vm14, %v1449_v40, %v1493_v59  ;;  %v1902_v47 = vrot.slane %v1894_v29, %v3483_v17  ;;  %v2021_v31 = vld [vmem:[%s3497_s30 + $0xc] sm:$0x2] }
 0x41d   : > { %v1470_v51 = vrot.slane %v1414_v10, %v3499_v2  ;;  %1486 = vst [vmem:[%s3497_s30 + $0x2] sm:$0x1] %v1485_v62  ;;  %1489 = vst [vmem:[%s3497_s30 + $0x4] sm:$0x1] %v1488_v49  ;;  %v1491_v45 = vsel %vm3558_vm14, %v1442_v14, %v1490_v44  ;;  %v1497_v48 = vsel %vm3558_vm14, %v1456_v24, %v1496_v39  ;;  %v2024_v24 = vld [vmem:[%s3497_s30 + $0xe] sm:$0x2] }
 0x41e   : > { %1495 = vst [vmem:[%s3497_s30 + $0x8] sm:$0x1] %v1494_v35  ;;  %v1500_v53 = vsel %vm3558_vm14, %v1463_v27, %v1499_v50  ;;  %1492 = vst [vmem:[%s3497_s30 + $0x6] sm:$0x1] %v1491_v45  ;;  %v1903_v0 = vcombine.high %v1902_v47, %v1902_v47  ;;  %v1910_v57 = vrot.slane %v1902_v47, %v3483_v17  ;;  %v2408_v4 = vpop.f32.mrb[12].mxu0 }
 0x41f   : > { %1498 = vst [vmem:[%s3497_s30 + $0xa] sm:$0x1] %v1497_v48  ;;  %1501 = vst [vmem:[%s3497_s30 + $0xc] sm:$0x1] %v1500_v53  ;;  %v1503_v7 = vsel %vm3558_vm14, %v1470_v51, %v1502_v61  ;;  %v2415_v9 = vmul.f32 %v2954_v54, %v2408_v4  ;;  %v2892_v12 = vpop.f32.mrb[13].mxu0 }
 0x420   : > { %1504 = vst [vmem:[%s3497_s30 + $0xe] sm:$0x1] %v1503_v7  ;;  %v1917_v1 = vrot.slane %v1903_v0, %v3483_v17  ;;  %v1918_v56 = vcombine.high %v1910_v57, %v1910_v57  ;;  %v1921_v23 = vunpack.i.h.s16 %v1910_v57  ;;  %v2793_v16 = vpack.i.b16 %v1910_v57, %v1910_v57  ;;  %v2411_v19 = vpop.f32.mrb[14].mxu0 }
 0x421   : > { %v2416_v8 = vpack.c.bf16 %v2415_v9, %v2415_v9  ;;  %v2893_v13 = vpop.f32.mrb[15].mxu0 }
 0x422   : > { %v1919_v46 = vcombine.high %v1917_v1, %v1917_v1  ;;  %v1923_v41 = vunpack.i.h.s16 %v1917_v1  ;;  %v1925_v60 = vunpack.i.h.s16 %v1918_v56  ;;  %v1929_v18 = vpack.i.b16 %v1921_v23, %v1921_v23 }
 0x423   : > { %v2794_v43 = vpack.i.b16 %v1917_v1, %v1917_v1  ;;  %v2795_v58 = vpack.i.b16 %v1918_v56, %v1918_v56  ;;  %v1942_v3 = vrot.slane %v2793_v16, %v3499_v2  ;;  %v2424_v52 = vrot.slane %v2416_v8, %v3483_v17 }
 0x424   : > { %v1927_v20 = vunpack.i.h.s16 %v1919_v46  ;;  %v1931_v34 = vpack.i.b16 %v1923_v41, %v1923_v41  ;;  %v1933_v21 = vpack.i.b16 %v1925_v60, %v1925_v60  ;;  %v2796_v22 = vpack.i.b16 %v1919_v46, %v1919_v46 }
 0x425   : > { %v1949_v5 = vrot.slane %v1929_v18, %v3499_v2  ;;  %v1956_v11 = vrot.slane %v2794_v43, %v3499_v2  ;;  %v1970_v29 = vrot.slane %v2795_v58, %v3499_v2  ;;  %v2004_v55 = vsel %vm3607_vm1, %v1942_v3, %v2003_v38 }
 0x426   : > { %v1935_v32 = vpack.i.b16 %v1927_v20, %v1927_v20  ;;  %v1963_v15 = vrot.slane %v1931_v34, %v3499_v2  ;;  %v1977_v33 = vrot.slane %v1933_v21, %v3499_v2  ;;  %v1984_v40 = vrot.slane %v2796_v22, %v3499_v2  ;;  %2005 = vst [vmem:[%s3497_s30] sm:$0x2] %v2004_v55 }
 0x427   : > { %v2007_v25 = vsel %vm3607_vm1, %v1949_v5, %v2006_v28  ;;  %v2010_v10 = vsel %vm3607_vm1, %v1956_v11, %v2009_v26  ;;  %v2016_v14 = vsel %vm3607_vm1, %v1970_v29, %v2015_v42  ;;  %v2425_v27 = vcombine.high %v2424_v52, %v2424_v52 }
 0x428   : > { %v1991_v63 = vrot.slane %v1935_v32, %v3499_v2  ;;  %2008 = vst [vmem:[%s3497_s30 + $0x2] sm:$0x2] %v2007_v25  ;;  %2011 = vst [vmem:[%s3497_s30 + $0x4] sm:$0x2] %v2010_v10  ;;  %v2013_v36 = vsel %vm3607_vm1, %v1963_v15, %v2012_v30  ;;  %v2019_v59 = vsel %vm3607_vm1, %v1977_v33, %v2018_v37 }
 0x429   : > { %2017 = vst [vmem:[%s3497_s30 + $0x8] sm:$0x2] %v2016_v14  ;;  %v2022_v62 = vsel %vm3607_vm1, %v1984_v40, %v2021_v31  ;;  %2014 = vst [vmem:[%s3497_s30 + $0x6] sm:$0x2] %v2013_v36  ;;  %v2432_v49 = vrot.slane %v2424_v52, %v3483_v17  ;;  %v2439_v44 = vrot.slane %v2425_v27, %v3483_v17 }
 0x42a   : > { %2020 = vst [vmem:[%s3497_s30 + $0xa] sm:$0x2] %v2019_v59  ;;  %2023 = vst [vmem:[%s3497_s30 + $0xc] sm:$0x2] %v2022_v62  ;;  %v2025_v35 = vsel %vm3607_vm1, %v1991_v63, %v2024_v24 }
 0x42b   : > { %2026 = vst [vmem:[%s3497_s30 + $0xe] sm:$0x2] %v2025_v35  ;;  %v2440_v39 = vcombine.high %v2432_v49, %v2432_v49  ;;  %v2441_v50 = vcombine.high %v2439_v44, %v2439_v44  ;;  %v2443_v47 = vunpack.i.h.s16 %v2432_v49  ;;  %v2445_v51 = vunpack.i.h.s16 %v2439_v44 }
 0x42c   : > { %v2823_v45 = vpack.i.b16 %v2432_v49, %v2432_v49  ;;  %v2824_v48 = vpack.i.b16 %v2439_v44, %v2439_v44 }
 0x42d   : > { %v2447_v53 = vunpack.i.h.s16 %v2440_v39  ;;  %v2449_v54 = vunpack.i.h.s16 %v2441_v50  ;;  %v2451_v61 = vpack.i.b16 %v2443_v47, %v2443_v47  ;;  %v2453_v0 = vpack.i.b16 %v2445_v51, %v2445_v51  ;;  %v2524_v57 = vld [vmem:[%s3497_s30] sm:$0x2] }
 0x42e   : > { %v2825_v4 = vpack.i.b16 %v2440_v39, %v2440_v39  ;;  %v2826_v7 = vpack.i.b16 %v2441_v50, %v2441_v50  ;;  %v2464_v9 = vrot.slane %v2823_v45, %v3499_v2  ;;  %v2478_v12 = vrot.slane %v2824_v48, %v3499_v2 }
 0x42f   : > { %v2455_v1 = vpack.i.b16 %v2447_v53, %v2447_v53  ;;  %v2457_v56 = vpack.i.b16 %v2449_v54, %v2449_v54  ;;  %v2471_v23 = vrot.slane %v2451_v61, %v3499_v2  ;;  %v2485_v16 = vrot.slane %v2453_v0, %v3499_v2  ;;  %v2527_v19 = vld [vmem:[%s3497_s30 + $0x2] sm:$0x2]  ;;  %v2530_v8 = vld [vmem:[%s3497_s30 + $0x4] sm:$0x2] }
 0x430   : > { %v2536_v13 = vld [vmem:[%s3497_s30 + $0x8] sm:$0x2]  ;;  %v2492_v46 = vrot.slane %v2825_v4, %v3499_v2  ;;  %v2506_v41 = vrot.slane %v2826_v7, %v3499_v2  ;;  %v2525_v60 = vsel %vm3655_vm3, %v2464_v9, %v2524_v57  ;;  %v2531_v18 = vsel %vm3655_vm3, %v2478_v12, %v2530_v8  ;;  %v2533_v6 = vld [vmem:[%s3497_s30 + $0x6] sm:$0x2] }
 0x431   : > { %v2539_v38 = vld [vmem:[%s3497_s30 + $0xa] sm:$0x2]  ;;  %v2542_v43 = vld [vmem:[%s3497_s30 + $0xc] sm:$0x2]  ;;  %v2499_v58 = vrot.slane %v2455_v1, %v3499_v2  ;;  %v2513_v3 = vrot.slane %v2457_v56, %v3499_v2  ;;  %2526 = vst [vmem:[%s3497_s30] sm:$0x2] %v2525_v60  ;;  %v2528_v52 = vsel %vm3655_vm3, %v2471_v23, %v2527_v19  ;;  %v2534_v20 = vsel %vm3655_vm3, %v2485_v16, %v2533_v6 }
 0x432   : > { %2532 = vst [vmem:[%s3497_s30 + $0x4] sm:$0x2] %v2531_v18  ;;  %2529 = vst [vmem:[%s3497_s30 + $0x2] sm:$0x2] %v2528_v52  ;;  %v2537_v34 = vsel %vm3655_vm3, %v2492_v46, %v2536_v13  ;;  %v2543_v21 = vsel %vm3655_vm3, %v2506_v41, %v2542_v43  ;;  %v2545_v22 = vld [vmem:[%s3497_s30 + $0xe] sm:$0x2] }
 0x433   : > { %2535 = vst [vmem:[%s3497_s30 + $0x6] sm:$0x2] %v2534_v20  ;;  %2538 = vst [vmem:[%s3497_s30 + $0x8] sm:$0x2] %v2537_v34  ;;  %v2540_v2 = vsel %vm3655_vm3, %v2499_v58, %v2539_v38  ;;  %v2546_v28 = vsel %vm3655_vm3, %v2513_v3, %v2545_v22 }
 0x434   : > { %2544 = vst [vmem:[%s3497_s30 + $0xc] sm:$0x2] %v2543_v21  ;;  %2541 = vst [vmem:[%s3497_s30 + $0xa] sm:$0x2] %v2540_v2 }
 0x435   : > { %2547 = vst [vmem:[%s3497_s30 + $0xe] sm:$0x2] %v2546_v28 }
 0x436 PF: > { %s13_s16 = sadd.s32 1, %s2993_s16   ;;  %s3727_s12 = smov %s2981_s13 }
 0x437   : > { %p10_p10 = scmp.ge.s32.totalorder %s13_s16, 4   ;;  %s3728_s13 = smov %s3058_s21 }
 0x438   : > { %s3729_s14 = smov %s2989_s15  ;;  %s3730_s15 = smov %s3732_s17 }
 0x439   :  { %12 = sbr.rel (!%p10_p10) target bundleno = 3 (0x3), region = 206 }

// kernel: _lambda_.26
= control target key start
LH: loop header
LB: loop body
LE: loop exit
PB: predicated region body
PF: predicated region fallthrough
CT: control target
= control target key end

     0   :  { %vm19_vm0 = vcmask 523264   ;;  %v153_v0 = vmov 0.0   ;;  %vm154_vm1 = vmmov 0   ;;  %vm47_vm2 = vcmask 261120   ;;  %s197_s1 = inlined_call_operand.vmem [shape: bf16[32,64], index: 1, kind: input, shape index: {}]   ;;  %s198_s0 = inlined_call_operand.vmem [shape: bf16[16,32], index: 0, kind: input, shape index: {}]   ;;  %s199_s2 = inlined_call_operand.vmem [shape: f32[1,64], index: 2, kind: input, shape index: {}]   ;;  %s200_s3 = inlined_call_operand.vmem [shape: bf16[16,64], index: 3, kind: output, shape index: {}]  }
   0x1   :  { %140 = vmatprep.subr.bf16.mxu0 %v153_v0  ;;  %v150_v1 = vld [vmem:[%s197_s1] sm:$0xff]   ;;  %144 = vmatprep.mubr.msk.bf16.mxu0 %vm154_vm1, %v153_v0  ;;  %20 = vst.msk [vmem:[#allocation2] sm:$0xff] %vm19_vm0, %v153_v0  ;;  %21 = vst.msk [vmem:[#allocation2 + $0x8] sm:$0xff] %vm19_vm0, %v153_v0  ;;  %v151_v2 = vld [vmem:[%s197_s1 + $0x8] sm:$0xff]   ;;  %vm121_vm3 = vcmask 519168  }
   0x2   :  { %141 = vmatpush3.bf16.msra.mxu0 %v150_v1  ;;  %v152_v3 = vld [vmem:[%s198_s0] sm:$0xff]  }
   0x3   :  { %142 = vmatprep.subr.bf16.mxu0 %v153_v0  ;;  %v132_v12 = vld [vmem:[%s199_s2] ss:$0 sm:$0xff] }
   0x6   :  { %143 = vmatpush3.bf16.msra.mxu0 %v151_v2 }
   0x8   :  { %v22_v4 = vld [vmem:[#allocation2] sm:$0xff]  ;;  %v23_v6 = vld [vmem:[#allocation2 + $0x8] sm:$0xff] }
   0x9   :  { %145 = vmatmul.mubr.msk.bf16.vlgmr.msra.gmra.mrb[0].mxu0 %vm47_vm2, %v152_v3 }
  0xdc   :  { %v85_v5 = vpop.f32.mrb[0].mxu0 }
  0xdd   :  { %v92_v7 = vadd.f32 %v85_v5, %v22_v4  ;;  %v146_v8 = vpop.f32.mrb[1].mxu0 }
  0xde   :  { %v88_v9 = vpop.f32.mrb[2].mxu0 }
  0xdf   :  { %95 = vst.msk [vmem:[#allocation2] sm:$0xff] %vm19_vm0, %v92_v7  ;;  %v93_v10 = vadd.f32 %v88_v9, %v23_v6  ;;  %v147_v11 = vpop.f32.mrb[3].mxu0 }
  0xe1   :  { %96 = vst.msk [vmem:[#allocation2 + $0x8] sm:$0xff] %vm19_vm0, %v93_v10 }
  0xe6   :  { %v100_v13 = vld [vmem:[#allocation2] sm:$0xff] }
  0xe7   :  { %v109_v14 = vadd.f32 %v132_v12, %v100_v13 }
  0xe8   :  { %v101_v15 = vld [vmem:[#allocation2 + $0x8] sm:$0xff] }
  0xe9   :  { %v111_v16 = vmax.f32 %v109_v14, 0.0  ;;  %v110_v17 = vadd.f32 %v132_v12, %v101_v15 }
  0xeb   :  { %v135_v18 = vpack.c.bf16 %v111_v16, %v111_v16  ;;  %v112_v19 = vmax.f32 %v110_v17, 0.0 }
  0xed   :  { %122 = vst.msk [vmem:[%s200_s3] sm:$0xf] %vm121_vm3, %v135_v18  ;;  %v136_v20 = vpack.c.bf16 %v112_v19, %v112_v19 }
  0xef   :  { %123 = vst.msk [vmem:[%s200_s3 + $0x4] sm:$0xf] %vm121_vm3, %v136_v20 }

// kernel: _lambda_.27
= control target key start
LH: loop header
LB: loop body
LE: loop exit
PB: predicated region body
PF: predicated region fallthrough
CT: control target
= control target key end

     0   :  { %vm28_vm0 = vcmask 261120   ;;  %v247_v0 = vmov 0.0   ;;  %vm248_vm1 = vmmov 0   ;;  %vm72_vm2 = vcmask 523264   ;;  %s325_s1 = inlined_call_operand.vmem [shape: bf16[64,32], index: 1, kind: input, shape index: {}]   ;;  %s326_s0 = inlined_call_operand.vmem [shape: bf16[16,64], index: 0, kind: input, shape index: {}]   ;;  %s327_s3 = inlined_call_operand.vmem [shape: bf16[16,32], index: 3, kind: input, shape index: {}]   ;;  %s328_s2 = inlined_call_operand.vmem [shape: f32[1,32], index: 2, kind: input, shape index: {}]   ;;  %s329_s4 = inlined_call_operand.vmem [shape: f32[1,32], index: 4, kind: input, shape index: {}]   ;;  %s330_s5 = inlined_call_operand.vmem [shape: f32[1,32], index: 5, kind: input, shape index: {}]   ;;  %s331_s6 = inlined_call_operand.vmem [shape: bf16[16,32], index: 6, kind: output, shape index: {}]  }
   0x1   :  { %224 = vmatprep.subr.bf16.mxu0 %v247_v0  ;;  %v238_v1 = vld [vmem:[%s325_s1] sm:$0xff]   ;;  %232 = vmatprep.mubr.msk.bf16.mxu0 %vm248_vm1, %v247_v0  ;;  %29 = vst.msk [vmem:[#allocation2] sm:$0xff] %vm28_vm0, %v247_v0  ;;  %30 = vst.msk [vmem:[#allocation2 + $0x8] sm:$0xff] %vm28_vm0, %v247_v0  ;;  %v239_v2 = vld [vmem:[%s325_s1 + $0x8] sm:$0xff]   ;;  %vm195_vm3 = vcmask 257024  }
   0x2   :  { %225 = vmatpush3.bf16.msra.mxu0 %v238_v1  ;;  %v240_v3 = vld [vmem:[%s325_s1 + $0x10] sm:$0xff]   ;;  %v241_v4 = vld [vmem:[%s325_s1 + $0x18] sm:$0xff]   ;;  %v242_v5 = vld [vmem:[%s326_s0] sm:$0xff]  }
   0x3   :  { %226 = vmatprep.subr.bf16.mxu0 %v247_v0  ;;  %v216_v14 = vld [vmem:[%s327_s3] sm:$0xff]  }
   0x4   :  { %v208_v15 = vld [vmem:[%s328_s2] ss:$0 sm:$0xff]  ;;  %v217_v16 = vunpack.c.l.bf16 %v216_v14  ;;  %v218_v19 = vunpack.c.h.bf16 %v216_v14 }
   0x5   :  { %v209_v43 = vld [vmem:[%s329_s4] ss:$0 sm:$0xff] }
   0x6   :  { %227 = vmatpush3.bf16.msra.mxu0 %v239_v2  ;;  %v210_v45 = vld [vmem:[%s330_s5] ss:$0 sm:$0xff] }
   0x7   :  { %228 = vmatprep.subr.bf16.mxu0 %v247_v0 }
   0x8   :  { %v31_v6 = vld [vmem:[#allocation2] sm:$0xff]  ;;  %v32_v8 = vld [vmem:[#allocation2 + $0x8] sm:$0xff] }
   0xa   :  { %229 = vmatpush3.bf16.msra.mxu0 %v240_v3 }
   0xb   :  { %230 = vmatprep.subr.bf16.mxu0 %v247_v0 }
   0xe   :  { %231 = vmatpush3.bf16.msra.mxu0 %v241_v4 }
  0x11   :  { %233 = vmatmul.mubr.msk.bf16.vlgmr.msra.gmra.mrb[0].mxu0 %vm72_vm2, %v242_v5 }
  0xe4   :  { %v110_v7 = vpop.f32.mrb[0].mxu0 }
  0xe5   :  { %v117_v9 = vadd.f32 %v110_v7, %v31_v6  ;;  %v234_v10 = vpop.f32.mrb[1].mxu0 }
  0xe6   :  { %v113_v11 = vpop.f32.mrb[2].mxu0 }
  0xe7   :  { %120 = vst.msk [vmem:[#allocation2] sm:$0xff] %vm28_vm0, %v117_v9  ;;  %v118_v12 = vadd.f32 %v113_v11, %v32_v8  ;;  %v235_v13 = vpop.f32.mrb[3].mxu0 }
  0xe9   :  { %121 = vst.msk [vmem:[#allocation2 + $0x8] sm:$0xff] %vm28_vm0, %v118_v12 }
  0xee   :  { %v125_v17 = vld [vmem:[#allocation2] sm:$0xff] }
  0xef   :  { %v134_v18 = vadd.f32 %v208_v15, %v125_v17 }
  0xf0   :  { %v126_v20 = vld [vmem:[#allocation2 + $0x8] sm:$0xff] }
  0xf1   :  { %v140_v21 = vadd.f32 %v217_v16, %v134_v18  ;;  %v135_v22 = vadd.f32 %v208_v15, %v126_v20 }
  0xf3   :  { %v142_v23 = vsel %vm28_vm0, %v140_v21, 0.0  ;;  %v141_v24 = vadd.f32 %v218_v19, %v135_v22 }
  0xf4   :  { %143 = vadd.xlane.f32.xlu0 %v142_v23 }
  0xf5   :  { %v145_v25 = vsel %vm28_vm0, %v141_v24, 0.0 }
  0xf8   :  { %146 = vadd.xlane.f32.xlu0 %v145_v25 }
 0x181   :  { %v144_v26 = vpop.xlane.xlu0 %143 }
 0x182   :  { %v149_v27 = vmul.f32 0.03125, %v144_v26 }
 0x184   :  { %v151_v28 = vsub.f32 %v140_v21, %v149_v27 }
 0x185   :  { %v147_v29 = vpop.xlane.xlu0 %146 }
 0x186   :  { %v150_v30 = vmul.f32 0.03125, %v147_v29  ;;  %v153_v31 = vmul.f32 %v151_v28, %v151_v28 }
 0x188   :  { %v152_v32 = vsub.f32 %v141_v24, %v150_v30  ;;  %v155_v33 = vsel %vm28_vm0, %v153_v31, 0.0 }
 0x189   :  { %156 = vadd.xlane.f32.xlu1 %v155_v33 }
 0x18a   :  { %v154_v34 = vmul.f32 %v152_v32, %v152_v32 }
 0x18c   :  { %v158_v35 = vsel %vm28_vm0, %v154_v34, 0.0 }
 0x18d   :  { %159 = vadd.xlane.f32.xlu1 %v158_v35 }
 0x216   :  { %v157_v36 = vpop.xlane.xlu1 %156 }
 0x217   :  { %v161_v37 = vmul.f32 0.03125, %v157_v36 }
 0x219   :  { %v163_v38 = vadd.f32 1e-05, %v161_v37 }
 0x21a   :  { %v160_v39 = vpop.xlane.xlu1 %159 }
 0x21b   :  { %243 = vrsqrt.f32 %v163_v38  ;;  %v162_v40 = vmul.f32 0.03125, %v160_v39 }
 0x21d   :  { %v164_v41 = vadd.f32 1e-05, %v162_v40 }
 0x21f   :  { %245 = vrsqrt.f32 %v164_v41 }
 0x225   :  { %v244_v42 = vpop.eup %243 }
 0x226   :  { %v167_v44 = vmul.f32 %v244_v42, %v151_v28 }
 0x228   :  { %v176_v46 = vmul.f32 %v209_v43, %v167_v44 }
 0x229   :  { %v246_v47 = vpop.eup %245 }
 0x22a   :  { %v185_v48 = vadd.f32 %v210_v45, %v176_v46  ;;  %v168_v49 = vmul.f32 %v246_v47, %v152_v32 }
 0x22c   :  { %v213_v50 = vpack.c.bf16 %v185_v48, %v185_v48  ;;  %v177_v51 = vmul.f32 %v209_v43, %v168_v49 }
 0x22e   :  { %196 = vst.msk [vmem:[%s331_s6] sm:$0xf] %vm195_vm3, %v213_v50  ;;  %v186_v52 = vadd.f32 %v210_v45, %v177_v51 }
 0x230   :  { %v214_v53 = vpack.c.bf16 %v186_v52, %v186_v52 }
 0x232   :  { %197 = vst.msk [vmem:[%s331_s6 + $0x4] sm:$0xf] %vm195_vm3, %v214_v53 }

// kernel: _lambda_.37
= control target key start
LH: loop header
LB: loop body
LE: loop exit
PB: predicated region body
PF: predicated region fallthrough
CT: control target
= control target key end

     0   :  { %vm18_vm0 = vcmask 261120   ;;  %s121_s0 = inlined_call_operand.vmem [shape: bf16[16,32], index: 0, kind: input, shape index: {}]   ;;  %s122_s1 = inlined_call_operand.vmem [shape: f32[1,32], index: 1, kind: input, shape index: {}]   ;;  %s123_s2 = inlined_call_operand.vmem [shape: f32[1,32], index: 2, kind: input, shape index: {}]   ;;  %s124_s3 = inlined_call_operand.vmem [shape: f32[16,32], index: 3, kind: output, shape index: {}]  }
   0x1   :  { %v73_v0 = vld [vmem:[%s121_s0] sm:$0xff]  }
   0x2   :  { %v74_v1 = vunpack.c.l.bf16 %v73_v0  ;;  %v75_v2 = vunpack.c.h.bf16 %v73_v0  ;;  %v70_v22 = vld [vmem:[%s122_s1] ss:$0 sm:$0xff] }
   0x3   :  { %v71_v24 = vld [vmem:[%s123_s2] ss:$0 sm:$0xff] }
   0x4   :  { %v19_v3 = vsel %vm18_vm0, %v74_v1, 0.0  ;;  %v22_v4 = vsel %vm18_vm0, %v75_v2, 0.0 }
   0x5   :  { %20 = vadd.xlane.f32.xlu0 %v19_v3 }
   0x9   :  { %23 = vadd.xlane.f32.xlu0 %v22_v4 }
  0x92   :  { %v21_v5 = vpop.xlane.xlu0 %20 }
  0x93   :  { %v26_v6 = vmul.f32 0.03125, %v21_v5 }
  0x95   :  { %v28_v7 = vsub.f32 %v74_v1, %v26_v6 }
  0x96   :  { %v24_v8 = vpop.xlane.xlu0 %23 }
  0x97   :  { %v27_v9 = vmul.f32 0.03125, %v24_v8  ;;  %v30_v10 = vmul.f32 %v28_v7, %v28_v7 }
  0x99   :  { %v29_v11 = vsub.f32 %v75_v2, %v27_v9  ;;  %v32_v12 = vsel %vm18_vm0, %v30_v10, 0.0 }
  0x9a   :  { %33 = vadd.xlane.f32.xlu1 %v32_v12 }
  0x9b   :  { %v31_v13 = vmul.f32 %v29_v11, %v29_v11 }
  0x9d   :  { %v35_v14 = vsel %vm18_vm0, %v31_v13, 0.0 }
  0x9e   :  { %36 = vadd.xlane.f32.xlu1 %v35_v14 }
 0x127   :  { %v34_v15 = vpop.xlane.xlu1 %33 }
 0x128   :  { %v38_v16 = vmul.f32 0.03125, %v34_v15 }
 0x12a   :  { %v40_v17 = vadd.f32 1e-05, %v38_v16 }
 0x12b   :  { %v37_v18 = vpop.xlane.xlu1 %36 }
 0x12c   :  { %76 = vrsqrt.f32 %v40_v17  ;;  %v39_v19 = vmul.f32 0.03125, %v37_v18 }
 0x12e   :  { %v41_v20 = vadd.f32 1e-05, %v39_v19 }
 0x130   :  { %78 = vrsqrt.f32 %v41_v20 }
 0x136   :  { %v77_v21 = vpop.eup %76 }
 0x137   :  { %v44_v23 = vmul.f32 %v77_v21, %v28_v7 }
 0x139   :  { %v53_v25 = vmul.f32 %v70_v22, %v44_v23 }
 0x13a   :  { %v79_v26 = vpop.eup %78 }
 0x13b   :  { %v62_v27 = vadd.f32 %v71_v24, %v53_v25  ;;  %v45_v28 = vmul.f32 %v79_v26, %v29_v11 }
 0x13d   :  { %64 = vst.msk [vmem:[%s124_s3] sm:$0xff] %vm18_vm0, %v62_v27  ;;  %v54_v29 = vmul.f32 %v70_v22, %v45_v28 }
 0x13f   :  { %v63_v30 = vadd.f32 %v71_v24, %v54_v29 }
 0x141   :  { %65 = vst.msk [vmem:[%s124_s3 + $0x8] sm:$0xff] %vm18_vm0, %v63_v30 }

// kernel: _lambda_.24
= control target key start
LH: loop header
LB: loop body
LE: loop exit
PB: predicated region body
PF: predicated region fallthrough
CT: control target
= control target key end

     0   :  { %s2948_s12 = smov 0   ;;  %s2950_s13 = smov 0   ;;  %s3643_s0 = inlined_call_operand.vmem [shape: bf16[2,8,4,8], index: 0, kind: input, shape index: {}]   ;;  %s3644_s1 = inlined_call_operand.vmem [shape: bf16[2,8,2,4,8], index: 1, kind: input, shape index: {}, may-alias: {1,2}]   ;;  %s3645_s2 = inlined_call_operand.vmem [shape: bf16[2,8,2,4,8], index: 2, kind: input, shape index: {}, may-alias: {1,2}]   ;;  %s3646_s3 = inlined_call_operand.vmem [shape: bf16[2,8,4,8], index: 3, kind: output, shape index: {}]  }
   0x1   :  { %s2952_s14 = smov 0   ;;  %s2954_s15 = smov 0  }
   0x2   :  { %s2956_s16 = smov 0  }
   0x3 LB: > { %s25_s17 = sadd.s32 1, %s2918_s15  ;;  %p69_p1 = scmp.ne.s32.totalorder %s2910_s13, %s2906_s12  ;;  %s2922_s16 = sphi %s2956_s16, %s13_s16   ;;  %s2918_s15 = sphi %s2954_s15, %s3659_s15   ;;  %s2914_s14 = sphi %s2952_s14, %s3658_s14   ;;  %s2910_s13 = sphi %s2950_s13, %s3657_s13   ;;  %s2906_s12 = sphi %s2948_s12, %s3656_s12  }
   0x4   : > { %p27_p0 = scmp.ge.s32.totalorder %s25_s17, 2  ;;  %p70_p2 = scmp.eq.s32.totalorder %s2922_s16, 0 }
   0x5   : > { %s62_s20 = sadd.s32 1, %s2910_s13  ;;  %p2612_p5 = scmp.ge.s32.totalorder %s2922_s16, 2 }
   0x6   : > { %s3661_s17 = smov (%p27_p0, %s25_s17), 0  ;;  %p2979_p3 = por %p70_p2, %p69_p1 }
   0x7   : > { %s57_s19 = ssub.s32 %s2918_s15, %s3661_s17  ;;  %151 = sbr.rel (%p2612_p5) target bundleno = 32 (0x20), region = 16 }
   0x8   : > { %p60_p4 = scmp.eq.s32.totalorder %s57_s19, 0 }
   0xa   : > { %s2987_s21 = scalar_select %p60_p4, %s2910_s13, %s62_s20  }
   0xe   : > { %165 = sbr.rel (!%p2979_p3) target bundleno = 23 (0x17), region = 24  ;;  %s167_s22 = sand.u32 (%p2979_p3), 1, %s2910_s13  }
   0xf   : > { %s2756_s23 = sshll.u32 (%p2979_p3), %s2918_s15, 5  ;;  %s2613_s24 = sshll.u32 (%p2979_p3), %s167_s22, 4 }
  0x10   : > { %s173_s27 = scalar_lea.vmem (%p2979_p3), %s3644_s1, %s2756_s23  ;;  %s169_s28 = scalar_lea.vmem (%p2979_p3), [#allocation2], %s2613_s24 }
  0x11   : > { %v189_v0 = vld [vmem:[%s173_s27] sm:$0x3] (%p2979_p3)  ;;  %v191_v1 = vld [vmem:[%s173_s27 + $0x4] sm:$0x3] (%p2979_p3)  ;;  %v193_v2 = vld [vmem:[%s173_s27 + $0x8] sm:$0x3] (%p2979_p3) }
  0x12   : > { %190 = vst [vmem:[%s169_s28] sm:$0x3] (%p2979_p3), %v189_v0  ;;  %192 = vst [vmem:[%s169_s28 + $0x2] sm:$0x3] (%p2979_p3), %v191_v1  ;;  %v195_v3 = vld [vmem:[%s173_s27 + $0xc] sm:$0x3] (%p2979_p3) }
  0x13   : > { %v197_v4 = vld [vmem:[%s173_s27 + $0x10] sm:$0x3] (%p2979_p3)  ;;  %194 = vst [vmem:[%s169_s28 + $0x4] sm:$0x3] (%p2979_p3), %v193_v2  ;;  %196 = vst [vmem:[%s169_s28 + $0x6] sm:$0x3] (%p2979_p3), %v195_v3 }
  0x14   : > { %198 = vst [vmem:[%s169_s28 + $0x8] sm:$0x3] (%p2979_p3), %v197_v4  ;;  %v199_v5 = vld [vmem:[%s173_s27 + $0x14] sm:$0x3] (%p2979_p3)  ;;  %v201_v6 = vld [vmem:[%s173_s27 + $0x18] sm:$0x3] (%p2979_p3) }
  0x15   : > { %v203_v7 = vld [vmem:[%s173_s27 + $0x1c] sm:$0x3]  ;;  %200 = vst [vmem:[%s169_s28 + $0xa] sm:$0x3] %v199_v5  ;;  %202 = vst [vmem:[%s169_s28 + $0xc] sm:$0x3] %v201_v6 }
  0x16   : > { %204 = vst [vmem:[%s169_s28 + $0xe] sm:$0x3] %v203_v7 }
  0x17 PF: > { %243 = sbr.rel (!%p2979_p3) target bundleno = 32 (0x20), region = 65  ;;  %s245_s29 = sand.u32 (%p2979_p3), 1, %s2910_s13  }
  0x18   : > { %s2757_s30 = sshll.u32 (%p2979_p3), %s2918_s15, 5  ;;  %s2616_s4 = sshll.u32 (%p2979_p3), %s245_s29, 4 }
  0x19   : > { %s2527_s7 = scalar_lea.vmem (%p2979_p3), %s3645_s2, %s2757_s30  ;;  %s247_s8 = scalar_lea.vmem (%p2979_p3), [#allocation3], %s2616_s4 }
  0x1a   : > { %v2619_v8 = vld [vmem:[%s2527_s7 + $0x2] sm:$0x3] (%p2979_p3)  ;;  %v2620_v9 = vld [vmem:[%s2527_s7 + $0x6] sm:$0x3] (%p2979_p3)  ;;  %v2621_v10 = vld [vmem:[%s2527_s7 + $0xa] sm:$0x3] (%p2979_p3) }
  0x1b   : > { %269 = vst [vmem:[%s247_s8] sm:$0x3] (%p2979_p3), %v2619_v8  ;;  %271 = vst [vmem:[%s247_s8 + $0x2] sm:$0x3] (%p2979_p3), %v2620_v9  ;;  %v2622_v11 = vld [vmem:[%s2527_s7 + $0xe] sm:$0x3] (%p2979_p3) }
  0x1c   : > { %v2623_v12 = vld [vmem:[%s2527_s7 + $0x12] sm:$0x3] (%p2979_p3)  ;;  %273 = vst [vmem:[%s247_s8 + $0x4] sm:$0x3] (%p2979_p3), %v2621_v10  ;;  %275 = vst [vmem:[%s247_s8 + $0x6] sm:$0x3] (%p2979_p3), %v2622_v11 }
  0x1d   : > { %277 = vst [vmem:[%s247_s8 + $0x8] sm:$0x3] (%p2979_p3), %v2623_v12  ;;  %v2624_v13 = vld [vmem:[%s2527_s7 + $0x16] sm:$0x3] (%p2979_p3)  ;;  %v2625_v14 = vld [vmem:[%s2527_s7 + $0x1a] sm:$0x3] (%p2979_p3) }
  0x1e   : > { %v2626_v15 = vld [vmem:[%s2527_s7 + $0x1e] sm:$0x3]  ;;  %279 = vst [vmem:[%s247_s8 + $0xa] sm:$0x3] %v2624_v13  ;;  %281 = vst [vmem:[%s247_s8 + $0xc] sm:$0x3] %v2625_v14 }
  0x1f   : > { %283 = vst [vmem:[%s247_s8 + $0xe] sm:$0x3] %v2626_v15 }
  0x20 PF: > { %p2627_p6 = scmp.ge.s32.totalorder %s2922_s16, 1  ;;  %p321_p7 = scmp.lt.s32.totalorder %s2922_s16, 3 }
  0x22   : > { %p322_p8 = pnand %p2627_p6, %p321_p7 }
  0x23   : > { %s328_s9 = sand.u32 (!%p322_p8), 1, %s2906_s12   ;;  %p373_p9 = scmp.lt.s32.totalorder (!%p322_p8), %s2914_s14, 1  ;;  %v2924_v16 = vmov (!%p322_p8), 0.0   ;;  %vm2925_vm0 = vmmov (!%p322_p8), 0   ;;  %vm487_vm1 = vcmask (!%p322_p8), 1041409   ;;  %vm490_vm2 = vcmask (!%p322_p8), 1042434  }
  0x24   : > { %325 = sbr.rel (%p322_p8) target bundleno = 1066 (0x42a), region = 106  ;;  %2776 = vmatprep.subr.bf16.mxu0 (!%p322_p8), %v2924_v16  ;;  %s3009_s10 = sshll.u32 (!%p322_p8), %s328_s9, 4  ;;  %2782 = vmatprep.subr.bf16.mxu1 (!%p322_p8), %v2924_v16  ;;  %vm493_vm3 = vcmask (!%p322_p8), 1043459   ;;  %vm496_vm4 = vcmask (!%p322_p8), 1044484   ;;  %vm499_vm5 = vcmask (!%p322_p8), 1045509   ;;  %vm502_vm6 = vcmask (!%p322_p8), 1046534  }
  0x25   : > { %s3013_s11 = scalar_lea.vmem (!%p322_p8), [#allocation2], %s3009_s10  ;;  %2778 = vmatprep.mubr.msk.bf16.mxu0 (!%p322_p8), %vm2925_vm0, %v2924_v16  ;;  %2784 = vmatprep.mubr.msk.bf16.mxu1 (!%p322_p8), %vm2925_vm0, %v2924_v16  ;;  %vm505_vm7 = vcmask (!%p322_p8), 1047559   ;;  %vm595_vm8 = vcmask (!%p322_p8), 64512   ;;  %s3150_s22 = scalar_lea.vmem (!%p322_p8), [#allocation3], %s3009_s10  ;;  %vm742_vm9 = vcmask (!%p322_p8), 1043456   ;;  %vm894_vm10 = vcmask (!%p322_p8), 57344  }
  0x26   : > { %v3016_v17 = vld.sshfl [vmem:[%s3013_s11] sm:$0x1 pattern:$0x76325410] (!%p322_p8)  ;;  %vm895_vm11 = vsmask.f32 (!%p322_p8), 256 }
  0x27   : > { %v3026_v18 = vld.sshfl [vmem:[%s3013_s11 + $0x2] sm:$0x1 pattern:$0x76325410] (!%p322_p8)  ;;  %v572_v20 = vunpack.c.l.b16 (!%p322_p8), %v3016_v17  ;;  %vm3435_vm12 = vmand (!%p322_p8), %vm894_vm10, %vm895_vm11  ;;  %vm1416_vm13 = vsmask.f32 (!%p322_p8), 7938 }
  0x28   : > { %v3029_v19 = vld.sshfl [vmem:[%s3013_s11 + $0x4] sm:$0x1 pattern:$0x76325410] (!%p322_p8)  ;;  %v573_v21 = vunpack.c.l.b16 (!%p322_p8), %v3026_v18  ;;  %vm3487_vm14 = vmand (!%p322_p8), %vm894_vm10, %vm1416_vm13  ;;  %vm1937_vm15 = vcmask (!%p322_p8), 58369  }
  0x29   : > { %v3034_v22 = vld.sshfl [vmem:[%s3013_s11 + $0x6] sm:$0x1 pattern:$0x76325410] (!%p322_p8)  ;;  %v574_v23 = vunpack.c.l.b16 (!%p322_p8), %v3029_v19 }
  0x2a   : > { %v3039_v24 = vld.sshfl [vmem:[%s3013_s11 + $0x8] sm:$0x1 pattern:$0x76325410] (!%p322_p8)  ;;  %v575_v25 = vunpack.c.l.b16 (!%p322_p8), %v3034_v22  ;;  %v580_v26 = vrot.slane (!%p322_p8), %v573_v21, 7 }
  0x2b   : > { %s3663_s14 = smov (!%p373_p9, %s2914_s14), 1  ;;  %v3045_v27 = vld.sshfl [vmem:[%s3013_s11 + $0xa] sm:$0x1 pattern:$0x76325410]  ;;  %v576_v28 = vunpack.c.l.b16 %v3039_v24  ;;  %v582_v29 = vrot.slane %v574_v23, 6 }
  0x2c   : > { %s2758_s12 = sshll.u32 %s3663_s14, 4  ;;  %v3051_v30 = vld.sshfl [vmem:[%s3013_s11 + $0xc] sm:$0x1 pattern:$0x76325410]  ;;  %v577_v31 = vunpack.c.l.b16 %v3045_v27  ;;  %v581_v32 = vsel %vm487_vm1, %v580_v26, %v572_v20  ;;  %v584_v33 = vrot.slane %v575_v25, 5 }
  0x2d   : > { %s3064_s20 = scalar_lea.vmem %s3643_s0, %s2758_s12  ;;  %v3067_v34 = vld.sshfl [vmem:[%s3013_s11 + $0xe] sm:$0x1 pattern:$0x76325410]  ;;  %v578_v35 = vunpack.c.l.b16 %v3051_v30  ;;  %v583_v36 = vsel %vm490_vm2, %v582_v29, %v581_v32  ;;  %v586_v37 = vrot.slane %v576_v28, 4  ;;  %v1110_v19 = vrot.slane %v576_v28, 5  ;;  %s3426_s25 = scalar_lea.vmem %s3646_s3, %s2758_s12 }
  0x2e   : > { %v579_v38 = vunpack.c.l.b16 %v3067_v34  ;;  %v585_v39 = vsel %vm493_vm3, %v584_v33, %v583_v36  ;;  %v588_v40 = vrot.slane %v577_v31, 3  ;;  %v3078_v41 = vld.sshfl [vmem:[%s3064_s20] sm:$0x1 pattern:$0x76325410] }
  0x2f   : > { %v587_v42 = vsel %vm496_vm4, %v586_v37, %v585_v39  ;;  %v590_v43 = vrot.slane %v578_v35, 2  ;;  %v3084_v44 = vld.sshfl [vmem:[%s3064_s20 + $0x2] sm:$0x1 pattern:$0x76325410]  ;;  %v478_v48 = vunpack.c.l.b16 %v3078_v41 }
  0x30   : > { %v589_v45 = vsel %vm499_vm5, %v588_v40, %v587_v42  ;;  %v592_v46 = vrot.slane %v579_v38, 1  ;;  %v3090_v47 = vld.sshfl [vmem:[%s3064_s20 + $0x4] sm:$0x1 pattern:$0x76325410]  ;;  %v479_v49 = vunpack.c.l.b16 %v3084_v44 }
  0x31   : > { %v591_v50 = vsel %vm502_vm6, %v590_v43, %v589_v45  ;;  %v3096_v51 = vld.sshfl [vmem:[%s3064_s20 + $0x6] sm:$0x1 pattern:$0x76325410]  ;;  %v480_v52 = vunpack.c.l.b16 %v3090_v47  ;;  %v1017_v18 = vrot.slane %v478_v48, 1 }
  0x32   : > { %v593_v53 = vsel %vm505_vm7, %v592_v46, %v591_v50  ;;  %v3101_v54 = vld.sshfl [vmem:[%s3064_s20 + $0x8] sm:$0x1 pattern:$0x76325410]  ;;  %v481_v55 = vunpack.c.l.b16 %v3096_v51  ;;  %v486_v56 = vrot.slane %v479_v49, 7 }
  0x33   : > { %v594_v57 = vpack.c.b16 %v593_v53, %v593_v53  ;;  %v3107_v58 = vld.sshfl [vmem:[%s3064_s20 + $0xa] sm:$0x1 pattern:$0x76325410]  ;;  %v482_v59 = vunpack.c.l.b16 %v3101_v54  ;;  %v489_v60 = vrot.slane %v480_v52, 6  ;;  %v1019_v41 = vrot.slane %v480_v52, 7 }
  0x34   : > { %v3113_v61 = vld.sshfl [vmem:[%s3064_s20 + $0xc] sm:$0x1 pattern:$0x76325410]  ;;  %v483_v62 = vunpack.c.l.b16 %v3107_v58  ;;  %v488_v63 = vsel %vm487_vm1, %v486_v56, %v478_v48  ;;  %v492_v0 = vrot.slane %v481_v55, 5 }
  0x35   : > { %v600_v1 = vsel %vm595_vm8, %v594_v57, 0  ;;  %v3123_v2 = vld.sshfl [vmem:[%s3064_s20 + $0xe] sm:$0x1 pattern:$0x76325410]  ;;  %v484_v3 = vunpack.c.l.b16 %v3113_v61  ;;  %v491_v4 = vsel %vm490_vm2, %v489_v60, %v488_v63  ;;  %v495_v5 = vrot.slane %v482_v59, 4 }
  0x36   : > { %2777 = vmatpush3.bf16.xpose.msra.mxu0 %v600_v1  ;;  %v485_v6 = vunpack.c.l.b16 %v3123_v2  ;;  %v494_v7 = vsel %vm493_vm3, %v492_v0, %v491_v4  ;;  %v498_v8 = vrot.slane %v483_v62, 3  ;;  %v3153_v37 = vld.sshfl [vmem:[%s3150_s22 + $0x2] sm:$0x1 pattern:$0x76325410] }
  0x37   : > { %v497_v9 = vsel %vm496_vm4, %v495_v5, %v494_v7  ;;  %v501_v10 = vrot.slane %v484_v3, 2  ;;  %2794 = vmatprep.subr.bf16.mxu0 %v2924_v16  ;;  %v3156_v39 = vld.sshfl [vmem:[%s3150_s22 + $0x4] sm:$0x1 pattern:$0x76325410]  ;;  %v717_v40 = vunpack.c.l.b16 %v3153_v37  ;;  %v1027_v58 = vrot.slane %v484_v3, 3 }
  0x38   : > { %v500_v11 = vsel %vm499_vm5, %v498_v8, %v497_v9  ;;  %v504_v12 = vrot.slane %v485_v6, 1  ;;  %v3160_v42 = vld.sshfl [vmem:[%s3150_s22] sm:$0x1 pattern:$0x76325410]  ;;  %v718_v43 = vunpack.c.l.b16 %v3156_v39 }
  0x39   : > { %v503_v13 = vsel %vm502_vm6, %v501_v10, %v500_v11  ;;  %v3164_v45 = vld.sshfl [vmem:[%s3150_s22 + $0x6] sm:$0x1 pattern:$0x76325410]  ;;  %v716_v46 = vunpack.c.l.b16 %v3160_v42  ;;  %v724_v50 = vrot.slane %v717_v40, 7 }
  0x3a   : > { %v506_v14 = vsel %vm505_vm7, %v504_v12, %v503_v13  ;;  %v3170_v53 = vld.sshfl [vmem:[%s3150_s22 + $0x8] sm:$0x1 pattern:$0x76325410]  ;;  %v719_v56 = vunpack.c.l.b16 %v3164_v45  ;;  %v726_v57 = vrot.slane %v718_v43, 6 }
  0x3b   : > { %v507_v15 = vpack.c.b16 %v506_v14, %v506_v14  ;;  %v3176_v60 = vld.sshfl [vmem:[%s3150_s22 + $0xa] sm:$0x1 pattern:$0x76325410]  ;;  %v720_v63 = vunpack.c.l.b16 %v3170_v53  ;;  %v725_v0 = vsel %vm487_vm1, %v724_v50, %v716_v46 }
  0x3c   : > { %v3183_v1 = vld.sshfl [vmem:[%s3150_s22 + $0xc] sm:$0x1 pattern:$0x76325410]  ;;  %v721_v4 = vunpack.c.l.b16 %v3176_v60  ;;  %v727_v5 = vsel %vm490_vm2, %v726_v57, %v725_v0  ;;  %v728_v7 = vrot.slane %v719_v56, 5  ;;  %v1104_v0 = vrot.slane %v572_v20, 1 }
  0x3d   : > { %2779 = vmatmul.mubr.msk.bf16.vlgmr.msra.gmra.mrb[0].mxu0 %vm595_vm8, %v507_v15  ;;  %v3190_v8 = vld.sshfl [vmem:[%s3150_s22 + $0xe] sm:$0x1 pattern:$0x76325410]  ;;  %v722_v9 = vunpack.c.l.b16 %v3183_v1  ;;  %v730_v10 = vrot.slane %v720_v63, 4 }
  0x3e   : > { %2796 = vmatprep.mubr.msk.bf16.mxu0 %vm2925_vm0, %v2924_v16  ;;  %v723_v11 = vunpack.c.l.b16 %v3190_v8  ;;  %v729_v12 = vsel %vm493_vm3, %v728_v7, %v727_v5  ;;  %v732_v13 = vrot.slane %v721_v4, 3  ;;  %v1106_v5 = vrot.slane %v574_v23, 7  ;;  %v2702_v7 = vld.sshfl [vmem:[%s3013_s11] sm:$0x2 pattern:$0x76325410] }
  0x3f   : > { %v731_v14 = vsel %vm496_vm4, %v730_v10, %v729_v12  ;;  %v734_v15 = vrot.slane %v722_v9, 2  ;;  %v1105_v10 = vsel %vm487_vm1, %v573_v21, %v1104_v0  ;;  %v2703_v12 = vld.sshfl [vmem:[%s3013_s11 + $0x2] sm:$0x2 pattern:$0x76325410]  ;;  %v1114_v0 = vrot.slane %v578_v35, 3 }
  0x40   : > { %v1618_v17 = vunpack.c.l.b16 %v2703_v12  ;;  %v3227_v23 = vld.sshfl [vmem:[%s3013_s11 + $0x6] sm:$0x2 pattern:$0x76325410]  ;;  %v1021_v35 = vrot.slane %v481_v55, 6  ;;  %v1257_v37 = vrot.slane %v722_v9, 3 }
  0x41   : > { %v2704_v21 = vld.sshfl [vmem:[%s3013_s11 + $0x4] sm:$0x2 pattern:$0x76325410]  ;;  %v1620_v24 = vunpack.c.l.b16 %v3227_v23 }
  0x42   : > { %v3238_v28 = vld.sshfl [vmem:[%s3064_s20] sm:$0x2 pattern:$0x76325410]  ;;  %v1619_v48 = vunpack.c.l.b16 %v2704_v21 }
  0x43   : > { %v1629_v44 = vrot.slane %v1620_v24, 7  ;;  %v3264_v12 = vld.sshfl [vmem:[%s3013_s11 + $0xc] sm:$0x2 pattern:$0x76325410] }
  0x44   : > { %v3275_v51 = vld.sshfl [vmem:[%s3064_s20 + $0x6] sm:$0x2 pattern:$0x76325410] }
  0x45   : > { %v2698_v54 = vld.sshfl [vmem:[%s3064_s20 + $0x8] sm:$0x2 pattern:$0x76325410] }
  0x46   : > { %v2712_v1 = vld.sshfl [vmem:[%s3150_s22 + $0x2] sm:$0x2 pattern:$0x76325410] }
  0x47   : > { %v1761_v8 = vunpack.c.l.b16 %v2712_v1  ;;  %v2714_v9 = vld.sshfl [vmem:[%s3150_s22 + $0x6] sm:$0x2 pattern:$0x76325410] }
 0x110   : > { %v3145_v26 = vpop.f32.mrb[0].mxu0 }
 0x111   : > { %v2780_v29 = vpop.f32.mrb[1].mxu0  ;;  %v642_v32 = vsel %vm595_vm8, %v3145_v26, -inf }
 0x112   : > { %643 = vmax.xlane.f32.xlu0 %v642_v32  ;;  %v639_v33 = vpop.f32.mrb[2].mxu0  ;;  %v733_v29 = vsel %vm499_vm5, %v732_v13, %v731_v14  ;;  %v736_v32 = vrot.slane %v723_v11, 1  ;;  %v1108_v13 = vrot.slane %v575_v25, 6  ;;  %v1107_v14 = vsel %vm490_vm2, %v1106_v5, %v1105_v10 }
 0x113   : > { %v2781_v36 = vpop.f32.mrb[3].mxu0  ;;  %v735_v33 = vsel %vm502_vm6, %v734_v15, %v733_v29  ;;  %v1617_v15 = vunpack.c.l.b16 %v2702_v7  ;;  %v1626_v29 = vrot.slane %v1618_v17, 1  ;;  %v1112_v25 = vrot.slane %v577_v31, 4 }
 0x114   : > { %v737_v36 = vsel %vm505_vm7, %v736_v32, %v735_v33  ;;  %v1109_v20 = vsel %vm493_vm3, %v1108_v13, %v1107_v14  ;;  %v3233_v32 = vld.sshfl [vmem:[%s3013_s11 + $0x8] sm:$0x2 pattern:$0x76325410]  ;;  %v1116_v10 = vrot.slane %v579_v38, 2  ;;  %v1023_v38 = vrot.slane %v482_v59, 5 }
 0x115   : > { %v738_v50 = vpack.c.b16 %v737_v36, %v737_v36  ;;  %v1625_v22 = vrot.slane %v1617_v15, 2  ;;  %v1111_v33 = vsel %vm496_vm4, %v1110_v19, %v1109_v20  ;;  %v2695_v36 = vld.sshfl [vmem:[%s3064_s20 + $0x2] sm:$0x2 pattern:$0x76325410]  ;;  %v1621_v47 = vunpack.c.l.b16 %v3233_v32 }
 0x116   : > { %v3251_v5 = vld.sshfl [vmem:[%s3013_s11 + $0xa] sm:$0x2 pattern:$0x76325410]  ;;  %v1531_v7 = vunpack.c.l.b16 %v2695_v36  ;;  %v2147_v20 = vrot.slane %v1617_v15, 3  ;;  %v1623_v15 = vunpack.c.l.b16 %v3264_v12  ;;  %v1533_v59 = vunpack.c.l.b16 %v3275_v51 }
 0x117   : > { %v744_v57 = vsel %vm742_vm9, %v738_v50, 0  ;;  %v1018_v50 = vsel %vm487_vm1, %v479_v49, %v1017_v18  ;;  %v1627_v27 = vsel %vm487_vm1, %v1626_v29, %v1625_v22  ;;  %v1530_v49 = vunpack.c.l.b16 %v3238_v28  ;;  %v3268_v14 = vld.sshfl [vmem:[%s3013_s11 + $0xe] sm:$0x2 pattern:$0x76325410] }
 0x118   : > { %2783 = vmatpush3.bf16.msra.mxu1 %v744_v57  ;;  %v1113_v57 = vsel %vm499_vm5, %v1112_v25, %v1111_v33  ;;  %v1020_v30 = vsel %vm490_vm2, %v1019_v41, %v1018_v50  ;;  %v1622_v19 = vunpack.c.l.b16 %v3251_v5  ;;  %v2148_v18 = vrot.slane %v1618_v17, 2  ;;  %v2696_v22 = vld.sshfl [vmem:[%s3064_s20 + $0x4] sm:$0x2 pattern:$0x76325410] }
 0x119   : > { %2788 = vmatprep.subr.bf16.mxu1 %v2924_v16  ;;  %v1115_v34 = vsel %vm502_vm6, %v1114_v0, %v1113_v57  ;;  %v1631_v21 = vrot.slane %v1621_v47, 6  ;;  %v1538_v29 = vrot.slane %v1530_v49, 2  ;;  %v1539_v25 = vrot.slane %v1531_v7, 1 }
 0x11a   : > { %v1022_v32 = vsel %vm493_vm3, %v1021_v35, %v1020_v30  ;;  %v2150_v17 = vrot.slane %v1619_v48, 1  ;;  %v1117_v33 = vsel %vm505_vm7, %v1116_v10, %v1115_v34  ;;  %v1633_v28 = vrot.slane %v1622_v19, 5 }
 0x11b   : > { %v2149_v41 = vsel %vm487_vm1, %v2148_v18, %v2147_v20  ;;  %v1025_v36 = vrot.slane %v483_v62, 4  ;;  %v1624_v50 = vunpack.c.l.b16 %v3268_v14  ;;  %v1024_v57 = vsel %vm496_vm4, %v1023_v38, %v1022_v32  ;;  %v2700_v14 = vld.sshfl [vmem:[%s3064_s20 + $0xc] sm:$0x2 pattern:$0x76325410] }
 0x11c   : > { %v1118_v0 = vpack.c.b16 %v1117_v33, %v1117_v33  ;;  %v1635_v5 = vrot.slane %v1623_v15, 4  ;;  %v2151_v10 = vsel %vm490_vm2, %v2150_v17, %v2149_v41  ;;  %v1542_v30 = vrot.slane %v1533_v59, 7 }
 0x11d   : > { %v1026_v35 = vsel %vm499_vm5, %v1025_v36, %v1024_v57  ;;  %v1637_v12 = vrot.slane %v1624_v50, 3  ;;  %v2152_v18 = vsel %vm493_vm3, %v1620_v24, %v2151_v10  ;;  %v2060_v34 = vrot.slane %v1530_v49, 3  ;;  %v2701_v24 = vld.sshfl [vmem:[%s3064_s20 + $0xe] sm:$0x2 pattern:$0x76325410] }
 0x11e   : > { %v2061_v38 = vrot.slane %v1531_v7, 2  ;;  %v1123_v61 = vsel %vm595_vm8, %v1118_v0, 0  ;;  %v1536_v49 = vunpack.c.l.b16 %v2700_v14  ;;  %v2159_v57 = vrot.slane %v1624_v50, 4 }
 0x120   : > { %v2062_v33 = vsel %vm487_vm1, %v2061_v38, %v2060_v34  ;;  %v1548_v36 = vrot.slane %v1536_v49, 4 }
 0x19f   : > { %v644_v31 = vpop.xlane.xlu0 %643 }
 0x1a0   : > { %v645_v52 = vsub.f32 %v3145_v26, %v644_v31  ;;  %v1628_v26 = vsel %vm490_vm2, %v1619_v48, %v1627_v27  ;;  %v1532_v31 = vunpack.c.l.b16 %v2696_v22  ;;  %v1540_v48 = vsel %vm487_vm1, %v1539_v25, %v1538_v29 }
 0x1a1   : > { %v1630_v55 = vsel %vm493_vm3, %v1629_v44, %v1628_v26  ;;  %v1534_v44 = vunpack.c.l.b16 %v2698_v54  ;;  %v2155_v29 = vrot.slane %v1622_v19, 6 }
 0x1a2   : > { %v646_v13 = vmul.f32 1.442695, %v645_v52  ;;  %v1632_v27 = vsel %vm496_vm4, %v1631_v21, %v1630_v55  ;;  %v2699_v52 = vld.sshfl [vmem:[%s3064_s20 + $0xa] sm:$0x2 pattern:$0x76325410]  ;;  %v1541_v26 = vsel %vm490_vm2, %v1532_v31, %v1540_v48  ;;  %v1028_v55 = vsel %vm502_vm6, %v1027_v58, %v1026_v35 }
 0x1a3   : > { %v1634_v62 = vsel %vm499_vm5, %v1633_v28, %v1632_v27  ;;  %v1535_v20 = vunpack.c.l.b16 %v2699_v52  ;;  %v1544_v21 = vrot.slane %v1534_v44, 6  ;;  %v1543_v22 = vsel %vm493_vm3, %v1542_v30, %v1541_v26 }
 0x1a4   : > { %2868 = vpow2.f32 %v646_v13  ;;  %v2153_v13 = vrot.slane %v1621_v47, 7  ;;  %v1636_v3 = vsel %vm502_vm6, %v1635_v5, %v1634_v62  ;;  %v1029_v47 = vrot.slane %v485_v6, 2 }
 0x1a5   : > { %v2063_v25 = vrot.slane %v1532_v31, 1  ;;  %v1638_v32 = vsel %vm505_vm7, %v1637_v12, %v1636_v3  ;;  %v1546_v17 = vrot.slane %v1535_v20, 5  ;;  %v1545_v2 = vsel %vm496_vm4, %v1544_v21, %v1543_v22 }
 0x1a6   : > { %v2154_v7 = vsel %vm496_vm4, %v2153_v13, %v2152_v18  ;;  %v2157_v6 = vrot.slane %v1623_v15, 5  ;;  %v1030_v19 = vsel %vm505_vm7, %v1029_v47, %v1028_v55  ;;  %v1537_v28 = vunpack.c.l.b16 %v2701_v24 }
 0x1a7   : > { %v2156_v54 = vsel %vm499_vm5, %v2155_v29, %v2154_v7  ;;  %v1639_v41 = vpack.c.b16 %v1638_v32, %v1638_v32  ;;  %v2064_v27 = vsel %vm490_vm2, %v2063_v25, %v2062_v33  ;;  %v1547_v31 = vsel %vm499_vm5, %v1546_v17, %v1545_v2 }
 0x1a8   : > { %v1031_v48 = vpack.c.b16 %v1030_v19, %v1030_v19  ;;  %v2158_v15 = vsel %vm502_vm6, %v2157_v6, %v2156_v54  ;;  %v2066_v0 = vrot.slane %v1534_v44, 7  ;;  %v1550_v5 = vrot.slane %v1537_v28, 3 }
 0x1a9   : > { %v2065_v52 = vsel %vm493_vm3, %v1533_v59, %v2064_v27  ;;  %v1644_v10 = vsel %vm595_vm8, %v1639_v41, 0  ;;  %v1549_v58 = vsel %vm502_vm6, %v1548_v36, %v1547_v31  ;;  %v2160_v62 = vsel %vm505_vm7, %v2159_v57, %v2158_v15  ;;  %v2715_v15 = vld.sshfl [vmem:[%s3150_s22 + $0x8] sm:$0x2 pattern:$0x76325410] }
 0x1aa   : > { %v2068_v30 = vrot.slane %v1535_v20, 6  ;;  %v2067_v35 = vsel %vm496_vm4, %v2066_v0, %v2065_v52  ;;  %v1551_v50 = vsel %vm505_vm7, %v1550_v5, %v1549_v58  ;;  %v2161_v59 = vpack.c.b16 %v2160_v62, %v2160_v62 }
 0x1ab   : > { %v2070_v44 = vrot.slane %v1536_v49, 5  ;;  %v1552_v26 = vpack.c.b16 %v1551_v50, %v1551_v50  ;;  %v2072_v13 = vrot.slane %v1537_v28, 4  ;;  %v1249_v41 = vrot.slane %v718_v43, 7 }
 0x1ac   : > { %v2069_v12 = vsel %vm499_vm5, %v2068_v30, %v2067_v35  ;;  %v2166_v14 = vsel %vm595_vm8, %v2161_v59, 0  ;;  %v1251_v36 = vrot.slane %v719_v56, 6  ;;  %v1253_v27 = vrot.slane %v720_v63, 5 }
 0x1ad   : > { %v2071_v20 = vsel %vm502_vm6, %v2070_v44, %v2069_v12  ;;  %v1255_v31 = vrot.slane %v721_v4, 4  ;;  %v2711_v63 = vld.sshfl [vmem:[%s3150_s22] sm:$0x2 pattern:$0x76325410]  ;;  %v1763_v0 = vunpack.c.l.b16 %v2714_v9  ;;  %v1764_v58 = vunpack.c.l.b16 %v2715_v15 }
 0x1ae   : > { %v3304_v51 = vpop.eup %2868  ;;  %v2073_v18 = vsel %vm505_vm7, %v2072_v13, %v2071_v20  ;;  %v1760_v4 = vunpack.c.l.b16 %v2711_v63  ;;  %v2717_v35 = vld.sshfl [vmem:[%s3150_s22 + $0xc] sm:$0x2 pattern:$0x76325410]  ;;  %v2291_v44 = vrot.slane %v1761_v8, 2 }
 0x1af   : > { %v651_v23 = vpack.c.bf16 %v3304_v51, %v3304_v51  ;;  %v2074_v34 = vpack.c.b16 %v2073_v18, %v2073_v18  ;;  %v648_v24 = vsel %vm595_vm8, %v3304_v51, 0.0  ;;  %v1247_v51 = vrot.slane %v716_v46, 1  ;;  %v2718_v13 = vld.sshfl [vmem:[%s3150_s22 + $0xe] sm:$0x2 pattern:$0x76325410] }
 0x1b0   : > { %v1768_v57 = vrot.slane %v1760_v4, 2  ;;  %v1772_v62 = vrot.slane %v1763_v0, 7  ;;  %v2290_v59 = vrot.slane %v1760_v4, 3  ;;  %v1774_v12 = vrot.slane %v1764_v58, 6 }
 0x1b1   : > { %2785 = vmatmul.mubr.msk.bf16.vlgmr.msra.gmra.mrb[0].mxu1 %vm595_vm8, %v651_v23  ;;  %v1248_v54 = vsel %vm487_vm1, %v717_v40, %v1247_v51  ;;  %v1259_v40 = vrot.slane %v723_v11, 2  ;;  %v2713_v11 = vld.sshfl [vmem:[%s3150_s22 + $0x4] sm:$0x2 pattern:$0x76325410] }
 0x1b2   : > { %2789 = vmatpush3.bf16.xpose.msra.mxu1 %v1123_v61  ;;  %2790 = vmatprep.mubr.msk.bf16.mxu1 %vm2925_vm0, %v2924_v16  ;;  %v1250_v42 = vsel %vm490_vm2, %v1249_v41, %v1248_v54  ;;  %v1762_v5 = vunpack.c.l.b16 %v2713_v11  ;;  %v793_v54 = vlaneseq }
 0x1b3   : > { %2800 = vmatprep.subr.bf16.mxu1 %v2924_v16  ;;  %v1252_v39 = vsel %vm493_vm3, %v1251_v36, %v1250_v42 }
 0x1b4   : > { %v1254_v43 = vsel %vm496_vm4, %v1253_v27, %v1252_v39  ;;  %v2293_v20 = vrot.slane %v1762_v5, 1 }
 0x1b5   : > { %v1256_v45 = vsel %vm499_vm5, %v1255_v31, %v1254_v43 }
 0x1b6   : > { %v1258_v46 = vsel %vm502_vm6, %v1257_v37, %v1256_v45 }
 0x1b7   : > { %v1260_v53 = vsel %vm505_vm7, %v1259_v40, %v1258_v46  ;;  %v794_v40 = vshrl.u32 %v793_v54, 7 }
 0x1b8   : > { %v1261_v56 = vpack.c.b16 %v1260_v53, %v1260_v53 }
 0x1b9   : > { %2791 = vmatmul.mubr.msk.bf16.vlgmr.msra.gmra.mrb[4].mxu1 %vm595_vm8, %v1031_v48  ;;  %v1769_v48 = vrot.slane %v1761_v8, 1 }
 0x1ba   : > { %2801 = vmatpush3.bf16.xpose.msra.mxu1 %v1644_v10  ;;  %2802 = vmatprep.mubr.msk.bf16.mxu1 %vm2925_vm0, %v2924_v16  ;;  %v1266_v60 = vsel %vm742_vm9, %v1261_v56, 0  ;;  %v2716_v10 = vld.sshfl [vmem:[%s3150_s22 + $0xa] sm:$0x2 pattern:$0x76325410] }
 0x1bb   : > { %2812 = vmatprep.subr.bf16.mxu1 %v2924_v16  ;;  %2795 = vmatpush3.bf16.msra.mxu0 %v1266_v60  ;;  %v1770_v52 = vsel %vm487_vm1, %v1769_v48, %v1768_v57  ;;  %v1765_v50 = vunpack.c.l.b16 %v2716_v10  ;;  %v2927_v56 = vmov 857870592  }
 0x1bc   : > { %2806 = vmatprep.subr.bf16.mxu0 %v2924_v16  ;;  %v1771_v30 = vsel %vm490_vm2, %v1762_v5, %v1770_v52  ;;  %v831_v60 = vunpack.c.l.s4 %v2927_v56 }
 0x1bd   : > { %v1776_v18 = vrot.slane %v1765_v50, 5 }
 0x1c1   : > { %2803 = vmatmul.mubr.msk.bf16.vlgmr.msra.gmra.mrb[8].mxu1 %vm595_vm8, %v1552_v26  ;;  %v1773_v26 = vsel %vm493_vm3, %v1772_v62, %v1771_v30 }
 0x1c2   : > { %2813 = vmatpush3.bf16.xpose.msra.mxu1 %v2166_v14  ;;  %2814 = vmatprep.mubr.msk.bf16.mxu1 %vm2925_vm0, %v2924_v16  ;;  %v1766_v14 = vunpack.c.l.b16 %v2717_v35 }
 0x1c4   : > { %v2300_v27 = vrot.slane %v1766_v14, 5 }
 0x1c9   : > { %2815 = vmatmul.mubr.msk.bf16.vlgmr.msra.gmra.mrb[12].mxu1 %vm595_vm8, %v2074_v34  ;;  %v2292_v34 = vsel %vm487_vm1, %v2291_v44, %v2290_v59 }
 0x284   : > { %v3344_v38 = vpop.f32.mrb[0].mxu1 }
 0x285   : > { %v2786_v61 = vpop.f32.mrb[1].mxu1 }
 0x286   : > { %v783_v3 = vpop.f32.mrb[2].mxu1 }
 0x287   : > { %v2787_v21 = vpop.f32.mrb[3].mxu1  ;;  %v1775_v3 = vsel %vm496_vm4, %v1774_v12, %v1773_v26 }
 0x28c   : > { %v3346_v55 = vpop.f32.mrb[4].mxu1 }
 0x28d   : > { %v2792_v47 = vpop.f32.mrb[5].mxu1  ;;  %v1165_v22 = vsel %vm595_vm8, %v3346_v55, -inf }
 0x28e   : > { %1166 = vmax.xlane.f32.xlu0 %v1165_v22  ;;  %v1162_v29 = vpop.f32.mrb[6].mxu1  ;;  %v1767_v47 = vunpack.c.l.b16 %v2718_v13  ;;  %v1778_v22 = vrot.slane %v1766_v14, 4  ;;  %v897_v13 = vld [vmem:[%s3426_s25] sm:$0x1] }
 0x28f   : > { %v2793_v23 = vpop.f32.mrb[7].mxu1  ;;  %v2294_v29 = vsel %vm490_vm2, %v2293_v20, %v2292_v34  ;;  %vm2459_vm2 = vsmask.f32 7942 }
 0x290   : > { %v2302_v43 = vrot.slane %v1767_v47, 4 }
 0x292   : > { %649 = vadd.xlane.f32.xlu0 %v648_v24  ;;  %v1777_v24 = vsel %vm499_vm5, %v1776_v18, %v1775_v3 }
 0x294   : > { %v3352_v49 = vpop.f32.mrb[8].mxu1 }
 0x295   : > { %v2804_v7 = vpop.f32.mrb[9].mxu1  ;;  %v1686_v25 = vsel %vm595_vm8, %v3352_v49, -inf }
 0x296   : > { %1687 = vmax.xlane.f32.xlu1 %v1686_v25  ;;  %v1683_v32 = vpop.f32.mrb[10].mxu1  ;;  %v2296_v25 = vrot.slane %v1764_v58, 7 }
 0x297   : > { %v2805_v17 = vpop.f32.mrb[11].mxu1  ;;  %v1780_v32 = vrot.slane %v1767_v47, 3  ;;  %v900_v47 = vld [vmem:[%s3426_s25 + $0x2] sm:$0x1] }
 0x298   : > { %v2295_v17 = vsel %vm493_vm3, %v1763_v0, %v2294_v29  ;;  %v832_v0 = vunpack.c.0.s8 %v831_v60  ;;  %v909_v29 = vld [vmem:[%s3426_s25 + $0x8] sm:$0x1]  ;;  %vm3584_vm3 = vmand %vm1937_vm15, %vm2459_vm2 }
 0x29a   : > { %v3428_v58 = vsub.s32 %v832_v0, %v794_v40 }
 0x29c   : > { %v3356_v33 = vpop.f32.mrb[12].mxu1 }
 0x29d   : > { %v2816_v2 = vpop.f32.mrb[13].mxu1  ;;  %v2208_v6 = vsel %vm595_vm8, %v3356_v33, -inf }
 0x29e   : > { %2209 = vmax.xlane.f32.xlu1 %v2208_v6  ;;  %v2205_v19 = vpop.f32.mrb[14].mxu1  ;;  %v1779_v2 = vsel %vm502_vm6, %v1778_v22, %v1777_v24  ;;  %v2298_v6 = vrot.slane %v1765_v50, 6  ;;  %v903_v22 = vld [vmem:[%s3426_s25 + $0x4] sm:$0x1] }
 0x29f   : > { %v2817_v28 = vpop.f32.mrb[15].mxu1  ;;  %v1781_v36 = vsel %vm505_vm7, %v1780_v32, %v1779_v2  ;;  %v906_v32 = vld [vmem:[%s3426_s25 + $0x6] sm:$0x1]  ;;  %v915_v2 = vld [vmem:[%s3426_s25 + $0xc] sm:$0x1] }
 0x2a0   : > { %v2926_v28 = vmov 1966171168   ;;  %v1782_v37 = vpack.c.b16 %v1781_v36, %v1781_v36 }
 0x2a1   : > { %v791_v51 = vunpack.c.l.s4 %v2926_v28 }
 0x2a2   : > { %v1787_v4 = vsel %vm742_vm9, %v1782_v37, 0 }
 0x2a3   : > { %v792_v39 = vunpack.c.0.s8 %v791_v51 }
 0x2a5   : > { %v3410_v8 = vsub.s32 %v792_v39, %v794_v40 }
 0x31b   : > { %v1167_v61 = vpop.xlane.xlu0 %1166 }
 0x31c   : > { %v1168_v21 = vsub.f32 %v3346_v55, %v1167_v61  ;;  %v2297_v55 = vsel %vm496_vm4, %v2296_v25, %v2295_v17  ;;  %v912_v17 = vld [vmem:[%s3426_s25 + $0xa] sm:$0x1] }
 0x31d   : > { %v2299_v42 = vsel %vm499_vm5, %v2298_v6, %v2297_v55 }
 0x31e   : > { %v1169_v23 = vmul.f32 1.442695, %v1168_v21  ;;  %v2301_v45 = vsel %vm502_vm6, %v2300_v27, %v2299_v42  ;;  %v918_v27 = vld [vmem:[%s3426_s25 + $0xe] sm:$0x1] }
 0x31f   : > { %v650_v7 = vpop.xlane.xlu0 %649  ;;  %v2303_v57 = vsel %vm505_vm7, %v2302_v43, %v2301_v45 }
 0x320   : > { %2870 = vpow2.f32 %v1169_v23  ;;  %v2304_v5 = vpack.c.b16 %v2303_v57, %v2303_v57 }
 0x321   : > { %2872 = vrcp.f32 %v650_v7 }
 0x322   : > { %v2309_v35 = vsel %vm742_vm9, %v2304_v5, 0 }
 0x323   : > { %v1688_v19 = vpop.xlane.xlu1 %1687 }
 0x324   : > { %v1689_v41 = vsub.f32 %v3352_v49, %v1688_v19 }
 0x326   : > { %v1690_v31 = vmul.f32 1.442695, %v1689_v41 }
 0x328   : > { %2874 = vpow2.f32 %v1690_v31 }
 0x32a   : > { %v2871_v46 = vpop.eup %2870 }
 0x32b   : > { %v2873_v53 = vpop.eup %2872  ;;  %v2210_v63 = vpop.xlane.xlu1 %2209  ;;  %v1171_v49 = vsel %vm595_vm8, %v2871_v46, 0.0  ;;  %v1174_v1 = vpack.c.bf16 %v2871_v46, %v2871_v46 }
 0x32c   : > { %v787_v9 = vmul.f32 %v2873_v53, %v3344_v38  ;;  %v2211_v11 = vsub.f32 %v3356_v33, %v2210_v63  ;;  %1172 = vadd.xlane.f32.xlu0 %v1171_v49 }
 0x32d   : > { %2797 = vmatmul.mubr.msk.bf16.vlgmr.msra.gmra.mrb[4].mxu0 %vm595_vm8, %v1174_v1 }
 0x32e   : > { %v788_v48 = vpack.c.bf16 %v787_v9, %v787_v9  ;;  %v2212_v15 = vmul.f32 1.442695, %v2211_v11  ;;  %2807 = vmatpush3.bf16.msra.mxu0 %v1787_v4  ;;  %2808 = vmatprep.mubr.msk.bf16.mxu0 %vm2925_vm0, %v2924_v16 }
 0x32f   : > { %2818 = vmatprep.subr.bf16.mxu0 %v2924_v16 }
 0x330   : > { %v796_v38 = vrot.slane %v788_v48, %v3410_v8  ;;  %2876 = vpow2.f32 %v2212_v15 }
 0x332   : > { %v2875_v33 = vpop.eup %2874  ;;  %v797_v52 = vcombine.high %v796_v38, %v796_v38  ;;  %v804_v10 = vrot.slane %v796_v38, %v3410_v8 }
 0x333   : > { %v1692_v62 = vsel %vm595_vm8, %v2875_v33, 0.0  ;;  %v1695_v30 = vpack.c.bf16 %v2875_v33, %v2875_v33 }
 0x334   : > { %v811_v50 = vrot.slane %v797_v52, %v3410_v8  ;;  %v812_v59 = vcombine.high %v804_v10, %v804_v10  ;;  %v815_v44 = vunpack.i.h.s16 %v804_v10  ;;  %v2660_v12 = vpack.i.b16 %v804_v10, %v804_v10  ;;  %1693 = vadd.xlane.f32.xlu1 %v1692_v62 }
 0x335   : > { %2809 = vmatmul.mubr.msk.bf16.vlgmr.msra.gmra.mrb[8].mxu0 %vm595_vm8, %v1695_v30 }
 0x336   : > { %v813_v14 = vcombine.high %v811_v50, %v811_v50  ;;  %v817_v20 = vunpack.i.h.s16 %v811_v50  ;;  %v819_v18 = vunpack.i.h.s16 %v812_v59  ;;  %v823_v34 = vpack.i.b16 %v815_v44, %v815_v44  ;;  %2819 = vmatpush3.bf16.msra.mxu0 %v2309_v35  ;;  %2820 = vmatprep.mubr.msk.bf16.mxu0 %vm2925_vm0, %v2924_v16 }
 0x337   : > { %v2661_v61 = vpack.i.b16 %v811_v50, %v811_v50  ;;  %v2662_v3 = vpack.i.b16 %v812_v59, %v812_v59  ;;  %v836_v21 = vrot.slane %v2660_v12, %v3428_v58  ;;  %vm1938_vm0 = vsmask.f32 1280 }
 0x338   : > { %v821_v23 = vunpack.i.h.s16 %v813_v14  ;;  %v825_v24 = vpack.i.b16 %v817_v20, %v817_v20  ;;  %v827_v7 = vpack.i.b16 %v819_v18, %v819_v18  ;;  %v2663_v25 = vpack.i.b16 %v813_v14, %v813_v14  ;;  %vm3536_vm1 = vmand %vm1937_vm15, %vm1938_vm0  ;;  %v1943_v20 = vld [vmem:[%s3426_s25 + $0x2] sm:$0x2] }
 0x339   : > { %v843_v6 = vrot.slane %v823_v34, %v3428_v58  ;;  %v850_v16 = vrot.slane %v2661_v61, %v3428_v58  ;;  %v864_v19 = vrot.slane %v2662_v3, %v3428_v58  ;;  %v898_v55 = vsel %vm3435_vm12, %v836_v21, %v897_v13 }
 0x33a   : > { %v2877_v28 = vpop.eup %2876  ;;  %v829_v51 = vpack.i.b16 %v821_v23, %v821_v23  ;;  %v857_v54 = vrot.slane %v825_v24, %v3428_v58  ;;  %v871_v41 = vrot.slane %v827_v7, %v3428_v58  ;;  %v878_v36 = vrot.slane %v2663_v25, %v3428_v58  ;;  %899 = vst [vmem:[%s3426_s25] sm:$0x1] %v898_v55 }
 0x33b   : > { %v901_v31 = vsel %vm3435_vm12, %v843_v6, %v900_v47  ;;  %v904_v42 = vsel %vm3435_vm12, %v850_v16, %v903_v22  ;;  %v910_v37 = vsel %vm3435_vm12, %v864_v19, %v909_v29  ;;  %v2214_v39 = vsel %vm595_vm8, %v2877_v28, 0.0 }
 0x33c   : > { %v885_v40 = vrot.slane %v829_v51, %v3428_v58  ;;  %v907_v43 = vsel %vm3435_vm12, %v857_v54, %v906_v32  ;;  %v913_v45 = vsel %vm3435_vm12, %v871_v41, %v912_v17  ;;  %v916_v46 = vsel %vm3435_vm12, %v878_v36, %v915_v2  ;;  %902 = vst [vmem:[%s3426_s25 + $0x2] sm:$0x1] %v901_v31 }
 0x33d   : > { %905 = vst [vmem:[%s3426_s25 + $0x4] sm:$0x1] %v904_v42  ;;  %911 = vst [vmem:[%s3426_s25 + $0x8] sm:$0x1] %v910_v37  ;;  %2215 = vadd.xlane.f32.xlu1 %v2214_v39  ;;  %v2217_v53 = vpack.c.bf16 %v2877_v28, %v2877_v28 }
 0x33e   : > { %908 = vst [vmem:[%s3426_s25 + $0x6] sm:$0x1] %v907_v43  ;;  %914 = vst [vmem:[%s3426_s25 + $0xa] sm:$0x1] %v913_v45  ;;  %v919_v56 = vsel %vm3435_vm12, %v885_v40, %v918_v27 }
 0x33f   : > { %917 = vst [vmem:[%s3426_s25 + $0xc] sm:$0x1] %v916_v46  ;;  %920 = vst [vmem:[%s3426_s25 + $0xe] sm:$0x1] %v919_v56  ;;  %2821 = vmatmul.mubr.msk.bf16.vlgmr.msra.gmra.mrb[12].mxu0 %vm595_vm8, %v2217_v53 }
 0x341   : > { %v1418_v24 = vld [vmem:[%s3426_s25] sm:$0x1] }
 0x343   : > { %v1421_v55 = vld [vmem:[%s3426_s25 + $0x2] sm:$0x1] }
 0x344   : > { %v1424_v28 = vld [vmem:[%s3426_s25 + $0x4] sm:$0x1]  ;;  %v1430_v51 = vld [vmem:[%s3426_s25 + $0x8] sm:$0x1] }
 0x345   : > { %v1427_v36 = vld [vmem:[%s3426_s25 + $0x6] sm:$0x1]  ;;  %v1433_v31 = vld [vmem:[%s3426_s25 + $0xa] sm:$0x1] }
 0x346   : > { %v1436_v42 = vld [vmem:[%s3426_s25 + $0xc] sm:$0x1]  ;;  %v1439_v53 = vld [vmem:[%s3426_s25 + $0xe] sm:$0x1] }
 0x3b9   : > { %v1173_v60 = vpop.xlane.xlu0 %1172 }
 0x3ba   : > { %2878 = vrcp.f32 %v1173_v60 }
 0x3c1   : > { %v1694_v63 = vpop.xlane.xlu1 %1693 }
 0x3c2   : > { %2880 = vrcp.f32 %v1694_v63 }
 0x3c4   : > { %v2879_v49 = vpop.eup %2878 }
 0x3ca   : > { %v2216_v15 = vpop.xlane.xlu1 %2215 }
 0x3cb   : > { %2882 = vrcp.f32 %v2216_v15 }
 0x3cc   : > { %v2881_v52 = vpop.eup %2880 }
 0x3d5   : > { %v2883_v46 = vpop.eup %2882 }
 0x400   : > { %v1302_v1 = vpop.f32.mrb[4].mxu0 }
 0x401   : > { %v1309_v4 = vmul.f32 %v2879_v49, %v1302_v1  ;;  %v2798_v9 = vpop.f32.mrb[5].mxu0 }
 0x402   : > { %v1305_v11 = vpop.f32.mrb[6].mxu0 }
 0x403   : > { %v1310_v57 = vpack.c.bf16 %v1309_v4, %v1309_v4  ;;  %v2799_v48 = vpop.f32.mrb[7].mxu0 }
 0x405   : > { %v1318_v0 = vrot.slane %v1310_v57, %v3410_v8 }
 0x407   : > { %v1319_v5 = vcombine.high %v1318_v0, %v1318_v0  ;;  %v1326_v38 = vrot.slane %v1318_v0, %v3410_v8 }
 0x408   : > { %v1823_v33 = vpop.f32.mrb[8].mxu0 }
 0x409   : > { %v1333_v10 = vrot.slane %v1319_v5, %v3410_v8  ;;  %v1334_v62 = vcombine.high %v1326_v38, %v1326_v38  ;;  %v1337_v30 = vunpack.i.h.s16 %v1326_v38  ;;  %v2690_v35 = vpack.i.b16 %v1326_v38, %v1326_v38  ;;  %v2810_v50 = vpop.f32.mrb[9].mxu0 }
 0x40a   : > { %v1830_v59 = vmul.f32 %v2881_v52, %v1823_v33  ;;  %v1826_v44 = vpop.f32.mrb[10].mxu0 }
 0x40b   : > { %v1335_v12 = vcombine.high %v1333_v10, %v1333_v10  ;;  %v1339_v26 = vunpack.i.h.s16 %v1333_v10  ;;  %v1341_v13 = vunpack.i.h.s16 %v1334_v62  ;;  %v1345_v14 = vpack.i.b16 %v1337_v30, %v1337_v30  ;;  %v2811_v18 = vpop.f32.mrb[11].mxu0  ;;  %v1940_v30 = vld [vmem:[%s3426_s25] sm:$0x2] }
 0x40c   : > { %v2691_v34 = vpack.i.b16 %v1333_v10, %v1333_v10  ;;  %v2692_v61 = vpack.i.b16 %v1334_v62, %v1334_v62  ;;  %v1358_v3 = vrot.slane %v2690_v35, %v3428_v58  ;;  %v1831_v21 = vpack.c.bf16 %v1830_v59, %v1830_v59  ;;  %v1946_v18 = vld [vmem:[%s3426_s25 + $0x4] sm:$0x2] }
 0x40d   : > { %v1343_v47 = vunpack.i.h.s16 %v1335_v12  ;;  %v1347_v22 = vpack.i.b16 %v1339_v26, %v1339_v26  ;;  %v1349_v29 = vpack.i.b16 %v1341_v13, %v1341_v13  ;;  %v2693_v23 = vpack.i.b16 %v1335_v12, %v1335_v12 }
 0x40e   : > { %v1365_v7 = vrot.slane %v1345_v14, %v3428_v58  ;;  %v1372_v25 = vrot.slane %v2691_v34, %v3428_v58  ;;  %v1386_v32 = vrot.slane %v2692_v61, %v3428_v58  ;;  %v1419_v17 = vsel %vm3487_vm14, %v1358_v3, %v1418_v24  ;;  %v1952_v34 = vld [vmem:[%s3426_s25 + $0x8] sm:$0x2] }
 0x40f   : > { %v1351_v2 = vpack.i.b16 %v1343_v47, %v1343_v47  ;;  %v1379_v6 = vrot.slane %v1347_v22, %v3428_v58  ;;  %v1393_v16 = vrot.slane %v1349_v29, %v3428_v58  ;;  %v1400_v19 = vrot.slane %v2693_v23, %v3428_v58  ;;  %1420 = vst [vmem:[%s3426_s25] sm:$0x1] %v1419_v17  ;;  %v1949_v22 = vld [vmem:[%s3426_s25 + $0x6] sm:$0x2]  ;;  %v1955_v29 = vld [vmem:[%s3426_s25 + $0xa] sm:$0x2] }
 0x410   : > { %v1422_v54 = vsel %vm3487_vm14, %v1365_v7, %v1421_v55  ;;  %v1425_v41 = vsel %vm3487_vm14, %v1372_v25, %v1424_v28  ;;  %v1431_v27 = vsel %vm3487_vm14, %v1386_v32, %v1430_v51  ;;  %v1839_v37 = vrot.slane %v1831_v21, %v3410_v8  ;;  %v1958_v23 = vld [vmem:[%s3426_s25 + $0xc] sm:$0x2] }
 0x411   : > { %v1407_v39 = vrot.slane %v1351_v2, %v3428_v58  ;;  %1423 = vst [vmem:[%s3426_s25 + $0x2] sm:$0x1] %v1422_v54  ;;  %1426 = vst [vmem:[%s3426_s25 + $0x4] sm:$0x1] %v1425_v41  ;;  %v1428_v40 = vsel %vm3487_vm14, %v1379_v6, %v1427_v36  ;;  %v1434_v43 = vsel %vm3487_vm14, %v1393_v16, %v1433_v31  ;;  %v1961_v16 = vld [vmem:[%s3426_s25 + $0xe] sm:$0x2] }
 0x412   : > { %1432 = vst [vmem:[%s3426_s25 + $0x8] sm:$0x1] %v1431_v27  ;;  %v1437_v45 = vsel %vm3487_vm14, %v1400_v19, %v1436_v42  ;;  %1429 = vst [vmem:[%s3426_s25 + $0x6] sm:$0x1] %v1428_v40  ;;  %v1840_v56 = vcombine.high %v1839_v37, %v1839_v37  ;;  %v1847_v60 = vrot.slane %v1839_v37, %v3410_v8  ;;  %v2345_v63 = vpop.f32.mrb[12].mxu0 }
 0x413   : > { %1435 = vst [vmem:[%s3426_s25 + $0xa] sm:$0x1] %v1434_v43  ;;  %1438 = vst [vmem:[%s3426_s25 + $0xc] sm:$0x1] %v1437_v45  ;;  %v1440_v49 = vsel %vm3487_vm14, %v1407_v39, %v1439_v53  ;;  %v2352_v1 = vmul.f32 %v2883_v46, %v2345_v63  ;;  %v2822_v4 = vpop.f32.mrb[13].mxu0 }
 0x414   : > { %1441 = vst [vmem:[%s3426_s25 + $0xe] sm:$0x1] %v1440_v49  ;;  %v1854_v9 = vrot.slane %v1840_v56, %v3410_v8  ;;  %v1855_v11 = vcombine.high %v1847_v60, %v1847_v60  ;;  %v1858_v57 = vunpack.i.h.s16 %v1847_v60  ;;  %v2720_v48 = vpack.i.b16 %v1847_v60, %v1847_v60  ;;  %v2348_v15 = vpop.f32.mrb[14].mxu0 }
 0x415   : > { %v2353_v0 = vpack.c.bf16 %v2352_v1, %v2352_v1  ;;  %v2823_v5 = vpop.f32.mrb[15].mxu0 }
 0x416   : > { %v1856_v38 = vcombine.high %v1854_v9, %v1854_v9  ;;  %v1860_v33 = vunpack.i.h.s16 %v1854_v9  ;;  %v1862_v52 = vunpack.i.h.s16 %v1855_v11  ;;  %v1866_v10 = vpack.i.b16 %v1858_v57, %v1858_v57 }
 0x417   : > { %v2721_v35 = vpack.i.b16 %v1854_v9, %v1854_v9  ;;  %v2722_v50 = vpack.i.b16 %v1855_v11, %v1855_v11  ;;  %v1879_v59 = vrot.slane %v2720_v48, %v3428_v58  ;;  %v2361_v44 = vrot.slane %v2353_v0, %v3410_v8 }
 0x418   : > { %v1864_v12 = vunpack.i.h.s16 %v1856_v38  ;;  %v1868_v26 = vpack.i.b16 %v1860_v33, %v1860_v33  ;;  %v1870_v13 = vpack.i.b16 %v1862_v52, %v1862_v52  ;;  %v2723_v14 = vpack.i.b16 %v1856_v38, %v1856_v38 }
 0x419   : > { %v1886_v61 = vrot.slane %v1866_v10, %v3428_v58  ;;  %v1893_v3 = vrot.slane %v2721_v35, %v3428_v58  ;;  %v1907_v21 = vrot.slane %v2722_v50, %v3428_v58  ;;  %v1941_v47 = vsel %vm3536_vm1, %v1879_v59, %v1940_v30 }
 0x41a   : > { %v1872_v24 = vpack.i.b16 %v1864_v12, %v1864_v12  ;;  %v1900_v7 = vrot.slane %v1868_v26, %v3428_v58  ;;  %v1914_v25 = vrot.slane %v1870_v13, %v3428_v58  ;;  %v1921_v32 = vrot.slane %v2723_v14, %v3428_v58  ;;  %1942 = vst [vmem:[%s3426_s25] sm:$0x2] %v1941_v47 }
 0x41b   : > { %v1944_v17 = vsel %vm3536_vm1, %v1886_v61, %v1943_v20  ;;  %v1947_v2 = vsel %vm3536_vm1, %v1893_v3, %v1946_v18  ;;  %v1953_v6 = vsel %vm3536_vm1, %v1907_v21, %v1952_v34  ;;  %v2362_v19 = vcombine.high %v2361_v44, %v2361_v44 }
 0x41c   : > { %v1928_v55 = vrot.slane %v1872_v24, %v3428_v58  ;;  %1945 = vst [vmem:[%s3426_s25 + $0x2] sm:$0x2] %v1944_v17  ;;  %1948 = vst [vmem:[%s3426_s25 + $0x4] sm:$0x2] %v1947_v2  ;;  %v1950_v28 = vsel %vm3536_vm1, %v1900_v7, %v1949_v22  ;;  %v1956_v51 = vsel %vm3536_vm1, %v1914_v25, %v1955_v29 }
 0x41d   : > { %1954 = vst [vmem:[%s3426_s25 + $0x8] sm:$0x2] %v1953_v6  ;;  %v1959_v54 = vsel %vm3536_vm1, %v1921_v32, %v1958_v23  ;;  %1951 = vst [vmem:[%s3426_s25 + $0x6] sm:$0x2] %v1950_v28  ;;  %v2369_v41 = vrot.slane %v2361_v44, %v3410_v8  ;;  %v2376_v36 = vrot.slane %v2362_v19, %v3410_v8 }
 0x41e   : > { %1957 = vst [vmem:[%s3426_s25 + $0xa] sm:$0x2] %v1956_v51  ;;  %1960 = vst [vmem:[%s3426_s25 + $0xc] sm:$0x2] %v1959_v54  ;;  %v1962_v27 = vsel %vm3536_vm1, %v1928_v55, %v1961_v16 }
 0x41f   : > { %1963 = vst [vmem:[%s3426_s25 + $0xe] sm:$0x2] %v1962_v27  ;;  %v2377_v31 = vcombine.high %v2369_v41, %v2369_v41  ;;  %v2378_v42 = vcombine.high %v2376_v36, %v2376_v36  ;;  %v2380_v37 = vunpack.i.h.s16 %v2369_v41  ;;  %v2382_v39 = vunpack.i.h.s16 %v2376_v36 }
 0x420   : > { %v2750_v40 = vpack.i.b16 %v2369_v41, %v2369_v41  ;;  %v2751_v43 = vpack.i.b16 %v2376_v36, %v2376_v36 }
 0x421   : > { %v2384_v45 = vunpack.i.h.s16 %v2377_v31  ;;  %v2386_v46 = vunpack.i.h.s16 %v2378_v42  ;;  %v2388_v53 = vpack.i.b16 %v2380_v37, %v2380_v37  ;;  %v2390_v56 = vpack.i.b16 %v2382_v39, %v2382_v39  ;;  %v2461_v60 = vld [vmem:[%s3426_s25] sm:$0x2] }
 0x422   : > { %v2752_v63 = vpack.i.b16 %v2377_v31, %v2377_v31  ;;  %v2753_v49 = vpack.i.b16 %v2378_v42, %v2378_v42  ;;  %v2401_v1 = vrot.slane %v2750_v40, %v3428_v58  ;;  %v2415_v4 = vrot.slane %v2751_v43, %v3428_v58 }
 0x423   : > { %v2392_v9 = vpack.i.b16 %v2384_v45, %v2384_v45  ;;  %v2394_v11 = vpack.i.b16 %v2386_v46, %v2386_v46  ;;  %v2408_v57 = vrot.slane %v2388_v53, %v3428_v58  ;;  %v2422_v48 = vrot.slane %v2390_v56, %v3428_v58  ;;  %v2464_v15 = vld [vmem:[%s3426_s25 + $0x2] sm:$0x2]  ;;  %v2467_v0 = vld [vmem:[%s3426_s25 + $0x4] sm:$0x2] }
 0x424   : > { %v2473_v5 = vld [vmem:[%s3426_s25 + $0x8] sm:$0x2]  ;;  %v2429_v38 = vrot.slane %v2752_v63, %v3428_v58  ;;  %v2443_v33 = vrot.slane %v2753_v49, %v3428_v58  ;;  %v2462_v52 = vsel %vm3584_vm3, %v2401_v1, %v2461_v60  ;;  %v2468_v10 = vsel %vm3584_vm3, %v2415_v4, %v2467_v0  ;;  %v2470_v62 = vld [vmem:[%s3426_s25 + $0x6] sm:$0x2] }
 0x425   : > { %v2476_v30 = vld [vmem:[%s3426_s25 + $0xa] sm:$0x2]  ;;  %v2479_v35 = vld [vmem:[%s3426_s25 + $0xc] sm:$0x2]  ;;  %v2436_v50 = vrot.slane %v2392_v9, %v3428_v58  ;;  %v2450_v59 = vrot.slane %v2394_v11, %v3428_v58  ;;  %2463 = vst [vmem:[%s3426_s25] sm:$0x2] %v2462_v52  ;;  %v2465_v44 = vsel %vm3584_vm3, %v2408_v57, %v2464_v15  ;;  %v2471_v12 = vsel %vm3584_vm3, %v2422_v48, %v2470_v62 }
 0x426   : > { %2469 = vst [vmem:[%s3426_s25 + $0x4] sm:$0x2] %v2468_v10  ;;  %2466 = vst [vmem:[%s3426_s25 + $0x2] sm:$0x2] %v2465_v44  ;;  %v2474_v26 = vsel %vm3584_vm3, %v2429_v38, %v2473_v5  ;;  %v2480_v13 = vsel %vm3584_vm3, %v2443_v33, %v2479_v35  ;;  %v2482_v14 = vld [vmem:[%s3426_s25 + $0xe] sm:$0x2] }
 0x427   : > { %2472 = vst [vmem:[%s3426_s25 + $0x6] sm:$0x2] %v2471_v12  ;;  %2475 = vst [vmem:[%s3426_s25 + $0x8] sm:$0x2] %v2474_v26  ;;  %v2477_v58 = vsel %vm3584_vm3, %v2436_v50, %v2476_v30  ;;  %v2483_v20 = vsel %vm3584_vm3, %v2450_v59, %v2482_v14 }
 0x428   : > { %2481 = vst [vmem:[%s3426_s25 + $0xc] sm:$0x2] %v2480_v13  ;;  %2478 = vst [vmem:[%s3426_s25 + $0xa] sm:$0x2] %v2477_v58 }
 0x429   : > { %2484 = vst [vmem:[%s3426_s25 + $0xe] sm:$0x2] %v2483_v20 }
 0x42a PF: > { %s13_s16 = sadd.s32 1, %s2922_s16   ;;  %s3656_s12 = smov %s2910_s13 }
 0x42b   : > { %p10_p10 = scmp.ge.s32.totalorder %s13_s16, 4   ;;  %s3657_s13 = smov %s2987_s21 }
 0x42c   : > { %s3658_s14 = smov %s2918_s15  ;;  %s3659_s15 = smov %s3661_s17 }
 0x42d   :  { %12 = sbr.rel (!%p10_p10) target bundleno = 3 (0x3), region = 160 }

</bundles_post_ra>
